<compile_context>
chip_gen: v6e
topology: v6e:2x2x1
jax: 0.10.0
libtpu: 0.0.40
codegen_flags: <defaults>
</compile_context>

<pallas_src>
import math
import jax
import jax.numpy as jnp
from jax.experimental import pallas as pl
from jax.experimental.pallas import tpu as pltpu

# ---- model config (small, consistent with DenoisingTransformer) ----
B = 2            # batch
S = 8            # sequence
DIM_IN = 4       # dim_in
D = 32           # dim_base
NH = 4           # num_attn_head
DH = D // NH     # dim_head
FF = 64          # dim_feedforward
L = 2            # num_decoder_layer
KSIZE = 5
PAD = 2
DIM_OUT = DIM_IN  # learn_variance=False
EPS_LN = 1e-6
EPS_NORM = 1e-12
R = B * S        # batch folded into rows
NEG_BIG = -1e30


# ----------------------------- shared math -----------------------------------
def _layernorm(x, eps=EPS_LN):
    mu = jnp.mean(x, axis=-1, keepdims=True)
    xc = x - mu
    var = jnp.mean(xc * xc, axis=-1, keepdims=True)
    return xc * jax.lax.rsqrt(var + eps)


def _rmsnorm(x, g):
    # F.normalize(x, dim=-1) * g * sqrt(dim)   (rsqrt -> EUP path)
    n2 = jnp.sum(x * x, axis=-1, keepdims=True)
    inv = jax.lax.rsqrt(jnp.maximum(n2, EPS_NORM * EPS_NORM))
    return x * inv * g * math.sqrt(x.shape[-1])


# ----------------------------- Pallas kernel ----------------------------------
def fused_kernel(patches_ref, wconv_ref, bconv_ref, scale_t_ref, shift_t_ref,
                 pe_ref, bias_ref, mod_ref,
                 wq_ref, bq_ref, wk_ref, bk_ref, wv_ref, bv_ref,
                 gq_ref, gk_ref, wo_ref, bo_ref, gout_ref,
                 w1_ref, b1_ref, w2_ref, b2_ref,
                 scale_f_ref, shift_f_ref, wf1_ref, wf2_ref, bf_ref,
                 out_ref):
    f32 = jnp.float32

    # ---- init projection: Conv1d(k=5, pad=2) as a single im2col matmul ----
    x_copy = jnp.dot(patches_ref[...], wconv_ref[...],
                     preferred_element_type=f32) + bconv_ref[...]        # (R, D)
    h = x_copy * (1.0 + scale_t_ref[...]) + shift_t_ref[...]             # time adaLN
    h = h * jax.nn.sigmoid(h)                                            # SiLU
    x = h + pe_ref[...]                                                  # + pos-emb

    bias = bias_ref[...]                                                 # (R, R) block-diag mask
    inv_scale = DH ** -0.5

    for l in range(L):                        # L=2: unrolled, weights stay resident
        sc_a, sh_a, g_a = mod_ref[6 * l + 0], mod_ref[6 * l + 1], mod_ref[6 * l + 2]
        sc_m, sh_m, g_m = mod_ref[6 * l + 3], mod_ref[6 * l + 4], mod_ref[6 * l + 5]
        wo_l = wo_ref[l]

        # --- attention branch ---
        hn = _layernorm(x) * (1.0 + sc_a) + sh_a
        q = _rmsnorm(jnp.dot(hn, wq_ref[l], preferred_element_type=f32) + bq_ref[l],
                     gq_ref[l]) * inv_scale
        k = _rmsnorm(jnp.dot(hn, wk_ref[l], preferred_element_type=f32) + bk_ref[l],
                     gk_ref[l])
        v = jnp.dot(hn, wv_ref[l], preferred_element_type=f32) + bv_ref[l]

        att = jnp.zeros((R, D), f32) + bo_ref[l]          # out-projection accumulator
        for hh in range(NH):
            c0 = hh * DH
            qh = q[:, c0:c0 + DH]
            kh = k[:, c0:c0 + DH]
            vh = v[:, c0:c0 + DH]
            # all batches share one matmul; cross-batch pairs killed by `bias`
            sim = jax.lax.dot_general(qh, kh, (((1,), (1,)), ((), ())),
                                      preferred_element_type=f32) + bias
            sim = sim - jnp.max(sim, axis=-1, keepdims=True)
            e = jnp.exp(sim)
            p_att = e * pl.reciprocal(jnp.sum(e, axis=-1, keepdims=True), approx=True)
            oh = jnp.dot(p_att, vh, preferred_element_type=f32)           # (R, DH)
            # fold head output straight into the out-projection (no lane concat)
            att = att + jnp.dot(oh, wo_l[c0:c0 + DH, :],
                                preferred_element_type=f32)
        att = _rmsnorm(att, gout_ref[l])
        x = x + g_a * att

        # --- MLP branch ---
        # TODO(synk): nn.Dropout is stochastic; implemented as eval-mode identity.
        hm = _layernorm(x) * (1.0 + sc_m) + sh_m
        hm = jnp.dot(hm, w1_ref[l], preferred_element_type=f32) + b1_ref[l]
        hm = hm * jax.nn.sigmoid(hm)                                      # SiLU
        hm = jnp.dot(hm, w2_ref[l], preferred_element_type=f32) + b2_ref[l]
        x = x + g_m * hm

    # ---- final LayerNorm + adaLN + concat(x, x_copy) @ Wf + b ----
    xn = _layernorm(x) * (1.0 + scale_f_ref[...]) + shift_f_ref[...]
    out_ref[...] = (jnp.dot(xn, wf1_ref[...], preferred_element_type=f32)
                    + jnp.dot(x_copy, wf2_ref[...], preferred_element_type=f32)
                    + bf_ref[...])


def _full_spec(shape):
    nd = len(shape)
    return pl.BlockSpec(shape, lambda i, n=nd: (0,) * n)


# ----------------------------- glue (plain JAX) -------------------------------
def sinusoidal_pos_emb(pos, dim):
    half = dim // 2
    freqs = jnp.exp(jnp.arange(half, dtype=jnp.float32)
                    * (-math.log(10000.0) / (half - 1)))
    ang = pos[..., None].astype(jnp.float32) * freqs
    return jnp.concatenate([jnp.sin(ang), jnp.cos(ang)], axis=-1)


def init_params(key):
    def nrm(k, shape, scale=0.05):
        return jax.random.normal(k, shape, jnp.float32) * scale
    ks = iter(jax.random.split(key, 40))
    p = {}
    p["wt1"] = nrm(next(ks), (D, D));          p["bt1"] = nrm(next(ks), (D,), 0.02)
    p["wt2"] = nrm(next(ks), (D, 3 * D));      p["bt2"] = nrm(next(ks), (3 * D,), 0.02)
    p["wp1"] = nrm(next(ks), (D, D));          p["bp1"] = nrm(next(ks), (D,), 0.02)
    p["wp2"] = nrm(next(ks), (D, D));          p["bp2"] = nrm(next(ks), (D,), 0.02)
    p["wconv"] = nrm(next(ks), (KSIZE, DIM_IN, D))   # torch (D, C_in, K) -> (K, C_in, D)
    p["bconv"] = nrm(next(ks), (1, D), 0.02)
    # per-layer stacks (leading dim = layer)
    p["wada"] = nrm(next(ks), (L, D, 6 * D));  p["bada"] = nrm(next(ks), (L, 6 * D), 0.02)
    p["wqkv"] = nrm(next(ks), (L, D, 3 * D));  p["bqkv"] = nrm(next(ks), (L, 1, 3 * D), 0.02)
    p["gq"] = 1.0 + nrm(next(ks), (L, 1, D))
    p["gk"] = 1.0 + nrm(next(ks), (L, 1, D))
    p["wo"] = nrm(next(ks), (L, D, D));        p["bo"] = nrm(next(ks), (L, 1, D), 0.02)
    p["gout"] = 1.0 + nrm(next(ks), (L, 1, D))
    p["w1"] = nrm(next(ks), (L, D, FF));       p["b1"] = nrm(next(ks), (L, 1, FF), 0.02)
    p["w2"] = nrm(next(ks), (L, FF, D));       p["b2"] = nrm(next(ks), (L, 1, D), 0.02)
    p["wfada"] = nrm(next(ks), (D, 2 * D));    p["bfada"] = nrm(next(ks), (2 * D,), 0.02)
    p["wf"] = nrm(next(ks), (2 * D, DIM_OUT)); p["bf"] = nrm(next(ks), (1, DIM_OUT), 0.02)
    return p


def forward(params, x, time):
    p = params

    # --- time embedding MLP (tiny glue) ---
    te = sinusoidal_pos_emb(time, D)
    te = jax.nn.gelu(te @ p["wt1"] + p["bt1"], approximate=False)
    te = te @ p["wt2"] + p["bt2"]                              # (B, 3D)
    enc_t = te[:, 2 * D:3 * D]                                 # (B, D) conditioning token

    def rows(v):  # (B, D) per-batch vector -> flattened (B*S, D) row layout
        return jnp.broadcast_to(v[:, None, :], (B, S, D)).reshape(R, D)

    scale_t, shift_t = rows(te[:, 0:D]), rows(te[:, D:2 * D])

    # --- sequence positional embedding MLP (tiny glue) ---
    pos = jnp.arange(S, dtype=x.dtype)
    pe = sinusoidal_pos_emb(pos, D)
    pe = jax.nn.gelu(pe @ p["wp1"] + p["bp1"], approximate=False)
    pe = pe @ p["wp2"] + p["bp2"]                              # (S, D)
    pe_rows = jnp.tile(pe, (B, 1))                             # (R, D)

    # --- im2col patches for Conv1d(k=5, pad=2) -> one matmul in-kernel ---
    x_pad = jnp.pad(x, ((0, 0), (PAD, PAD), (0, 0)))
    patches = jnp.concatenate([x_pad[:, k:k + S, :] for k in range(KSIZE)],
                              axis=-1).reshape(R, KSIZE * DIM_IN)
    wconv_f = p["wconv"].reshape(KSIZE * DIM_IN, D)

    # --- per-layer adaLN modulation of the length-1 conditioning token ---
    c_act = jax.nn.silu(enc_t)                                 # (B, D)
    mod = jnp.einsum("bd,ldk->blk", c_act, p["wada"]) + p["bada"][None]   # (B, L, 6D)
    mod = mod.reshape(B, L, 6, D)
    mod = jnp.broadcast_to(mod[:, :, :, None, :], (B, L, 6, S, D))
    mod = mod.transpose(1, 2, 0, 3, 4).reshape(L * 6, R, D)    # row layout per (layer, slot)

    # --- final adaLN ---
    fmod = c_act @ p["wfada"] + p["bfada"]                     # (B, 2D)
    scale_f, shift_f = rows(fmod[:, 0:D]), rows(fmod[:, D:2 * D])

    # --- block-diagonal attention mask (batch folded into rows) ---
    bid = jnp.arange(R) // S
    attn_bias = jnp.where(bid[:, None] == bid[None, :], 0.0, NEG_BIG).astype(jnp.float32)

    # --- split fused qkv weights so q/k/v never need lane slicing in-kernel ---
    wq, wk, wv = p["wqkv"][:, :, :D], p["wqkv"][:, :, D:2 * D], p["wqkv"][:, :, 2 * D:]
    bq, bk, bv = p["bqkv"][:, :, :D], p["bqkv"][:, :, D:2 * D], p["bqkv"][:, :, 2 * D:]

    ins = [patches, wconv_f, p["bconv"], scale_t, shift_t, pe_rows, attn_bias, mod,
           wq, bq, wk, bk, wv, bv, p["gq"], p["gk"],
           p["wo"], p["bo"], p["gout"], p["w1"], p["b1"], p["w2"], p["b2"],
           scale_f, shift_f, p["wf"][0:D], p["wf"][D:2 * D], p["bf"]]

    out = pl.pallas_call(
        fused_kernel,
        out_shape=jax.ShapeDtypeStruct((R, DIM_OUT), jnp.float32),
        grid=(1,),
        in_specs=[_full_spec(a.shape) for a in ins],
        out_specs=_full_spec((R, DIM_OUT)),
        compiler_params=pltpu.CompilerParams(dimension_semantics=("arbitrary",)),
    )(*ins)
    return out.reshape(B, S, DIM_OUT)


# ----------------------------- pure-JAX reference -----------------------------
def forward_ref(params, x, time):
    p = params
    te = sinusoidal_pos_emb(time, D)
    te = jax.nn.gelu(te @ p["wt1"] + p["bt1"], approximate=False)
    te = te @ p["wt2"] + p["bt2"]
    scale_t, shift_t, enc_t = te[:, :D], te[:, D:2 * D], te[:, 2 * D:]
    x_pad = jnp.pad(x, ((0, 0), (PAD, PAD), (0, 0)))
    xc = jnp.zeros((B, S, D), jnp.float32) + p["bconv"]
    for k in range(KSIZE):
        xc = xc + jnp.einsum("bsc,cd->bsd", x_pad[:, k:k + S], p["wconv"][k])
    x_copy = xc
    h = jax.nn.silu(xc * (1.0 + scale_t[:, None, :]) + shift_t[:, None, :])
    pe = sinusoidal_pos_emb(jnp.arange(S, dtype=x.dtype), D)
    pe = jax.nn.gelu(pe @ p["wp1"] + p["bp1"], approximate=False)
    h = h + (pe @ p["wp2"] + p["bp2"])[None]
    c_act = jax.nn.silu(enc_t)
    for l in range(L):
        m = c_act @ p["wada"][l] + p["bada"][l]
        sc_a, sh_a, g_a, sc_m, sh_m, g_m = [
            m[:, i * D:(i + 1) * D][:, None, :] for i in range(6)]
        hn = _layernorm(h) * (1 + sc_a) + sh_a
        qkv = hn @ p["wqkv"][l] + p["bqkv"][l]
        q = _rmsnorm(qkv[..., :D], p["gq"][l]) * (DH ** -0.5)
        kk = _rmsnorm(qkv[..., D:2 * D], p["gk"][l])
        vv = qkv[..., 2 * D:]
        qh = q.reshape(B, S, NH, DH).transpose(0, 2, 1, 3)
        kh = kk.reshape(B, S, NH, DH).transpose(0, 2, 1, 3)
        vh = vv.reshape(B, S, NH, DH).transpose(0, 2, 1, 3)
        sim = jnp.einsum("bhld,bhnd->bhln", qh, kh)
        patt = jax.nn.softmax(sim, axis=-1)
        o = jnp.einsum("bhln,bhnd->bhld", patt, vh)
        o = o.transpose(0, 2, 1, 3).reshape(B, S, D)
        o = _rmsnorm(o @ p["wo"][l] + p["bo"][l], p["gout"][l])
        h = h + g_a * o
        hm = _layernorm(h) * (1 + sc_m) + sh_m
        hm = jax.nn.silu(hm @ p["w1"][l] + p["b1"][l])
        h = h + g_m * (hm @ p["w2"][l] + p["b2"][l])
    fmod = c_act @ p["wfada"] + p["bfada"]
    sc_f, sh_f = fmod[:, :D][:, None, :], fmod[:, D:][:, None, :]
    h = _layernorm(h) * (1 + sc_f) + sh_f
    return jnp.concatenate([h, x_copy], axis=-1) @ p["wf"] + p["bf"]


# ----------------------------------- main -------------------------------------
if __name__ == "__main__":
    key = jax.random.PRNGKey(0)
    kp, kx, kt = jax.random.split(key, 3)
    params = init_params(kp)
    x = jax.random.normal(kx, (B, S, DIM_IN), jnp.float32)
    time = jax.random.uniform(kt, (B,), jnp.float32, 0.0, 100.0)

    out = jax.jit(forward)(params, x, time)
    out = jax.block_until_ready(out)
    assert out.shape == (B, S, DIM_OUT), out.shape

    ref = forward_ref(params, x, time)
    max_err = float(jnp.max(jnp.abs(out - ref)))
    if max_err > 3e-2:
        raise AssertionError(f"mismatch vs plain-JAX reference: max_err={max_err}")
    print("KERNEL_OK")
</pallas_src>

<mosaic_0001>
module attributes {stable_mosaic.version = 11 : i64} {
  func.func @fused_kernel(%arg0: i32, %arg1: memref<16x20xf32, #tpu.memory_space<vmem>>, %arg2: memref<20x32xf32, #tpu.memory_space<vmem>>, %arg3: memref<1x32xf32, #tpu.memory_space<vmem>>, %arg4: memref<16x32xf32, #tpu.memory_space<vmem>>, %arg5: memref<16x32xf32, #tpu.memory_space<vmem>>, %arg6: memref<16x32xf32, #tpu.memory_space<vmem>>, %arg7: memref<16x16xf32, #tpu.memory_space<vmem>>, %arg8: memref<12x16x32xf32, #tpu.memory_space<vmem>>, %arg9: memref<2x32x32xf32, #tpu.memory_space<vmem>>, %arg10: memref<2x1x32xf32, #tpu.memory_space<vmem>>, %arg11: memref<2x32x32xf32, #tpu.memory_space<vmem>>, %arg12: memref<2x1x32xf32, #tpu.memory_space<vmem>>, %arg13: memref<2x32x32xf32, #tpu.memory_space<vmem>>, %arg14: memref<2x1x32xf32, #tpu.memory_space<vmem>>, %arg15: memref<2x1x32xf32, #tpu.memory_space<vmem>>, %arg16: memref<2x1x32xf32, #tpu.memory_space<vmem>>, %arg17: memref<2x32x32xf32, #tpu.memory_space<vmem>>, %arg18: memref<2x1x32xf32, #tpu.memory_space<vmem>>, %arg19: memref<2x1x32xf32, #tpu.memory_space<vmem>>, %arg20: memref<2x32x64xf32, #tpu.memory_space<vmem>>, %arg21: memref<2x1x64xf32, #tpu.memory_space<vmem>>, %arg22: memref<2x64x32xf32, #tpu.memory_space<vmem>>, %arg23: memref<2x1x32xf32, #tpu.memory_space<vmem>>, %arg24: memref<16x32xf32, #tpu.memory_space<vmem>>, %arg25: memref<16x32xf32, #tpu.memory_space<vmem>>, %arg26: memref<32x4xf32, #tpu.memory_space<vmem>>, %arg27: memref<32x4xf32, #tpu.memory_space<vmem>>, %arg28: memref<1x4xf32, #tpu.memory_space<vmem>>, %arg29: memref<16x4xf32, #tpu.memory_space<vmem>>) attributes {dimension_semantics = [#tpu.dimension_semantics<arbitrary>], iteration_bounds = array<i64: 1>, scalar_prefetch = 0 : i64, scratch_operands = 0 : i64, tpu.core_type = #tpu.core_type<tc>, window_params = [{pipeline_mode = #tpu.pipeline_mode<synchronous>, transform_indices = @transform_0, window_bounds = array<i64: 16, 20>}, {pipeline_mode = #tpu.pipeline_mode<synchronous>, transform_indices = @transform_1, window_bounds = array<i64: 20, 32>}, {pipeline_mode = #tpu.pipeline_mode<synchronous>, transform_indices = @transform_2, window_bounds = array<i64: 1, 32>}, {pipeline_mode = #tpu.pipeline_mode<synchronous>, transform_indices = @transform_3, window_bounds = array<i64: 16, 32>}, {pipeline_mode = #tpu.pipeline_mode<synchronous>, transform_indices = @transform_4, window_bounds = array<i64: 16, 32>}, {pipeline_mode = #tpu.pipeline_mode<synchronous>, transform_indices = @transform_5, window_bounds = array<i64: 16, 32>}, {pipeline_mode = #tpu.pipeline_mode<synchronous>, transform_indices = @transform_6, window_bounds = array<i64: 16, 16>}, {pipeline_mode = #tpu.pipeline_mode<synchronous>, transform_indices = @transform_7, window_bounds = array<i64: 12, 16, 32>}, {pipeline_mode = #tpu.pipeline_mode<synchronous>, transform_indices = @transform_8, window_bounds = array<i64: 2, 32, 32>}, {pipeline_mode = #tpu.pipeline_mode<synchronous>, transform_indices = @transform_9, window_bounds = array<i64: 2, 1, 32>}, {pipeline_mode = #tpu.pipeline_mode<synchronous>, transform_indices = @transform_10, window_bounds = array<i64: 2, 32, 32>}, {pipeline_mode = #tpu.pipeline_mode<synchronous>, transform_indices = @transform_11, window_bounds = array<i64: 2, 1, 32>}, {pipeline_mode = #tpu.pipeline_mode<synchronous>, transform_indices = @transform_12, window_bounds = array<i64: 2, 32, 32>}, {pipeline_mode = #tpu.pipeline_mode<synchronous>, transform_indices = @transform_13, window_bounds = array<i64: 2, 1, 32>}, {pipeline_mode = #tpu.pipeline_mode<synchronous>, transform_indices = @transform_14, window_bounds = array<i64: 2, 1, 32>}, {pipeline_mode = #tpu.pipeline_mode<synchronous>, transform_indices = @transform_15, window_bounds = array<i64: 2, 1, 32>}, {pipeline_mode = #tpu.pipeline_mode<synchronous>, transform_indices = @transform_16, window_bounds = array<i64: 2, 32, 32>}, {pipeline_mode = #tpu.pipeline_mode<synchronous>, transform_indices = @transform_17, window_bounds = array<i64: 2, 1, 32>}, {pipeline_mode = #tpu.pipeline_mode<synchronous>, transform_indices = @transform_18, window_bounds = array<i64: 2, 1, 32>}, {pipeline_mode = #tpu.pipeline_mode<synchronous>, transform_indices = @transform_19, window_bounds = array<i64: 2, 32, 64>}, {pipeline_mode = #tpu.pipeline_mode<synchronous>, transform_indices = @transform_20, window_bounds = array<i64: 2, 1, 64>}, {pipeline_mode = #tpu.pipeline_mode<synchronous>, transform_indices = @transform_21, window_bounds = array<i64: 2, 64, 32>}, {pipeline_mode = #tpu.pipeline_mode<synchronous>, transform_indices = @transform_22, window_bounds = array<i64: 2, 1, 32>}, {pipeline_mode = #tpu.pipeline_mode<synchronous>, transform_indices = @transform_23, window_bounds = array<i64: 16, 32>}, {pipeline_mode = #tpu.pipeline_mode<synchronous>, transform_indices = @transform_24, window_bounds = array<i64: 16, 32>}, {pipeline_mode = #tpu.pipeline_mode<synchronous>, transform_indices = @transform_25, window_bounds = array<i64: 32, 4>}, {pipeline_mode = #tpu.pipeline_mode<synchronous>, transform_indices = @transform_26, window_bounds = array<i64: 32, 4>}, {pipeline_mode = #tpu.pipeline_mode<synchronous>, transform_indices = @transform_27, window_bounds = array<i64: 1, 4>}, {pipeline_mode = #tpu.pipeline_mode<synchronous>, transform_indices = @transform_28, window_bounds = array<i64: 16, 4>}]} {
    %c0 = arith.constant 0 : index
    %c0_0 = arith.constant 0 : index
    %0 = vector.load %arg1[%c0, %c0_0] : memref<16x20xf32, #tpu.memory_space<vmem>>, vector<16x20xf32>
    %c0_1 = arith.constant 0 : index
    %c0_2 = arith.constant 0 : index
    %1 = vector.load %arg2[%c0_1, %c0_2] : memref<20x32xf32, #tpu.memory_space<vmem>>, vector<20x32xf32>
    %cst = arith.constant dense<0.000000e+00> : vector<16x32xf32>
    %2 = tpu.matmul %0, %1, %cst {dimension_numbers = #tpu.dot_dimension_numbers<[1], [0], [0], [1], [0, 0, 1, 1], [], []>} : vector<16x20xf32>, vector<20x32xf32>, vector<16x32xf32> -> vector<16x32xf32>
    %c0_3 = arith.constant 0 : index
    %c0_4 = arith.constant 0 : index
    %3 = vector.load %arg3[%c0_3, %c0_4] : memref<1x32xf32, #tpu.memory_space<vmem>>, vector<1x32xf32>
    %4 = vector.broadcast %3 : vector<1x32xf32> to vector<16x32xf32>
    %5 = arith.addf %2, %4 : vector<16x32xf32>
    %c0_5 = arith.constant 0 : index
    %c0_6 = arith.constant 0 : index
    %6 = vector.load %arg4[%c0_5, %c0_6] : memref<16x32xf32, #tpu.memory_space<vmem>>, vector<16x32xf32>
    %cst_7 = arith.constant 1.000000e+00 : f32
    %7 = vector.broadcast %cst_7 : f32 to vector<16x32xf32>
    %8 = arith.addf %7, %6 : vector<16x32xf32>
    %9 = arith.mulf %5, %8 : vector<16x32xf32>
    %c0_8 = arith.constant 0 : index
    %c0_9 = arith.constant 0 : index
    %10 = vector.load %arg5[%c0_8, %c0_9] : memref<16x32xf32, #tpu.memory_space<vmem>>, vector<16x32xf32>
    %11 = arith.addf %9, %10 : vector<16x32xf32>
    %12 = arith.negf %11 : vector<16x32xf32>
    %13 = math.exp %12 : vector<16x32xf32>
    %cst_10 = arith.constant 1.000000e+00 : f32
    %14 = vector.broadcast %cst_10 : f32 to vector<16x32xf32>
    %15 = arith.addf %14, %13 : vector<16x32xf32>
    %16 = arith.divf %14, %15 : vector<16x32xf32>
    %17 = arith.mulf %11, %16 : vector<16x32xf32>
    %c0_11 = arith.constant 0 : index
    %c0_12 = arith.constant 0 : index
    %18 = vector.load %arg6[%c0_11, %c0_12] : memref<16x32xf32, #tpu.memory_space<vmem>>, vector<16x32xf32>
    %19 = arith.addf %17, %18 : vector<16x32xf32>
    %c0_13 = arith.constant 0 : index
    %c0_14 = arith.constant 0 : index
    %20 = vector.load %arg7[%c0_13, %c0_14] : memref<16x16xf32, #tpu.memory_space<vmem>>, vector<16x16xf32>
    %c0_15 = arith.constant 0 : index
    %c0_16 = arith.constant 0 : index
    %c0_17 = arith.constant 0 : index
    %21 = vector.load %arg8[%c0_15, %c0_16, %c0_17] : memref<12x16x32xf32, #tpu.memory_space<vmem>>, vector<1x16x32xf32>
    %22 = vector.shape_cast %21 : vector<1x16x32xf32> to vector<16x32xf32>
    %c1 = arith.constant 1 : index
    %c0_18 = arith.constant 0 : index
    %c0_19 = arith.constant 0 : index
    %23 = vector.load %arg8[%c1, %c0_18, %c0_19] : memref<12x16x32xf32, #tpu.memory_space<vmem>>, vector<1x16x32xf32>
    %24 = vector.shape_cast %23 : vector<1x16x32xf32> to vector<16x32xf32>
    %c2 = arith.constant 2 : index
    %c0_20 = arith.constant 0 : index
    %c0_21 = arith.constant 0 : index
    %25 = vector.load %arg8[%c2, %c0_20, %c0_21] : memref<12x16x32xf32, #tpu.memory_space<vmem>>, vector<1x16x32xf32>
    %26 = vector.shape_cast %25 : vector<1x16x32xf32> to vector<16x32xf32>
    %c3 = arith.constant 3 : index
    %c0_22 = arith.constant 0 : index
    %c0_23 = arith.constant 0 : index
    %27 = vector.load %arg8[%c3, %c0_22, %c0_23] : memref<12x16x32xf32, #tpu.memory_space<vmem>>, vector<1x16x32xf32>
    %28 = vector.shape_cast %27 : vector<1x16x32xf32> to vector<16x32xf32>
    %c4 = arith.constant 4 : index
    %c0_24 = arith.constant 0 : index
    %c0_25 = arith.constant 0 : index
    %29 = vector.load %arg8[%c4, %c0_24, %c0_25] : memref<12x16x32xf32, #tpu.memory_space<vmem>>, vector<1x16x32xf32>
    %30 = vector.shape_cast %29 : vector<1x16x32xf32> to vector<16x32xf32>
    %c5 = arith.constant 5 : index
    %c0_26 = arith.constant 0 : index
    %c0_27 = arith.constant 0 : index
    %31 = vector.load %arg8[%c5, %c0_26, %c0_27] : memref<12x16x32xf32, #tpu.memory_space<vmem>>, vector<1x16x32xf32>
    %32 = vector.shape_cast %31 : vector<1x16x32xf32> to vector<16x32xf32>
    %c0_28 = arith.constant 0 : index
    %c0_29 = arith.constant 0 : index
    %c0_30 = arith.constant 0 : index
    %33 = vector.load %arg17[%c0_28, %c0_29, %c0_30] : memref<2x32x32xf32, #tpu.memory_space<vmem>>, vector<1x32x32xf32>
    %34 = vector.shape_cast %33 : vector<1x32x32xf32> to vector<32x32xf32>
    %cst_31 = arith.constant dense<0.000000e+00> : vector<16xf32>
    %35 = vector.multi_reduction <add>, %19, %cst_31 [1] : vector<16x32xf32> to vector<16xf32>
    %36 = vector.shape_cast %35 : vector<16xf32> to vector<16x1xf32>
    %cst_32 = arith.constant 3.200000e+01 : f32
    %37 = vector.broadcast %cst_32 : f32 to vector<16x1xf32>
    %38 = arith.divf %36, %37 : vector<16x1xf32>
    %39 = vector.broadcast %38 : vector<16x1xf32> to vector<16x32xf32>
    %40 = arith.subf %19, %39 : vector<16x32xf32>
    %41 = arith.mulf %40, %40 : vector<16x32xf32>
    %cst_33 = arith.constant dense<0.000000e+00> : vector<16xf32>
    %42 = vector.multi_reduction <add>, %41, %cst_33 [1] : vector<16x32xf32> to vector<16xf32>
    %43 = vector.shape_cast %42 : vector<16xf32> to vector<16x1xf32>
    %cst_34 = arith.constant 3.200000e+01 : f32
    %44 = vector.broadcast %cst_34 : f32 to vector<16x1xf32>
    %45 = arith.divf %43, %44 : vector<16x1xf32>
    %cst_35 = arith.constant 9.99999997E-7 : f32
    %46 = vector.broadcast %cst_35 : f32 to vector<16x1xf32>
    %47 = arith.addf %45, %46 : vector<16x1xf32>
    %48 = math.rsqrt %47 : vector<16x1xf32>
    %49 = vector.broadcast %48 : vector<16x1xf32> to vector<16x32xf32>
    %50 = arith.mulf %40, %49 : vector<16x32xf32>
    %cst_36 = arith.constant 1.000000e+00 : f32
    %51 = vector.broadcast %cst_36 : f32 to vector<16x32xf32>
    %52 = arith.addf %51, %22 : vector<16x32xf32>
    %53 = arith.mulf %50, %52 : vector<16x32xf32>
    %54 = arith.addf %53, %24 : vector<16x32xf32>
    %c0_37 = arith.constant 0 : index
    %c0_38 = arith.constant 0 : index
    %c0_39 = arith.constant 0 : index
    %55 = vector.load %arg9[%c0_37, %c0_38, %c0_39] : memref<2x32x32xf32, #tpu.memory_space<vmem>>, vector<1x32x32xf32>
    %56 = vector.shape_cast %55 : vector<1x32x32xf32> to vector<32x32xf32>
    %cst_40 = arith.constant dense<0.000000e+00> : vector<16x32xf32>
    %57 = tpu.matmul %54, %56, %cst_40 {dimension_numbers = #tpu.dot_dimension_numbers<[1], [0], [0], [1], [0, 0, 1, 1], [], []>} : vector<16x32xf32>, vector<32x32xf32>, vector<16x32xf32> -> vector<16x32xf32>
    %c0_41 = arith.constant 0 : index
    %c0_42 = arith.constant 0 : index
    %c0_43 = arith.constant 0 : index
    %58 = vector.load %arg10[%c0_41, %c0_42, %c0_43] : memref<2x1x32xf32, #tpu.memory_space<vmem>>, vector<1x1x32xf32>
    %59 = vector.shape_cast %58 : vector<1x1x32xf32> to vector<1x32xf32>
    %60 = vector.broadcast %59 : vector<1x32xf32> to vector<16x32xf32>
    %61 = arith.addf %57, %60 : vector<16x32xf32>
    %c0_44 = arith.constant 0 : index
    %c0_45 = arith.constant 0 : index
    %c0_46 = arith.constant 0 : index
    %62 = vector.load %arg15[%c0_44, %c0_45, %c0_46] : memref<2x1x32xf32, #tpu.memory_space<vmem>>, vector<1x1x32xf32>
    %63 = vector.shape_cast %62 : vector<1x1x32xf32> to vector<1x32xf32>
    %64 = arith.mulf %61, %61 : vector<16x32xf32>
    %cst_47 = arith.constant dense<0.000000e+00> : vector<16xf32>
    %65 = vector.multi_reduction <add>, %64, %cst_47 [1] : vector<16x32xf32> to vector<16xf32>
    %66 = vector.shape_cast %65 : vector<16xf32> to vector<16x1xf32>
    %cst_48 = arith.constant 1.000000e-24 : f32
    %67 = vector.broadcast %cst_48 : f32 to vector<16x1xf32>
    %68 = arith.maximumf %66, %67 : vector<16x1xf32>
    %69 = math.rsqrt %68 : vector<16x1xf32>
    %70 = vector.broadcast %69 : vector<16x1xf32> to vector<16x32xf32>
    %71 = arith.mulf %61, %70 : vector<16x32xf32>
    %72 = vector.broadcast %63 : vector<1x32xf32> to vector<16x32xf32>
    %73 = arith.mulf %71, %72 : vector<16x32xf32>
    %cst_49 = arith.constant 5.65685415 : f32
    %74 = vector.broadcast %cst_49 : f32 to vector<16x32xf32>
    %75 = arith.mulf %73, %74 : vector<16x32xf32>
    %cst_50 = arith.constant 0.353553385 : f32
    %76 = vector.broadcast %cst_50 : f32 to vector<16x32xf32>
    %77 = arith.mulf %75, %76 : vector<16x32xf32>
    %c0_51 = arith.constant 0 : index
    %c0_52 = arith.constant 0 : index
    %c0_53 = arith.constant 0 : index
    %78 = vector.load %arg11[%c0_51, %c0_52, %c0_53] : memref<2x32x32xf32, #tpu.memory_space<vmem>>, vector<1x32x32xf32>
    %79 = vector.shape_cast %78 : vector<1x32x32xf32> to vector<32x32xf32>
    %cst_54 = arith.constant dense<0.000000e+00> : vector<16x32xf32>
    %80 = tpu.matmul %54, %79, %cst_54 {dimension_numbers = #tpu.dot_dimension_numbers<[1], [0], [0], [1], [0, 0, 1, 1], [], []>} : vector<16x32xf32>, vector<32x32xf32>, vector<16x32xf32> -> vector<16x32xf32>
    %c0_55 = arith.constant 0 : index
    %c0_56 = arith.constant 0 : index
    %c0_57 = arith.constant 0 : index
    %81 = vector.load %arg12[%c0_55, %c0_56, %c0_57] : memref<2x1x32xf32, #tpu.memory_space<vmem>>, vector<1x1x32xf32>
    %82 = vector.shape_cast %81 : vector<1x1x32xf32> to vector<1x32xf32>
    %83 = vector.broadcast %82 : vector<1x32xf32> to vector<16x32xf32>
    %84 = arith.addf %80, %83 : vector<16x32xf32>
    %c0_58 = arith.constant 0 : index
    %c0_59 = arith.constant 0 : index
    %c0_60 = arith.constant 0 : index
    %85 = vector.load %arg16[%c0_58, %c0_59, %c0_60] : memref<2x1x32xf32, #tpu.memory_space<vmem>>, vector<1x1x32xf32>
    %86 = vector.shape_cast %85 : vector<1x1x32xf32> to vector<1x32xf32>
    %87 = arith.mulf %84, %84 : vector<16x32xf32>
    %cst_61 = arith.constant dense<0.000000e+00> : vector<16xf32>
    %88 = vector.multi_reduction <add>, %87, %cst_61 [1] : vector<16x32xf32> to vector<16xf32>
    %89 = vector.shape_cast %88 : vector<16xf32> to vector<16x1xf32>
    %cst_62 = arith.constant 1.000000e-24 : f32
    %90 = vector.broadcast %cst_62 : f32 to vector<16x1xf32>
    %91 = arith.maximumf %89, %90 : vector<16x1xf32>
    %92 = math.rsqrt %91 : vector<16x1xf32>
    %93 = vector.broadcast %92 : vector<16x1xf32> to vector<16x32xf32>
    %94 = arith.mulf %84, %93 : vector<16x32xf32>
    %95 = vector.broadcast %86 : vector<1x32xf32> to vector<16x32xf32>
    %96 = arith.mulf %94, %95 : vector<16x32xf32>
    %cst_63 = arith.constant 5.65685415 : f32
    %97 = vector.broadcast %cst_63 : f32 to vector<16x32xf32>
    %98 = arith.mulf %96, %97 : vector<16x32xf32>
    %c0_64 = arith.constant 0 : index
    %c0_65 = arith.constant 0 : index
    %c0_66 = arith.constant 0 : index
    %99 = vector.load %arg13[%c0_64, %c0_65, %c0_66] : memref<2x32x32xf32, #tpu.memory_space<vmem>>, vector<1x32x32xf32>
    %100 = vector.shape_cast %99 : vector<1x32x32xf32> to vector<32x32xf32>
    %cst_67 = arith.constant dense<0.000000e+00> : vector<16x32xf32>
    %101 = tpu.matmul %54, %100, %cst_67 {dimension_numbers = #tpu.dot_dimension_numbers<[1], [0], [0], [1], [0, 0, 1, 1], [], []>} : vector<16x32xf32>, vector<32x32xf32>, vector<16x32xf32> -> vector<16x32xf32>
    %c0_68 = arith.constant 0 : index
    %c0_69 = arith.constant 0 : index
    %c0_70 = arith.constant 0 : index
    %102 = vector.load %arg14[%c0_68, %c0_69, %c0_70] : memref<2x1x32xf32, #tpu.memory_space<vmem>>, vector<1x1x32xf32>
    %103 = vector.shape_cast %102 : vector<1x1x32xf32> to vector<1x32xf32>
    %104 = vector.broadcast %103 : vector<1x32xf32> to vector<16x32xf32>
    %105 = arith.addf %101, %104 : vector<16x32xf32>
    %cst_71 = arith.constant 0.000000e+00 : f32
    %106 = vector.broadcast %cst_71 : f32 to vector<16x32xf32>
    %c0_72 = arith.constant 0 : index
    %c0_73 = arith.constant 0 : index
    %c0_74 = arith.constant 0 : index
    %107 = vector.load %arg18[%c0_72, %c0_73, %c0_74] : memref<2x1x32xf32, #tpu.memory_space<vmem>>, vector<1x1x32xf32>
    %108 = vector.shape_cast %107 : vector<1x1x32xf32> to vector<1x32xf32>
    %109 = vector.broadcast %108 : vector<1x32xf32> to vector<16x32xf32>
    %110 = arith.addf %106, %109 : vector<16x32xf32>
    %111 = vector.extract_strided_slice %77 {offsets = [0, 0], sizes = [16, 8], strides = [1, 1]} : vector<16x32xf32> to vector<16x8xf32>
    %112 = vector.extract_strided_slice %98 {offsets = [0, 0], sizes = [16, 8], strides = [1, 1]} : vector<16x32xf32> to vector<16x8xf32>
    %113 = vector.extract_strided_slice %105 {offsets = [0, 0], sizes = [16, 8], strides = [1, 1]} : vector<16x32xf32> to vector<16x8xf32>
    %cst_75 = arith.constant dense<0.000000e+00> : vector<16x16xf32>
    %114 = tpu.matmul %111, %112, %cst_75 {dimension_numbers = #tpu.dot_dimension_numbers<[1], [1], [0], [0], [0, 0, 1, 0], [], []>} : vector<16x8xf32>, vector<16x8xf32>, vector<16x16xf32> -> vector<16x16xf32>
    %115 = arith.addf %114, %20 : vector<16x16xf32>
    %cst_76 = arith.constant dense<0xFF800000> : vector<16xf32>
    %116 = vector.multi_reduction <maximumf>, %115, %cst_76 [1] : vector<16x16xf32> to vector<16xf32>
    %117 = vector.shape_cast %116 : vector<16xf32> to vector<16x1xf32>
    %118 = vector.broadcast %117 : vector<16x1xf32> to vector<16x16xf32>
    %119 = arith.subf %115, %118 : vector<16x16xf32>
    %120 = math.exp %119 : vector<16x16xf32>
    %cst_77 = arith.constant dense<0.000000e+00> : vector<16xf32>
    %121 = vector.multi_reduction <add>, %120, %cst_77 [1] : vector<16x16xf32> to vector<16xf32>
    %122 = vector.shape_cast %121 : vector<16xf32> to vector<16x1xf32>
    %123 = tpu.reciprocal %122 {approx = true} : vector<16x1xf32> -> vector<16x1xf32>
    %124 = vector.broadcast %123 : vector<16x1xf32> to vector<16x16xf32>
    %125 = arith.mulf %120, %124 : vector<16x16xf32>
    %cst_78 = arith.constant dense<0.000000e+00> : vector<16x8xf32>
    %126 = tpu.matmul %125, %113, %cst_78 {dimension_numbers = #tpu.dot_dimension_numbers<[1], [0], [0], [1], [0, 0, 1, 1], [], []>} : vector<16x16xf32>, vector<16x8xf32>, vector<16x8xf32> -> vector<16x8xf32>
    %127 = vector.extract_strided_slice %34 {offsets = [0, 0], sizes = [8, 32], strides = [1, 1]} : vector<32x32xf32> to vector<8x32xf32>
    %cst_79 = arith.constant dense<0.000000e+00> : vector<16x32xf32>
    %128 = tpu.matmul %126, %127, %cst_79 {dimension_numbers = #tpu.dot_dimension_numbers<[1], [0], [0], [1], [0, 0, 1, 1], [], []>} : vector<16x8xf32>, vector<8x32xf32>, vector<16x32xf32> -> vector<16x32xf32>
    %129 = arith.addf %110, %128 : vector<16x32xf32>
    %130 = vector.extract_strided_slice %77 {offsets = [0, 8], sizes = [16, 8], strides = [1, 1]} : vector<16x32xf32> to vector<16x8xf32>
    %131 = vector.extract_strided_slice %98 {offsets = [0, 8], sizes = [16, 8], strides = [1, 1]} : vector<16x32xf32> to vector<16x8xf32>
    %132 = vector.extract_strided_slice %105 {offsets = [0, 8], sizes = [16, 8], strides = [1, 1]} : vector<16x32xf32> to vector<16x8xf32>
    %cst_80 = arith.constant dense<0.000000e+00> : vector<16x16xf32>
    %133 = tpu.matmul %130, %131, %cst_80 {dimension_numbers = #tpu.dot_dimension_numbers<[1], [1], [0], [0], [0, 0, 1, 0], [], []>} : vector<16x8xf32>, vector<16x8xf32>, vector<16x16xf32> -> vector<16x16xf32>
    %134 = arith.addf %133, %20 : vector<16x16xf32>
    %cst_81 = arith.constant dense<0xFF800000> : vector<16xf32>
    %135 = vector.multi_reduction <maximumf>, %134, %cst_81 [1] : vector<16x16xf32> to vector<16xf32>
    %136 = vector.shape_cast %135 : vector<16xf32> to vector<16x1xf32>
    %137 = vector.broadcast %136 : vector<16x1xf32> to vector<16x16xf32>
    %138 = arith.subf %134, %137 : vector<16x16xf32>
    %139 = math.exp %138 : vector<16x16xf32>
    %cst_82 = arith.constant dense<0.000000e+00> : vector<16xf32>
    %140 = vector.multi_reduction <add>, %139, %cst_82 [1] : vector<16x16xf32> to vector<16xf32>
    %141 = vector.shape_cast %140 : vector<16xf32> to vector<16x1xf32>
    %142 = tpu.reciprocal %141 {approx = true} : vector<16x1xf32> -> vector<16x1xf32>
    %143 = vector.broadcast %142 : vector<16x1xf32> to vector<16x16xf32>
    %144 = arith.mulf %139, %143 : vector<16x16xf32>
    %cst_83 = arith.constant dense<0.000000e+00> : vector<16x8xf32>
    %145 = tpu.matmul %144, %132, %cst_83 {dimension_numbers = #tpu.dot_dimension_numbers<[1], [0], [0], [1], [0, 0, 1, 1], [], []>} : vector<16x16xf32>, vector<16x8xf32>, vector<16x8xf32> -> vector<16x8xf32>
    %146 = vector.extract_strided_slice %34 {offsets = [8, 0], sizes = [8, 32], strides = [1, 1]} : vector<32x32xf32> to vector<8x32xf32>
    %cst_84 = arith.constant dense<0.000000e+00> : vector<16x32xf32>
    %147 = tpu.matmul %145, %146, %cst_84 {dimension_numbers = #tpu.dot_dimension_numbers<[1], [0], [0], [1], [0, 0, 1, 1], [], []>} : vector<16x8xf32>, vector<8x32xf32>, vector<16x32xf32> -> vector<16x32xf32>
    %148 = arith.addf %129, %147 : vector<16x32xf32>
    %149 = vector.extract_strided_slice %77 {offsets = [0, 16], sizes = [16, 8], strides = [1, 1]} : vector<16x32xf32> to vector<16x8xf32>
    %150 = vector.extract_strided_slice %98 {offsets = [0, 16], sizes = [16, 8], strides = [1, 1]} : vector<16x32xf32> to vector<16x8xf32>
    %151 = vector.extract_strided_slice %105 {offsets = [0, 16], sizes = [16, 8], strides = [1, 1]} : vector<16x32xf32> to vector<16x8xf32>
    %cst_85 = arith.constant dense<0.000000e+00> : vector<16x16xf32>
    %152 = tpu.matmul %149, %150, %cst_85 {dimension_numbers = #tpu.dot_dimension_numbers<[1], [1], [0], [0], [0, 0, 1, 0], [], []>} : vector<16x8xf32>, vector<16x8xf32>, vector<16x16xf32> -> vector<16x16xf32>
    %153 = arith.addf %152, %20 : vector<16x16xf32>
    %cst_86 = arith.constant dense<0xFF800000> : vector<16xf32>
    %154 = vector.multi_reduction <maximumf>, %153, %cst_86 [1] : vector<16x16xf32> to vector<16xf32>
    %155 = vector.shape_cast %154 : vector<16xf32> to vector<16x1xf32>
    %156 = vector.broadcast %155 : vector<16x1xf32> to vector<16x16xf32>
    %157 = arith.subf %153, %156 : vector<16x16xf32>
    %158 = math.exp %157 : vector<16x16xf32>
    %cst_87 = arith.constant dense<0.000000e+00> : vector<16xf32>
    %159 = vector.multi_reduction <add>, %158, %cst_87 [1] : vector<16x16xf32> to vector<16xf32>
    %160 = vector.shape_cast %159 : vector<16xf32> to vector<16x1xf32>
    %161 = tpu.reciprocal %160 {approx = true} : vector<16x1xf32> -> vector<16x1xf32>
    %162 = vector.broadcast %161 : vector<16x1xf32> to vector<16x16xf32>
    %163 = arith.mulf %158, %162 : vector<16x16xf32>
    %cst_88 = arith.constant dense<0.000000e+00> : vector<16x8xf32>
    %164 = tpu.matmul %163, %151, %cst_88 {dimension_numbers = #tpu.dot_dimension_numbers<[1], [0], [0], [1], [0, 0, 1, 1], [], []>} : vector<16x16xf32>, vector<16x8xf32>, vector<16x8xf32> -> vector<16x8xf32>
    %165 = vector.extract_strided_slice %34 {offsets = [16, 0], sizes = [8, 32], strides = [1, 1]} : vector<32x32xf32> to vector<8x32xf32>
    %cst_89 = arith.constant dense<0.000000e+00> : vector<16x32xf32>
    %166 = tpu.matmul %164, %165, %cst_89 {dimension_numbers = #tpu.dot_dimension_numbers<[1], [0], [0], [1], [0, 0, 1, 1], [], []>} : vector<16x8xf32>, vector<8x32xf32>, vector<16x32xf32> -> vector<16x32xf32>
    %167 = arith.addf %148, %166 : vector<16x32xf32>
    %168 = vector.extract_strided_slice %77 {offsets = [0, 24], sizes = [16, 8], strides = [1, 1]} : vector<16x32xf32> to vector<16x8xf32>
    %169 = vector.extract_strided_slice %98 {offsets = [0, 24], sizes = [16, 8], strides = [1, 1]} : vector<16x32xf32> to vector<16x8xf32>
    %170 = vector.extract_strided_slice %105 {offsets = [0, 24], sizes = [16, 8], strides = [1, 1]} : vector<16x32xf32> to vector<16x8xf32>
    %cst_90 = arith.constant dense<0.000000e+00> : vector<16x16xf32>
    %171 = tpu.matmul %168, %169, %cst_90 {dimension_numbers = #tpu.dot_dimension_numbers<[1], [1], [0], [0], [0, 0, 1, 0], [], []>} : vector<16x8xf32>, vector<16x8xf32>, vector<16x16xf32> -> vector<16x16xf32>
    %172 = arith.addf %171, %20 : vector<16x16xf32>
    %cst_91 = arith.constant dense<0xFF800000> : vector<16xf32>
    %173 = vector.multi_reduction <maximumf>, %172, %cst_91 [1] : vector<16x16xf32> to vector<16xf32>
    %174 = vector.shape_cast %173 : vector<16xf32> to vector<16x1xf32>
    %175 = vector.broadcast %174 : vector<16x1xf32> to vector<16x16xf32>
    %176 = arith.subf %172, %175 : vector<16x16xf32>
    %177 = math.exp %176 : vector<16x16xf32>
    %cst_92 = arith.constant dense<0.000000e+00> : vector<16xf32>
    %178 = vector.multi_reduction <add>, %177, %cst_92 [1] : vector<16x16xf32> to vector<16xf32>
    %179 = vector.shape_cast %178 : vector<16xf32> to vector<16x1xf32>
    %180 = tpu.reciprocal %179 {approx = true} : vector<16x1xf32> -> vector<16x1xf32>
    %181 = vector.broadcast %180 : vector<16x1xf32> to vector<16x16xf32>
    %182 = arith.mulf %177, %181 : vector<16x16xf32>
    %cst_93 = arith.constant dense<0.000000e+00> : vector<16x8xf32>
    %183 = tpu.matmul %182, %170, %cst_93 {dimension_numbers = #tpu.dot_dimension_numbers<[1], [0], [0], [1], [0, 0, 1, 1], [], []>} : vector<16x16xf32>, vector<16x8xf32>, vector<16x8xf32> -> vector<16x8xf32>
    %184 = vector.extract_strided_slice %34 {offsets = [24, 0], sizes = [8, 32], strides = [1, 1]} : vector<32x32xf32> to vector<8x32xf32>
    %cst_94 = arith.constant dense<0.000000e+00> : vector<16x32xf32>
    %185 = tpu.matmul %183, %184, %cst_94 {dimension_numbers = #tpu.dot_dimension_numbers<[1], [0], [0], [1], [0, 0, 1, 1], [], []>} : vector<16x8xf32>, vector<8x32xf32>, vector<16x32xf32> -> vector<16x32xf32>
    %186 = arith.addf %167, %185 : vector<16x32xf32>
    %c0_95 = arith.constant 0 : index
    %c0_96 = arith.constant 0 : index
    %c0_97 = arith.constant 0 : index
    %187 = vector.load %arg19[%c0_95, %c0_96, %c0_97] : memref<2x1x32xf32, #tpu.memory_space<vmem>>, vector<1x1x32xf32>
    %188 = vector.shape_cast %187 : vector<1x1x32xf32> to vector<1x32xf32>
    %189 = arith.mulf %186, %186 : vector<16x32xf32>
    %cst_98 = arith.constant dense<0.000000e+00> : vector<16xf32>
    %190 = vector.multi_reduction <add>, %189, %cst_98 [1] : vector<16x32xf32> to vector<16xf32>
    %191 = vector.shape_cast %190 : vector<16xf32> to vector<16x1xf32>
    %cst_99 = arith.constant 1.000000e-24 : f32
    %192 = vector.broadcast %cst_99 : f32 to vector<16x1xf32>
    %193 = arith.maximumf %191, %192 : vector<16x1xf32>
    %194 = math.rsqrt %193 : vector<16x1xf32>
    %195 = vector.broadcast %194 : vector<16x1xf32> to vector<16x32xf32>
    %196 = arith.mulf %186, %195 : vector<16x32xf32>
    %197 = vector.broadcast %188 : vector<1x32xf32> to vector<16x32xf32>
    %198 = arith.mulf %196, %197 : vector<16x32xf32>
    %cst_100 = arith.constant 5.65685415 : f32
    %199 = vector.broadcast %cst_100 : f32 to vector<16x32xf32>
    %200 = arith.mulf %198, %199 : vector<16x32xf32>
    %201 = arith.mulf %26, %200 : vector<16x32xf32>
    %202 = arith.addf %19, %201 : vector<16x32xf32>
    %cst_101 = arith.constant dense<0.000000e+00> : vector<16xf32>
    %203 = vector.multi_reduction <add>, %202, %cst_101 [1] : vector<16x32xf32> to vector<16xf32>
    %204 = vector.shape_cast %203 : vector<16xf32> to vector<16x1xf32>
    %cst_102 = arith.constant 3.200000e+01 : f32
    %205 = vector.broadcast %cst_102 : f32 to vector<16x1xf32>
    %206 = arith.divf %204, %205 : vector<16x1xf32>
    %207 = vector.broadcast %206 : vector<16x1xf32> to vector<16x32xf32>
    %208 = arith.subf %202, %207 : vector<16x32xf32>
    %209 = arith.mulf %208, %208 : vector<16x32xf32>
    %cst_103 = arith.constant dense<0.000000e+00> : vector<16xf32>
    %210 = vector.multi_reduction <add>, %209, %cst_103 [1] : vector<16x32xf32> to vector<16xf32>
    %211 = vector.shape_cast %210 : vector<16xf32> to vector<16x1xf32>
    %cst_104 = arith.constant 3.200000e+01 : f32
    %212 = vector.broadcast %cst_104 : f32 to vector<16x1xf32>
    %213 = arith.divf %211, %212 : vector<16x1xf32>
    %cst_105 = arith.constant 9.99999997E-7 : f32
    %214 = vector.broadcast %cst_105 : f32 to vector<16x1xf32>
    %215 = arith.addf %213, %214 : vector<16x1xf32>
    %216 = math.rsqrt %215 : vector<16x1xf32>
    %217 = vector.broadcast %216 : vector<16x1xf32> to vector<16x32xf32>
    %218 = arith.mulf %208, %217 : vector<16x32xf32>
    %cst_106 = arith.constant 1.000000e+00 : f32
    %219 = vector.broadcast %cst_106 : f32 to vector<16x32xf32>
    %220 = arith.addf %219, %28 : vector<16x32xf32>
    %221 = arith.mulf %218, %220 : vector<16x32xf32>
    %222 = arith.addf %221, %30 : vector<16x32xf32>
    %c0_107 = arith.constant 0 : index
    %c0_108 = arith.constant 0 : index
    %c0_109 = arith.constant 0 : index
    %223 = vector.load %arg20[%c0_107, %c0_108, %c0_109] : memref<2x32x64xf32, #tpu.memory_space<vmem>>, vector<1x32x64xf32>
    %224 = vector.shape_cast %223 : vector<1x32x64xf32> to vector<32x64xf32>
    %cst_110 = arith.constant dense<0.000000e+00> : vector<16x64xf32>
    %225 = tpu.matmul %222, %224, %cst_110 {dimension_numbers = #tpu.dot_dimension_numbers<[1], [0], [0], [1], [0, 0, 1, 1], [], []>} : vector<16x32xf32>, vector<32x64xf32>, vector<16x64xf32> -> vector<16x64xf32>
    %c0_111 = arith.constant 0 : index
    %c0_112 = arith.constant 0 : index
    %c0_113 = arith.constant 0 : index
    %226 = vector.load %arg21[%c0_111, %c0_112, %c0_113] : memref<2x1x64xf32, #tpu.memory_space<vmem>>, vector<1x1x64xf32>
    %227 = vector.shape_cast %226 : vector<1x1x64xf32> to vector<1x64xf32>
    %228 = vector.broadcast %227 : vector<1x64xf32> to vector<16x64xf32>
    %229 = arith.addf %225, %228 : vector<16x64xf32>
    %230 = arith.negf %229 : vector<16x64xf32>
    %231 = math.exp %230 : vector<16x64xf32>
    %cst_114 = arith.constant 1.000000e+00 : f32
    %232 = vector.broadcast %cst_114 : f32 to vector<16x64xf32>
    %233 = arith.addf %232, %231 : vector<16x64xf32>
    %234 = arith.divf %232, %233 : vector<16x64xf32>
    %235 = arith.mulf %229, %234 : vector<16x64xf32>
    %c0_115 = arith.constant 0 : index
    %c0_116 = arith.constant 0 : index
    %c0_117 = arith.constant 0 : index
    %236 = vector.load %arg22[%c0_115, %c0_116, %c0_117] : memref<2x64x32xf32, #tpu.memory_space<vmem>>, vector<1x64x32xf32>
    %237 = vector.shape_cast %236 : vector<1x64x32xf32> to vector<64x32xf32>
    %cst_118 = arith.constant dense<0.000000e+00> : vector<16x32xf32>
    %238 = tpu.matmul %235, %237, %cst_118 {dimension_numbers = #tpu.dot_dimension_numbers<[1], [0], [0], [1], [0, 0, 1, 1], [], []>} : vector<16x64xf32>, vector<64x32xf32>, vector<16x32xf32> -> vector<16x32xf32>
    %c0_119 = arith.constant 0 : index
    %c0_120 = arith.constant 0 : index
    %c0_121 = arith.constant 0 : index
    %239 = vector.load %arg23[%c0_119, %c0_120, %c0_121] : memref<2x1x32xf32, #tpu.memory_space<vmem>>, vector<1x1x32xf32>
    %240 = vector.shape_cast %239 : vector<1x1x32xf32> to vector<1x32xf32>
    %241 = vector.broadcast %240 : vector<1x32xf32> to vector<16x32xf32>
    %242 = arith.addf %238, %241 : vector<16x32xf32>
    %243 = arith.mulf %32, %242 : vector<16x32xf32>
    %244 = arith.addf %202, %243 : vector<16x32xf32>
    %c6 = arith.constant 6 : index
    %c0_122 = arith.constant 0 : index
    %c0_123 = arith.constant 0 : index
    %245 = vector.load %arg8[%c6, %c0_122, %c0_123] : memref<12x16x32xf32, #tpu.memory_space<vmem>>, vector<1x16x32xf32>
    %246 = vector.shape_cast %245 : vector<1x16x32xf32> to vector<16x32xf32>
    %c7 = arith.constant 7 : index
    %c0_124 = arith.constant 0 : index
    %c0_125 = arith.constant 0 : index
    %247 = vector.load %arg8[%c7, %c0_124, %c0_125] : memref<12x16x32xf32, #tpu.memory_space<vmem>>, vector<1x16x32xf32>
    %248 = vector.shape_cast %247 : vector<1x16x32xf32> to vector<16x32xf32>
    %c8 = arith.constant 8 : index
    %c0_126 = arith.constant 0 : index
    %c0_127 = arith.constant 0 : index
    %249 = vector.load %arg8[%c8, %c0_126, %c0_127] : memref<12x16x32xf32, #tpu.memory_space<vmem>>, vector<1x16x32xf32>
    %250 = vector.shape_cast %249 : vector<1x16x32xf32> to vector<16x32xf32>
    %c9 = arith.constant 9 : index
    %c0_128 = arith.constant 0 : index
    %c0_129 = arith.constant 0 : index
    %251 = vector.load %arg8[%c9, %c0_128, %c0_129] : memref<12x16x32xf32, #tpu.memory_space<vmem>>, vector<1x16x32xf32>
    %252 = vector.shape_cast %251 : vector<1x16x32xf32> to vector<16x32xf32>
    %c10 = arith.constant 10 : index
    %c0_130 = arith.constant 0 : index
    %c0_131 = arith.constant 0 : index
    %253 = vector.load %arg8[%c10, %c0_130, %c0_131] : memref<12x16x32xf32, #tpu.memory_space<vmem>>, vector<1x16x32xf32>
    %254 = vector.shape_cast %253 : vector<1x16x32xf32> to vector<16x32xf32>
    %c11 = arith.constant 11 : index
    %c0_132 = arith.constant 0 : index
    %c0_133 = arith.constant 0 : index
    %255 = vector.load %arg8[%c11, %c0_132, %c0_133] : memref<12x16x32xf32, #tpu.memory_space<vmem>>, vector<1x16x32xf32>
    %256 = vector.shape_cast %255 : vector<1x16x32xf32> to vector<16x32xf32>
    %c1_134 = arith.constant 1 : index
    %c0_135 = arith.constant 0 : index
    %c0_136 = arith.constant 0 : index
    %257 = vector.load %arg17[%c1_134, %c0_135, %c0_136] : memref<2x32x32xf32, #tpu.memory_space<vmem>>, vector<1x32x32xf32>
    %258 = vector.shape_cast %257 : vector<1x32x32xf32> to vector<32x32xf32>
    %cst_137 = arith.constant dense<0.000000e+00> : vector<16xf32>
    %259 = vector.multi_reduction <add>, %244, %cst_137 [1] : vector<16x32xf32> to vector<16xf32>
    %260 = vector.shape_cast %259 : vector<16xf32> to vector<16x1xf32>
    %cst_138 = arith.constant 3.200000e+01 : f32
    %261 = vector.broadcast %cst_138 : f32 to vector<16x1xf32>
    %262 = arith.divf %260, %261 : vector<16x1xf32>
    %263 = vector.broadcast %262 : vector<16x1xf32> to vector<16x32xf32>
    %264 = arith.subf %244, %263 : vector<16x32xf32>
    %265 = arith.mulf %264, %264 : vector<16x32xf32>
    %cst_139 = arith.constant dense<0.000000e+00> : vector<16xf32>
    %266 = vector.multi_reduction <add>, %265, %cst_139 [1] : vector<16x32xf32> to vector<16xf32>
    %267 = vector.shape_cast %266 : vector<16xf32> to vector<16x1xf32>
    %cst_140 = arith.constant 3.200000e+01 : f32
    %268 = vector.broadcast %cst_140 : f32 to vector<16x1xf32>
    %269 = arith.divf %267, %268 : vector<16x1xf32>
    %cst_141 = arith.constant 9.99999997E-7 : f32
    %270 = vector.broadcast %cst_141 : f32 to vector<16x1xf32>
    %271 = arith.addf %269, %270 : vector<16x1xf32>
    %272 = math.rsqrt %271 : vector<16x1xf32>
    %273 = vector.broadcast %272 : vector<16x1xf32> to vector<16x32xf32>
    %274 = arith.mulf %264, %273 : vector<16x32xf32>
    %cst_142 = arith.constant 1.000000e+00 : f32
    %275 = vector.broadcast %cst_142 : f32 to vector<16x32xf32>
    %276 = arith.addf %275, %246 : vector<16x32xf32>
    %277 = arith.mulf %274, %276 : vector<16x32xf32>
    %278 = arith.addf %277, %248 : vector<16x32xf32>
    %c1_143 = arith.constant 1 : index
    %c0_144 = arith.constant 0 : index
    %c0_145 = arith.constant 0 : index
    %279 = vector.load %arg9[%c1_143, %c0_144, %c0_145] : memref<2x32x32xf32, #tpu.memory_space<vmem>>, vector<1x32x32xf32>
    %280 = vector.shape_cast %279 : vector<1x32x32xf32> to vector<32x32xf32>
    %cst_146 = arith.constant dense<0.000000e+00> : vector<16x32xf32>
    %281 = tpu.matmul %278, %280, %cst_146 {dimension_numbers = #tpu.dot_dimension_numbers<[1], [0], [0], [1], [0, 0, 1, 1], [], []>} : vector<16x32xf32>, vector<32x32xf32>, vector<16x32xf32> -> vector<16x32xf32>
    %c1_147 = arith.constant 1 : index
    %c0_148 = arith.constant 0 : index
    %c0_149 = arith.constant 0 : index
    %282 = vector.load %arg10[%c1_147, %c0_148, %c0_149] : memref<2x1x32xf32, #tpu.memory_space<vmem>>, vector<1x1x32xf32>
    %283 = vector.shape_cast %282 : vector<1x1x32xf32> to vector<1x32xf32>
    %284 = vector.broadcast %283 : vector<1x32xf32> to vector<16x32xf32>
    %285 = arith.addf %281, %284 : vector<16x32xf32>
    %c1_150 = arith.constant 1 : index
    %c0_151 = arith.constant 0 : index
    %c0_152 = arith.constant 0 : index
    %286 = vector.load %arg15[%c1_150, %c0_151, %c0_152] : memref<2x1x32xf32, #tpu.memory_space<vmem>>, vector<1x1x32xf32>
    %287 = vector.shape_cast %286 : vector<1x1x32xf32> to vector<1x32xf32>
    %288 = arith.mulf %285, %285 : vector<16x32xf32>
    %cst_153 = arith.constant dense<0.000000e+00> : vector<16xf32>
    %289 = vector.multi_reduction <add>, %288, %cst_153 [1] : vector<16x32xf32> to vector<16xf32>
    %290 = vector.shape_cast %289 : vector<16xf32> to vector<16x1xf32>
    %cst_154 = arith.constant 1.000000e-24 : f32
    %291 = vector.broadcast %cst_154 : f32 to vector<16x1xf32>
    %292 = arith.maximumf %290, %291 : vector<16x1xf32>
    %293 = math.rsqrt %292 : vector<16x1xf32>
    %294 = vector.broadcast %293 : vector<16x1xf32> to vector<16x32xf32>
    %295 = arith.mulf %285, %294 : vector<16x32xf32>
    %296 = vector.broadcast %287 : vector<1x32xf32> to vector<16x32xf32>
    %297 = arith.mulf %295, %296 : vector<16x32xf32>
    %cst_155 = arith.constant 5.65685415 : f32
    %298 = vector.broadcast %cst_155 : f32 to vector<16x32xf32>
    %299 = arith.mulf %297, %298 : vector<16x32xf32>
    %cst_156 = arith.constant 0.353553385 : f32
    %300 = vector.broadcast %cst_156 : f32 to vector<16x32xf32>
    %301 = arith.mulf %299, %300 : vector<16x32xf32>
    %c1_157 = arith.constant 1 : index
    %c0_158 = arith.constant 0 : index
    %c0_159 = arith.constant 0 : index
    %302 = vector.load %arg11[%c1_157, %c0_158, %c0_159] : memref<2x32x32xf32, #tpu.memory_space<vmem>>, vector<1x32x32xf32>
    %303 = vector.shape_cast %302 : vector<1x32x32xf32> to vector<32x32xf32>
    %cst_160 = arith.constant dense<0.000000e+00> : vector<16x32xf32>
    %304 = tpu.matmul %278, %303, %cst_160 {dimension_numbers = #tpu.dot_dimension_numbers<[1], [0], [0], [1], [0, 0, 1, 1], [], []>} : vector<16x32xf32>, vector<32x32xf32>, vector<16x32xf32> -> vector<16x32xf32>
    %c1_161 = arith.constant 1 : index
    %c0_162 = arith.constant 0 : index
    %c0_163 = arith.constant 0 : index
    %305 = vector.load %arg12[%c1_161, %c0_162, %c0_163] : memref<2x1x32xf32, #tpu.memory_space<vmem>>, vector<1x1x32xf32>
    %306 = vector.shape_cast %305 : vector<1x1x32xf32> to vector<1x32xf32>
    %307 = vector.broadcast %306 : vector<1x32xf32> to vector<16x32xf32>
    %308 = arith.addf %304, %307 : vector<16x32xf32>
    %c1_164 = arith.constant 1 : index
    %c0_165 = arith.constant 0 : index
    %c0_166 = arith.constant 0 : index
    %309 = vector.load %arg16[%c1_164, %c0_165, %c0_166] : memref<2x1x32xf32, #tpu.memory_space<vmem>>, vector<1x1x32xf32>
    %310 = vector.shape_cast %309 : vector<1x1x32xf32> to vector<1x32xf32>
    %311 = arith.mulf %308, %308 : vector<16x32xf32>
    %cst_167 = arith.constant dense<0.000000e+00> : vector<16xf32>
    %312 = vector.multi_reduction <add>, %311, %cst_167 [1] : vector<16x32xf32> to vector<16xf32>
    %313 = vector.shape_cast %312 : vector<16xf32> to vector<16x1xf32>
    %cst_168 = arith.constant 1.000000e-24 : f32
    %314 = vector.broadcast %cst_168 : f32 to vector<16x1xf32>
    %315 = arith.maximumf %313, %314 : vector<16x1xf32>
    %316 = math.rsqrt %315 : vector<16x1xf32>
    %317 = vector.broadcast %316 : vector<16x1xf32> to vector<16x32xf32>
    %318 = arith.mulf %308, %317 : vector<16x32xf32>
    %319 = vector.broadcast %310 : vector<1x32xf32> to vector<16x32xf32>
    %320 = arith.mulf %318, %319 : vector<16x32xf32>
    %cst_169 = arith.constant 5.65685415 : f32
    %321 = vector.broadcast %cst_169 : f32 to vector<16x32xf32>
    %322 = arith.mulf %320, %321 : vector<16x32xf32>
    %c1_170 = arith.constant 1 : index
    %c0_171 = arith.constant 0 : index
    %c0_172 = arith.constant 0 : index
    %323 = vector.load %arg13[%c1_170, %c0_171, %c0_172] : memref<2x32x32xf32, #tpu.memory_space<vmem>>, vector<1x32x32xf32>
    %324 = vector.shape_cast %323 : vector<1x32x32xf32> to vector<32x32xf32>
    %cst_173 = arith.constant dense<0.000000e+00> : vector<16x32xf32>
    %325 = tpu.matmul %278, %324, %cst_173 {dimension_numbers = #tpu.dot_dimension_numbers<[1], [0], [0], [1], [0, 0, 1, 1], [], []>} : vector<16x32xf32>, vector<32x32xf32>, vector<16x32xf32> -> vector<16x32xf32>
    %c1_174 = arith.constant 1 : index
    %c0_175 = arith.constant 0 : index
    %c0_176 = arith.constant 0 : index
    %326 = vector.load %arg14[%c1_174, %c0_175, %c0_176] : memref<2x1x32xf32, #tpu.memory_space<vmem>>, vector<1x1x32xf32>
    %327 = vector.shape_cast %326 : vector<1x1x32xf32> to vector<1x32xf32>
    %328 = vector.broadcast %327 : vector<1x32xf32> to vector<16x32xf32>
    %329 = arith.addf %325, %328 : vector<16x32xf32>
    %cst_177 = arith.constant 0.000000e+00 : f32
    %330 = vector.broadcast %cst_177 : f32 to vector<16x32xf32>
    %c1_178 = arith.constant 1 : index
    %c0_179 = arith.constant 0 : index
    %c0_180 = arith.constant 0 : index
    %331 = vector.load %arg18[%c1_178, %c0_179, %c0_180] : memref<2x1x32xf32, #tpu.memory_space<vmem>>, vector<1x1x32xf32>
    %332 = vector.shape_cast %331 : vector<1x1x32xf32> to vector<1x32xf32>
    %333 = vector.broadcast %332 : vector<1x32xf32> to vector<16x32xf32>
    %334 = arith.addf %330, %333 : vector<16x32xf32>
    %335 = vector.extract_strided_slice %301 {offsets = [0, 0], sizes = [16, 8], strides = [1, 1]} : vector<16x32xf32> to vector<16x8xf32>
    %336 = vector.extract_strided_slice %322 {offsets = [0, 0], sizes = [16, 8], strides = [1, 1]} : vector<16x32xf32> to vector<16x8xf32>
    %337 = vector.extract_strided_slice %329 {offsets = [0, 0], sizes = [16, 8], strides = [1, 1]} : vector<16x32xf32> to vector<16x8xf32>
    %cst_181 = arith.constant dense<0.000000e+00> : vector<16x16xf32>
    %338 = tpu.matmul %335, %336, %cst_181 {dimension_numbers = #tpu.dot_dimension_numbers<[1], [1], [0], [0], [0, 0, 1, 0], [], []>} : vector<16x8xf32>, vector<16x8xf32>, vector<16x16xf32> -> vector<16x16xf32>
    %339 = arith.addf %338, %20 : vector<16x16xf32>
    %cst_182 = arith.constant dense<0xFF800000> : vector<16xf32>
    %340 = vector.multi_reduction <maximumf>, %339, %cst_182 [1] : vector<16x16xf32> to vector<16xf32>
    %341 = vector.shape_cast %340 : vector<16xf32> to vector<16x1xf32>
    %342 = vector.broadcast %341 : vector<16x1xf32> to vector<16x16xf32>
    %343 = arith.subf %339, %342 : vector<16x16xf32>
    %344 = math.exp %343 : vector<16x16xf32>
    %cst_183 = arith.constant dense<0.000000e+00> : vector<16xf32>
    %345 = vector.multi_reduction <add>, %344, %cst_183 [1] : vector<16x16xf32> to vector<16xf32>
    %346 = vector.shape_cast %345 : vector<16xf32> to vector<16x1xf32>
    %347 = tpu.reciprocal %346 {approx = true} : vector<16x1xf32> -> vector<16x1xf32>
    %348 = vector.broadcast %347 : vector<16x1xf32> to vector<16x16xf32>
    %349 = arith.mulf %344, %348 : vector<16x16xf32>
    %cst_184 = arith.constant dense<0.000000e+00> : vector<16x8xf32>
    %350 = tpu.matmul %349, %337, %cst_184 {dimension_numbers = #tpu.dot_dimension_numbers<[1], [0], [0], [1], [0, 0, 1, 1], [], []>} : vector<16x16xf32>, vector<16x8xf32>, vector<16x8xf32> -> vector<16x8xf32>
    %351 = vector.extract_strided_slice %258 {offsets = [0, 0], sizes = [8, 32], strides = [1, 1]} : vector<32x32xf32> to vector<8x32xf32>
    %cst_185 = arith.constant dense<0.000000e+00> : vector<16x32xf32>
    %352 = tpu.matmul %350, %351, %cst_185 {dimension_numbers = #tpu.dot_dimension_numbers<[1], [0], [0], [1], [0, 0, 1, 1], [], []>} : vector<16x8xf32>, vector<8x32xf32>, vector<16x32xf32> -> vector<16x32xf32>
    %353 = arith.addf %334, %352 : vector<16x32xf32>
    %354 = vector.extract_strided_slice %301 {offsets = [0, 8], sizes = [16, 8], strides = [1, 1]} : vector<16x32xf32> to vector<16x8xf32>
    %355 = vector.extract_strided_slice %322 {offsets = [0, 8], sizes = [16, 8], strides = [1, 1]} : vector<16x32xf32> to vector<16x8xf32>
    %356 = vector.extract_strided_slice %329 {offsets = [0, 8], sizes = [16, 8], strides = [1, 1]} : vector<16x32xf32> to vector<16x8xf32>
    %cst_186 = arith.constant dense<0.000000e+00> : vector<16x16xf32>
    %357 = tpu.matmul %354, %355, %cst_186 {dimension_numbers = #tpu.dot_dimension_numbers<[1], [1], [0], [0], [0, 0, 1, 0], [], []>} : vector<16x8xf32>, vector<16x8xf32>, vector<16x16xf32> -> vector<16x16xf32>
    %358 = arith.addf %357, %20 : vector<16x16xf32>
    %cst_187 = arith.constant dense<0xFF800000> : vector<16xf32>
    %359 = vector.multi_reduction <maximumf>, %358, %cst_187 [1] : vector<16x16xf32> to vector<16xf32>
    %360 = vector.shape_cast %359 : vector<16xf32> to vector<16x1xf32>
    %361 = vector.broadcast %360 : vector<16x1xf32> to vector<16x16xf32>
    %362 = arith.subf %358, %361 : vector<16x16xf32>
    %363 = math.exp %362 : vector<16x16xf32>
    %cst_188 = arith.constant dense<0.000000e+00> : vector<16xf32>
    %364 = vector.multi_reduction <add>, %363, %cst_188 [1] : vector<16x16xf32> to vector<16xf32>
    %365 = vector.shape_cast %364 : vector<16xf32> to vector<16x1xf32>
    %366 = tpu.reciprocal %365 {approx = true} : vector<16x1xf32> -> vector<16x1xf32>
    %367 = vector.broadcast %366 : vector<16x1xf32> to vector<16x16xf32>
    %368 = arith.mulf %363, %367 : vector<16x16xf32>
    %cst_189 = arith.constant dense<0.000000e+00> : vector<16x8xf32>
    %369 = tpu.matmul %368, %356, %cst_189 {dimension_numbers = #tpu.dot_dimension_numbers<[1], [0], [0], [1], [0, 0, 1, 1], [], []>} : vector<16x16xf32>, vector<16x8xf32>, vector<16x8xf32> -> vector<16x8xf32>
    %370 = vector.extract_strided_slice %258 {offsets = [8, 0], sizes = [8, 32], strides = [1, 1]} : vector<32x32xf32> to vector<8x32xf32>
    %cst_190 = arith.constant dense<0.000000e+00> : vector<16x32xf32>
    %371 = tpu.matmul %369, %370, %cst_190 {dimension_numbers = #tpu.dot_dimension_numbers<[1], [0], [0], [1], [0, 0, 1, 1], [], []>} : vector<16x8xf32>, vector<8x32xf32>, vector<16x32xf32> -> vector<16x32xf32>
    %372 = arith.addf %353, %371 : vector<16x32xf32>
    %373 = vector.extract_strided_slice %301 {offsets = [0, 16], sizes = [16, 8], strides = [1, 1]} : vector<16x32xf32> to vector<16x8xf32>
    %374 = vector.extract_strided_slice %322 {offsets = [0, 16], sizes = [16, 8], strides = [1, 1]} : vector<16x32xf32> to vector<16x8xf32>
    %375 = vector.extract_strided_slice %329 {offsets = [0, 16], sizes = [16, 8], strides = [1, 1]} : vector<16x32xf32> to vector<16x8xf32>
    %cst_191 = arith.constant dense<0.000000e+00> : vector<16x16xf32>
    %376 = tpu.matmul %373, %374, %cst_191 {dimension_numbers = #tpu.dot_dimension_numbers<[1], [1], [0], [0], [0, 0, 1, 0], [], []>} : vector<16x8xf32>, vector<16x8xf32>, vector<16x16xf32> -> vector<16x16xf32>
    %377 = arith.addf %376, %20 : vector<16x16xf32>
    %cst_192 = arith.constant dense<0xFF800000> : vector<16xf32>
    %378 = vector.multi_reduction <maximumf>, %377, %cst_192 [1] : vector<16x16xf32> to vector<16xf32>
    %379 = vector.shape_cast %378 : vector<16xf32> to vector<16x1xf32>
    %380 = vector.broadcast %379 : vector<16x1xf32> to vector<16x16xf32>
    %381 = arith.subf %377, %380 : vector<16x16xf32>
    %382 = math.exp %381 : vector<16x16xf32>
    %cst_193 = arith.constant dense<0.000000e+00> : vector<16xf32>
    %383 = vector.multi_reduction <add>, %382, %cst_193 [1] : vector<16x16xf32> to vector<16xf32>
    %384 = vector.shape_cast %383 : vector<16xf32> to vector<16x1xf32>
    %385 = tpu.reciprocal %384 {approx = true} : vector<16x1xf32> -> vector<16x1xf32>
    %386 = vector.broadcast %385 : vector<16x1xf32> to vector<16x16xf32>
    %387 = arith.mulf %382, %386 : vector<16x16xf32>
    %cst_194 = arith.constant dense<0.000000e+00> : vector<16x8xf32>
    %388 = tpu.matmul %387, %375, %cst_194 {dimension_numbers = #tpu.dot_dimension_numbers<[1], [0], [0], [1], [0, 0, 1, 1], [], []>} : vector<16x16xf32>, vector<16x8xf32>, vector<16x8xf32> -> vector<16x8xf32>
    %389 = vector.extract_strided_slice %258 {offsets = [16, 0], sizes = [8, 32], strides = [1, 1]} : vector<32x32xf32> to vector<8x32xf32>
    %cst_195 = arith.constant dense<0.000000e+00> : vector<16x32xf32>
    %390 = tpu.matmul %388, %389, %cst_195 {dimension_numbers = #tpu.dot_dimension_numbers<[1], [0], [0], [1], [0, 0, 1, 1], [], []>} : vector<16x8xf32>, vector<8x32xf32>, vector<16x32xf32> -> vector<16x32xf32>
    %391 = arith.addf %372, %390 : vector<16x32xf32>
    %392 = vector.extract_strided_slice %301 {offsets = [0, 24], sizes = [16, 8], strides = [1, 1]} : vector<16x32xf32> to vector<16x8xf32>
    %393 = vector.extract_strided_slice %322 {offsets = [0, 24], sizes = [16, 8], strides = [1, 1]} : vector<16x32xf32> to vector<16x8xf32>
    %394 = vector.extract_strided_slice %329 {offsets = [0, 24], sizes = [16, 8], strides = [1, 1]} : vector<16x32xf32> to vector<16x8xf32>
    %cst_196 = arith.constant dense<0.000000e+00> : vector<16x16xf32>
    %395 = tpu.matmul %392, %393, %cst_196 {dimension_numbers = #tpu.dot_dimension_numbers<[1], [1], [0], [0], [0, 0, 1, 0], [], []>} : vector<16x8xf32>, vector<16x8xf32>, vector<16x16xf32> -> vector<16x16xf32>
    %396 = arith.addf %395, %20 : vector<16x16xf32>
    %cst_197 = arith.constant dense<0xFF800000> : vector<16xf32>
    %397 = vector.multi_reduction <maximumf>, %396, %cst_197 [1] : vector<16x16xf32> to vector<16xf32>
    %398 = vector.shape_cast %397 : vector<16xf32> to vector<16x1xf32>
    %399 = vector.broadcast %398 : vector<16x1xf32> to vector<16x16xf32>
    %400 = arith.subf %396, %399 : vector<16x16xf32>
    %401 = math.exp %400 : vector<16x16xf32>
    %cst_198 = arith.constant dense<0.000000e+00> : vector<16xf32>
    %402 = vector.multi_reduction <add>, %401, %cst_198 [1] : vector<16x16xf32> to vector<16xf32>
    %403 = vector.shape_cast %402 : vector<16xf32> to vector<16x1xf32>
    %404 = tpu.reciprocal %403 {approx = true} : vector<16x1xf32> -> vector<16x1xf32>
    %405 = vector.broadcast %404 : vector<16x1xf32> to vector<16x16xf32>
    %406 = arith.mulf %401, %405 : vector<16x16xf32>
    %cst_199 = arith.constant dense<0.000000e+00> : vector<16x8xf32>
    %407 = tpu.matmul %406, %394, %cst_199 {dimension_numbers = #tpu.dot_dimension_numbers<[1], [0], [0], [1], [0, 0, 1, 1], [], []>} : vector<16x16xf32>, vector<16x8xf32>, vector<16x8xf32> -> vector<16x8xf32>
    %408 = vector.extract_strided_slice %258 {offsets = [24, 0], sizes = [8, 32], strides = [1, 1]} : vector<32x32xf32> to vector<8x32xf32>
    %cst_200 = arith.constant dense<0.000000e+00> : vector<16x32xf32>
    %409 = tpu.matmul %407, %408, %cst_200 {dimension_numbers = #tpu.dot_dimension_numbers<[1], [0], [0], [1], [0, 0, 1, 1], [], []>} : vector<16x8xf32>, vector<8x32xf32>, vector<16x32xf32> -> vector<16x32xf32>
    %410 = arith.addf %391, %409 : vector<16x32xf32>
    %c1_201 = arith.constant 1 : index
    %c0_202 = arith.constant 0 : index
    %c0_203 = arith.constant 0 : index
    %411 = vector.load %arg19[%c1_201, %c0_202, %c0_203] : memref<2x1x32xf32, #tpu.memory_space<vmem>>, vector<1x1x32xf32>
    %412 = vector.shape_cast %411 : vector<1x1x32xf32> to vector<1x32xf32>
    %413 = arith.mulf %410, %410 : vector<16x32xf32>
    %cst_204 = arith.constant dense<0.000000e+00> : vector<16xf32>
    %414 = vector.multi_reduction <add>, %413, %cst_204 [1] : vector<16x32xf32> to vector<16xf32>
    %415 = vector.shape_cast %414 : vector<16xf32> to vector<16x1xf32>
    %cst_205 = arith.constant 1.000000e-24 : f32
    %416 = vector.broadcast %cst_205 : f32 to vector<16x1xf32>
    %417 = arith.maximumf %415, %416 : vector<16x1xf32>
    %418 = math.rsqrt %417 : vector<16x1xf32>
    %419 = vector.broadcast %418 : vector<16x1xf32> to vector<16x32xf32>
    %420 = arith.mulf %410, %419 : vector<16x32xf32>
    %421 = vector.broadcast %412 : vector<1x32xf32> to vector<16x32xf32>
    %422 = arith.mulf %420, %421 : vector<16x32xf32>
    %cst_206 = arith.constant 5.65685415 : f32
    %423 = vector.broadcast %cst_206 : f32 to vector<16x32xf32>
    %424 = arith.mulf %422, %423 : vector<16x32xf32>
    %425 = arith.mulf %250, %424 : vector<16x32xf32>
    %426 = arith.addf %244, %425 : vector<16x32xf32>
    %cst_207 = arith.constant dense<0.000000e+00> : vector<16xf32>
    %427 = vector.multi_reduction <add>, %426, %cst_207 [1] : vector<16x32xf32> to vector<16xf32>
    %428 = vector.shape_cast %427 : vector<16xf32> to vector<16x1xf32>
    %cst_208 = arith.constant 3.200000e+01 : f32
    %429 = vector.broadcast %cst_208 : f32 to vector<16x1xf32>
    %430 = arith.divf %428, %429 : vector<16x1xf32>
    %431 = vector.broadcast %430 : vector<16x1xf32> to vector<16x32xf32>
    %432 = arith.subf %426, %431 : vector<16x32xf32>
    %433 = arith.mulf %432, %432 : vector<16x32xf32>
    %cst_209 = arith.constant dense<0.000000e+00> : vector<16xf32>
    %434 = vector.multi_reduction <add>, %433, %cst_209 [1] : vector<16x32xf32> to vector<16xf32>
    %435 = vector.shape_cast %434 : vector<16xf32> to vector<16x1xf32>
    %cst_210 = arith.constant 3.200000e+01 : f32
    %436 = vector.broadcast %cst_210 : f32 to vector<16x1xf32>
    %437 = arith.divf %435, %436 : vector<16x1xf32>
    %cst_211 = arith.constant 9.99999997E-7 : f32
    %438 = vector.broadcast %cst_211 : f32 to vector<16x1xf32>
    %439 = arith.addf %437, %438 : vector<16x1xf32>
    %440 = math.rsqrt %439 : vector<16x1xf32>
    %441 = vector.broadcast %440 : vector<16x1xf32> to vector<16x32xf32>
    %442 = arith.mulf %432, %441 : vector<16x32xf32>
    %cst_212 = arith.constant 1.000000e+00 : f32
    %443 = vector.broadcast %cst_212 : f32 to vector<16x32xf32>
    %444 = arith.addf %443, %252 : vector<16x32xf32>
    %445 = arith.mulf %442, %444 : vector<16x32xf32>
    %446 = arith.addf %445, %254 : vector<16x32xf32>
    %c1_213 = arith.constant 1 : index
    %c0_214 = arith.constant 0 : index
    %c0_215 = arith.constant 0 : index
    %447 = vector.load %arg20[%c1_213, %c0_214, %c0_215] : memref<2x32x64xf32, #tpu.memory_space<vmem>>, vector<1x32x64xf32>
    %448 = vector.shape_cast %447 : vector<1x32x64xf32> to vector<32x64xf32>
    %cst_216 = arith.constant dense<0.000000e+00> : vector<16x64xf32>
    %449 = tpu.matmul %446, %448, %cst_216 {dimension_numbers = #tpu.dot_dimension_numbers<[1], [0], [0], [1], [0, 0, 1, 1], [], []>} : vector<16x32xf32>, vector<32x64xf32>, vector<16x64xf32> -> vector<16x64xf32>
    %c1_217 = arith.constant 1 : index
    %c0_218 = arith.constant 0 : index
    %c0_219 = arith.constant 0 : index
    %450 = vector.load %arg21[%c1_217, %c0_218, %c0_219] : memref<2x1x64xf32, #tpu.memory_space<vmem>>, vector<1x1x64xf32>
    %451 = vector.shape_cast %450 : vector<1x1x64xf32> to vector<1x64xf32>
    %452 = vector.broadcast %451 : vector<1x64xf32> to vector<16x64xf32>
    %453 = arith.addf %449, %452 : vector<16x64xf32>
    %454 = arith.negf %453 : vector<16x64xf32>
    %455 = math.exp %454 : vector<16x64xf32>
    %cst_220 = arith.constant 1.000000e+00 : f32
    %456 = vector.broadcast %cst_220 : f32 to vector<16x64xf32>
    %457 = arith.addf %456, %455 : vector<16x64xf32>
    %458 = arith.divf %456, %457 : vector<16x64xf32>
    %459 = arith.mulf %453, %458 : vector<16x64xf32>
    %c1_221 = arith.constant 1 : index
    %c0_222 = arith.constant 0 : index
    %c0_223 = arith.constant 0 : index
    %460 = vector.load %arg22[%c1_221, %c0_222, %c0_223] : memref<2x64x32xf32, #tpu.memory_space<vmem>>, vector<1x64x32xf32>
    %461 = vector.shape_cast %460 : vector<1x64x32xf32> to vector<64x32xf32>
    %cst_224 = arith.constant dense<0.000000e+00> : vector<16x32xf32>
    %462 = tpu.matmul %459, %461, %cst_224 {dimension_numbers = #tpu.dot_dimension_numbers<[1], [0], [0], [1], [0, 0, 1, 1], [], []>} : vector<16x64xf32>, vector<64x32xf32>, vector<16x32xf32> -> vector<16x32xf32>
    %c1_225 = arith.constant 1 : index
    %c0_226 = arith.constant 0 : index
    %c0_227 = arith.constant 0 : index
    %463 = vector.load %arg23[%c1_225, %c0_226, %c0_227] : memref<2x1x32xf32, #tpu.memory_space<vmem>>, vector<1x1x32xf32>
    %464 = vector.shape_cast %463 : vector<1x1x32xf32> to vector<1x32xf32>
    %465 = vector.broadcast %464 : vector<1x32xf32> to vector<16x32xf32>
    %466 = arith.addf %462, %465 : vector<16x32xf32>
    %467 = arith.mulf %256, %466 : vector<16x32xf32>
    %468 = arith.addf %426, %467 : vector<16x32xf32>
    %cst_228 = arith.constant dense<0.000000e+00> : vector<16xf32>
    %469 = vector.multi_reduction <add>, %468, %cst_228 [1] : vector<16x32xf32> to vector<16xf32>
    %470 = vector.shape_cast %469 : vector<16xf32> to vector<16x1xf32>
    %cst_229 = arith.constant 3.200000e+01 : f32
    %471 = vector.broadcast %cst_229 : f32 to vector<16x1xf32>
    %472 = arith.divf %470, %471 : vector<16x1xf32>
    %473 = vector.broadcast %472 : vector<16x1xf32> to vector<16x32xf32>
    %474 = arith.subf %468, %473 : vector<16x32xf32>
    %475 = arith.mulf %474, %474 : vector<16x32xf32>
    %cst_230 = arith.constant dense<0.000000e+00> : vector<16xf32>
    %476 = vector.multi_reduction <add>, %475, %cst_230 [1] : vector<16x32xf32> to vector<16xf32>
    %477 = vector.shape_cast %476 : vector<16xf32> to vector<16x1xf32>
    %cst_231 = arith.constant 3.200000e+01 : f32
    %478 = vector.broadcast %cst_231 : f32 to vector<16x1xf32>
    %479 = arith.divf %477, %478 : vector<16x1xf32>
    %cst_232 = arith.constant 9.99999997E-7 : f32
    %480 = vector.broadcast %cst_232 : f32 to vector<16x1xf32>
    %481 = arith.addf %479, %480 : vector<16x1xf32>
    %482 = math.rsqrt %481 : vector<16x1xf32>
    %483 = vector.broadcast %482 : vector<16x1xf32> to vector<16x32xf32>
    %484 = arith.mulf %474, %483 : vector<16x32xf32>
    %c0_233 = arith.constant 0 : index
    %c0_234 = arith.constant 0 : index
    %485 = vector.load %arg24[%c0_233, %c0_234] : memref<16x32xf32, #tpu.memory_space<vmem>>, vector<16x32xf32>
    %cst_235 = arith.constant 1.000000e+00 : f32
    %486 = vector.broadcast %cst_235 : f32 to vector<16x32xf32>
    %487 = arith.addf %486, %485 : vector<16x32xf32>
    %488 = arith.mulf %484, %487 : vector<16x32xf32>
    %c0_236 = arith.constant 0 : index
    %c0_237 = arith.constant 0 : index
    %489 = vector.load %arg25[%c0_236, %c0_237] : memref<16x32xf32, #tpu.memory_space<vmem>>, vector<16x32xf32>
    %490 = arith.addf %488, %489 : vector<16x32xf32>
    %c0_238 = arith.constant 0 : index
    %c0_239 = arith.constant 0 : index
    %491 = vector.load %arg26[%c0_238, %c0_239] : memref<32x4xf32, #tpu.memory_space<vmem>>, vector<32x4xf32>
    %cst_240 = arith.constant dense<0.000000e+00> : vector<16x4xf32>
    %492 = tpu.matmul %490, %491, %cst_240 {dimension_numbers = #tpu.dot_dimension_numbers<[1], [0], [0], [1], [0, 0, 1, 1], [], []>} : vector<16x32xf32>, vector<32x4xf32>, vector<16x4xf32> -> vector<16x4xf32>
    %c0_241 = arith.constant 0 : index
    %c0_242 = arith.constant 0 : index
    %493 = vector.load %arg27[%c0_241, %c0_242] : memref<32x4xf32, #tpu.memory_space<vmem>>, vector<32x4xf32>
    %cst_243 = arith.constant dense<0.000000e+00> : vector<16x4xf32>
    %494 = tpu.matmul %5, %493, %cst_243 {dimension_numbers = #tpu.dot_dimension_numbers<[1], [0], [0], [1], [0, 0, 1, 1], [], []>} : vector<16x32xf32>, vector<32x4xf32>, vector<16x4xf32> -> vector<16x4xf32>
    %495 = arith.addf %492, %494 : vector<16x4xf32>
    %c0_244 = arith.constant 0 : index
    %c0_245 = arith.constant 0 : index
    %496 = vector.load %arg28[%c0_244, %c0_245] : memref<1x4xf32, #tpu.memory_space<vmem>>, vector<1x4xf32>
    %497 = vector.broadcast %496 : vector<1x4xf32> to vector<16x4xf32>
    %498 = arith.addf %495, %497 : vector<16x4xf32>
    %c0_246 = arith.constant 0 : index
    %c0_247 = arith.constant 0 : index
    %499 = vector.load %arg29[%c0_246, %c0_247] : memref<16x4xf32, #tpu.memory_space<vmem>>, vector<16x4xf32>
    tpu.vector_store %arg29[%c0_246, %c0_247], %498 {strides = array<i32>} : memref<16x4xf32, #tpu.memory_space<vmem>>, vector<16x4xf32>,
    return
  }
  func.func @transform_0(%arg0: i32) -> (i32, i32) {
    %c0_i32 = arith.constant 0 : i32
    %c0_i32_0 = arith.constant 0 : i32
    %c0_i32_1 = arith.constant 0 : i32
    return %c0_i32, %c0_i32_0 : i32, i32
  }
  func.func @transform_1(%arg0: i32) -> (i32, i32) {
    %c0_i32 = arith.constant 0 : i32
    %c0_i32_0 = arith.constant 0 : i32
    %c0_i32_1 = arith.constant 0 : i32
    return %c0_i32, %c0_i32_0 : i32, i32
  }
  func.func @transform_2(%arg0: i32) -> (i32, i32) {
    %c0_i32 = arith.constant 0 : i32
    %c0_i32_0 = arith.constant 0 : i32
    %c0_i32_1 = arith.constant 0 : i32
    return %c0_i32, %c0_i32_0 : i32, i32
  }
  func.func @transform_3(%arg0: i32) -> (i32, i32) {
    %c0_i32 = arith.constant 0 : i32
    %c0_i32_0 = arith.constant 0 : i32
    %c0_i32_1 = arith.constant 0 : i32
    return %c0_i32, %c0_i32_0 : i32, i32
  }
  func.func @transform_4(%arg0: i32) -> (i32, i32) {
    %c0_i32 = arith.constant 0 : i32
    %c0_i32_0 = arith.constant 0 : i32
    %c0_i32_1 = arith.constant 0 : i32
    return %c0_i32, %c0_i32_0 : i32, i32
  }
  func.func @transform_5(%arg0: i32) -> (i32, i32) {
    %c0_i32 = arith.constant 0 : i32
    %c0_i32_0 = arith.constant 0 : i32
    %c0_i32_1 = arith.constant 0 : i32
    return %c0_i32, %c0_i32_0 : i32, i32
  }
  func.func @transform_6(%arg0: i32) -> (i32, i32) {
    %c0_i32 = arith.constant 0 : i32
    %c0_i32_0 = arith.constant 0 : i32
    %c0_i32_1 = arith.constant 0 : i32
    return %c0_i32, %c0_i32_0 : i32, i32
  }
  func.func @transform_7(%arg0: i32) -> (i32, i32, i32) {
    %c0_i32 = arith.constant 0 : i32
    %c0_i32_0 = arith.constant 0 : i32
    %c0_i32_1 = arith.constant 0 : i32
    %c0_i32_2 = arith.constant 0 : i32
    return %c0_i32, %c0_i32_0, %c0_i32_1 : i32, i32, i32
  }
  func.func @transform_8(%arg0: i32) -> (i32, i32, i32) {
    %c0_i32 = arith.constant 0 : i32
    %c0_i32_0 = arith.constant 0 : i32
    %c0_i32_1 = arith.constant 0 : i32
    %c0_i32_2 = arith.constant 0 : i32
    return %c0_i32, %c0_i32_0, %c0_i32_1 : i32, i32, i32
  }
  func.func @transform_9(%arg0: i32) -> (i32, i32, i32) {
    %c0_i32 = arith.constant 0 : i32
    %c0_i32_0 = arith.constant 0 : i32
    %c0_i32_1 = arith.constant 0 : i32
    %c0_i32_2 = arith.constant 0 : i32
    return %c0_i32, %c0_i32_0, %c0_i32_1 : i32, i32, i32
  }
  func.func @transform_10(%arg0: i32) -> (i32, i32, i32) {
    %c0_i32 = arith.constant 0 : i32
    %c0_i32_0 = arith.constant 0 : i32
    %c0_i32_1 = arith.constant 0 : i32
    %c0_i32_2 = arith.constant 0 : i32
    return %c0_i32, %c0_i32_0, %c0_i32_1 : i32, i32, i32
  }
  func.func @transform_11(%arg0: i32) -> (i32, i32, i32) {
    %c0_i32 = arith.constant 0 : i32
    %c0_i32_0 = arith.constant 0 : i32
    %c0_i32_1 = arith.constant 0 : i32
    %c0_i32_2 = arith.constant 0 : i32
    return %c0_i32, %c0_i32_0, %c0_i32_1 : i32, i32, i32
  }
  func.func @transform_12(%arg0: i32) -> (i32, i32, i32) {
    %c0_i32 = arith.constant 0 : i32
    %c0_i32_0 = arith.constant 0 : i32
    %c0_i32_1 = arith.constant 0 : i32
    %c0_i32_2 = arith.constant 0 : i32
    return %c0_i32, %c0_i32_0, %c0_i32_1 : i32, i32, i32
  }
  func.func @transform_13(%arg0: i32) -> (i32, i32, i32) {
    %c0_i32 = arith.constant 0 : i32
    %c0_i32_0 = arith.constant 0 : i32
    %c0_i32_1 = arith.constant 0 : i32
    %c0_i32_2 = arith.constant 0 : i32
    return %c0_i32, %c0_i32_0, %c0_i32_1 : i32, i32, i32
  }
  func.func @transform_14(%arg0: i32) -> (i32, i32, i32) {
    %c0_i32 = arith.constant 0 : i32
    %c0_i32_0 = arith.constant 0 : i32
    %c0_i32_1 = arith.constant 0 : i32
    %c0_i32_2 = arith.constant 0 : i32
    return %c0_i32, %c0_i32_0, %c0_i32_1 : i32, i32, i32
  }
  func.func @transform_15(%arg0: i32) -> (i32, i32, i32) {
    %c0_i32 = arith.constant 0 : i32
    %c0_i32_0 = arith.constant 0 : i32
    %c0_i32_1 = arith.constant 0 : i32
    %c0_i32_2 = arith.constant 0 : i32
    return %c0_i32, %c0_i32_0, %c0_i32_1 : i32, i32, i32
  }
  func.func @transform_16(%arg0: i32) -> (i32, i32, i32) {
    %c0_i32 = arith.constant 0 : i32
    %c0_i32_0 = arith.constant 0 : i32
    %c0_i32_1 = arith.constant 0 : i32
    %c0_i32_2 = arith.constant 0 : i32
    return %c0_i32, %c0_i32_0, %c0_i32_1 : i32, i32, i32
  }
  func.func @transform_17(%arg0: i32) -> (i32, i32, i32) {
    %c0_i32 = arith.constant 0 : i32
    %c0_i32_0 = arith.constant 0 : i32
    %c0_i32_1 = arith.constant 0 : i32
    %c0_i32_2 = arith.constant 0 : i32
    return %c0_i32, %c0_i32_0, %c0_i32_1 : i32, i32, i32
  }
  func.func @transform_18(%arg0: i32) -> (i32, i32, i32) {
    %c0_i32 = arith.constant 0 : i32
    %c0_i32_0 = arith.constant 0 : i32
    %c0_i32_1 = arith.constant 0 : i32
    %c0_i32_2 = arith.constant 0 : i32
    return %c0_i32, %c0_i32_0, %c0_i32_1 : i32, i32, i32
  }
  func.func @transform_19(%arg0: i32) -> (i32, i32, i32) {
    %c0_i32 = arith.constant 0 : i32
    %c0_i32_0 = arith.constant 0 : i32
    %c0_i32_1 = arith.constant 0 : i32
    %c0_i32_2 = arith.constant 0 : i32
    return %c0_i32, %c0_i32_0, %c0_i32_1 : i32, i32, i32
  }
  func.func @transform_20(%arg0: i32) -> (i32, i32, i32) {
    %c0_i32 = arith.constant 0 : i32
    %c0_i32_0 = arith.constant 0 : i32
    %c0_i32_1 = arith.constant 0 : i32
    %c0_i32_2 = arith.constant 0 : i32
    return %c0_i32, %c0_i32_0, %c0_i32_1 : i32, i32, i32
  }
  func.func @transform_21(%arg0: i32) -> (i32, i32, i32) {
    %c0_i32 = arith.constant 0 : i32
    %c0_i32_0 = arith.constant 0 : i32
    %c0_i32_1 = arith.constant 0 : i32
    %c0_i32_2 = arith.constant 0 : i32
    return %c0_i32, %c0_i32_0, %c0_i32_1 : i32, i32, i32
  }
  func.func @transform_22(%arg0: i32) -> (i32, i32, i32) {
    %c0_i32 = arith.constant 0 : i32
    %c0_i32_0 = arith.constant 0 : i32
    %c0_i32_1 = arith.constant 0 : i32
    %c0_i32_2 = arith.constant 0 : i32
    return %c0_i32, %c0_i32_0, %c0_i32_1 : i32, i32, i32
  }
  func.func @transform_23(%arg0: i32) -> (i32, i32) {
    %c0_i32 = arith.constant 0 : i32
    %c0_i32_0 = arith.constant 0 : i32
    %c0_i32_1 = arith.constant 0 : i32
    return %c0_i32, %c0_i32_0 : i32, i32
  }
  func.func @transform_24(%arg0: i32) -> (i32, i32) {
    %c0_i32 = arith.constant 0 : i32
    %c0_i32_0 = arith.constant 0 : i32
    %c0_i32_1 = arith.constant 0 : i32
    return %c0_i32, %c0_i32_0 : i32, i32
  }
  func.func @transform_25(%arg0: i32) -> (i32, i32) {
    %c0_i32 = arith.constant 0 : i32
    %c0_i32_0 = arith.constant 0 : i32
    %c0_i32_1 = arith.constant 0 : i32
    return %c0_i32, %c0_i32_0 : i32, i32
  }
  func.func @transform_26(%arg0: i32) -> (i32, i32) {
    %c0_i32 = arith.constant 0 : i32
    %c0_i32_0 = arith.constant 0 : i32
    %c0_i32_1 = arith.constant 0 : i32
    return %c0_i32, %c0_i32_0 : i32, i32
  }
  func.func @transform_27(%arg0: i32) -> (i32, i32) {
    %c0_i32 = arith.constant 0 : i32
    %c0_i32_0 = arith.constant 0 : i32
    %c0_i32_1 = arith.constant 0 : i32
    return %c0_i32, %c0_i32_0 : i32, i32
  }
  func.func @transform_28(%arg0: i32) -> (i32, i32) {
    %c0_i32 = arith.constant 0 : i32
    %c0_i32_0 = arith.constant 0 : i32
    %c0_i32_1 = arith.constant 0 : i32
    return %c0_i32, %c0_i32_0 : i32, i32
  }
}

</mosaic_0001>

<bundles_post_ra>
// kernel: forward.1
= control target key start
LH: loop header
LB: loop body
LE: loop exit
PB: predicated region body
PF: predicated region fallthrough
CT: control target
= control target key end

     0   :  { %vm108_vm0 = vcmask 1043456   ;;  %vm101_vm1 = vcmask 162816   ;;  %vm238_vm2 = vcmask 261120   ;;  %vm596_vm3 = vcmask 64512   ;;  %s5670_s1 = inlined_call_operand.vmem [shape: f32[20,32], index: 1, kind: input, shape index: {}]   ;;  %s5671_s0 = inlined_call_operand.vmem [shape: f32[16,20], index: 0, kind: input, shape index: {}]   ;;  %s5672_s3 = inlined_call_operand.vmem [shape: f32[16,32], index: 3, kind: input, shape index: {}]   ;;  %s5673_s2 = inlined_call_operand.vmem [shape: f32[1,32], index: 2, kind: input, shape index: {}]   ;;  %s5674_s4 = inlined_call_operand.vmem [shape: f32[16,32], index: 4, kind: input, shape index: {}]   ;;  %s5675_s5 = inlined_call_operand.vmem [shape: f32[16,32], index: 5, kind: input, shape index: {}]   ;;  %s5676_s8 = inlined_call_operand.vmem [shape: f32[2,32,32], index: 8, kind: input, shape index: {}]   ;;  %s5677_s10 = inlined_call_operand.vmem [shape: f32[2,32,32], index: 10, kind: input, shape index: {}]   ;;  %s5678_s12 = inlined_call_operand.vmem [shape: f32[2,32,32], index: 12, kind: input, shape index: {}]   ;;  %s5679_s7 = inlined_call_operand.vmem [shape: f32[12,16,32], index: 7, kind: input, shape index: {}]   ;;  %s5680_s11 = inlined_call_operand.vmem [shape: f32[2,1,32], index: 11, kind: input, shape index: {}]   ;;  %s5681_s9 = inlined_call_operand.vmem [shape: f32[2,1,32], index: 9, kind: input, shape index: {}]   ;;  %s5682_s13 = inlined_call_operand.vmem [shape: f32[2,1,32], index: 13, kind: input, shape index: {}]   ;;  %s5683_s15 = inlined_call_operand.vmem [shape: f32[2,1,32], index: 15, kind: input, shape index: {}]   ;;  %s5684_s14 = inlined_call_operand.vmem [shape: f32[2,1,32], index: 14, kind: input, shape index: {}]   ;;  %s5685_s6 = inlined_call_operand.vmem [shape: f32[16,16], index: 6, kind: input, shape index: {}]   ;;  %s5686_s16 = inlined_call_operand.vmem [shape: f32[2,32,32], index: 16, kind: input, shape index: {}]   ;;  %s5687_s17 = inlined_call_operand.vmem [shape: f32[2,1,32], index: 17, kind: input, shape index: {}]   ;;  %s5688_s18 = inlined_call_operand.vmem [shape: f32[2,1,32], index: 18, kind: input, shape index: {}]   ;;  %s5689_s19 = inlined_call_operand.vmem [shape: f32[2,32,64], index: 19, kind: input, shape index: {}]   ;;  %s5690_s21 = inlined_call_operand.vmem [shape: f32[2,64,32], index: 21, kind: input, shape index: {}]   ;;  %s5691_s20 = inlined_call_operand.vmem [shape: f32[2,1,64], index: 20, kind: input, shape index: {}]   ;;  %s5692_s22 = inlined_call_operand.vmem [shape: f32[2,1,32], index: 22, kind: input, shape index: {}]   ;;  %s5693_s26 = inlined_call_operand.vmem [shape: f32[32,4], index: 26, kind: input, shape index: {}]   ;;  %s5694_s25 = inlined_call_operand.vmem [shape: f32[32,4], index: 25, kind: input, shape index: {}]   ;;  %s5695_s23 = inlined_call_operand.vmem [shape: f32[16,32], index: 23, kind: input, shape index: {}]   ;;  %s5696_s24 = inlined_call_operand.vmem [shape: f32[16,32], index: 24, kind: input, shape index: {}]   ;;  %s5697_s27 = inlined_call_operand.vmem [shape: f32[1,4], index: 27, kind: input, shape index: {}]   ;;  %s5698_s28 = inlined_call_operand.vmem [shape: f32[16,4], index: 28, kind: output, shape index: {}]  }
   0x1   :  { %5718 = sst [smem:[#allocation2_spill]] %s5670_s1  ;;  %vm684_vm4 = vcmask 130048   ;;  %vm1904_vm5 = vcmask 523264   ;;  %vm3989_vm6 = vcmask 31744  }
   0x2   :  { %5719 = sst [smem:[#allocation3_spill]] %s5671_s0 }
   0x3   :  { %5720 = sst [smem:[#allocation4_spill]] %s5672_s3 }
   0x4   :  { %5721 = sst [smem:[#allocation5_spill]] %s5673_s2 }
   0x5   :  { %5722 = sst [smem:[#allocation6_spill]] %s5674_s4 }
   0x6   :  { %5723 = sst [smem:[#allocation7_spill]] %s5675_s5 }
   0x7   :  { %5724 = sst [smem:[#allocation8_spill]] %s5676_s8 }
   0x8   :  { %5725 = sst [smem:[#allocation9_spill]] %s5677_s10  ;;  %s5713_s10 = smov 112  }
   0x9   :  { %5726 = sst [smem:[#allocation10_spill]] %s5678_s12  ;;  %s5715_s12 = smov 120  }
   0xa   :  { %5727 = sst [smem:[#allocation11_spill]] %s5679_s7 }
   0xb   :  { %5728 = sst [smem:[#allocation12_spill]] %s5680_s11 }
   0xc   :  { %5729 = sst [smem:[#allocation13_spill]] %s5681_s9 }
   0xd   :  { %5730 = sst [smem:[#allocation14_spill]] %s5682_s13 }
   0xe   :  { %5731 = sst [smem:[#allocation15_spill]] %s5697_s27 }
   0xf   :  { %5732 = sst [smem:[#allocation16_spill]] %s5698_s28  ;;  %s5747_s28 = smov 112  }
  0x10   :  { %s5733_s7 = sld [smem:[#allocation2_spill]] }
  0x11   :  { %s5734_s0 = sld [smem:[#allocation3_spill]] }
  0x12   :  { %s5735_s4 = sld [smem:[#allocation4_spill]] }
  0x13   :  { %s5736_s30 = sld [smem:[#allocation5_spill]] }
  0x14   :  { %s5738_s13 = sld [smem:[#allocation7_spill]] }
  0x15   :  { %s5740_s8 = sld [smem:[#allocation9_spill]] }
  0x16   :  { %v93_v0 = vld [vmem:[%s5733_s7 + $0x10] sm:$0xf]  ;;  %v92_v1 = vld [vmem:[%s5733_s7 + $0x8] sm:$0xff]  ;;  %v91_v3 = vld [vmem:[%s5733_s7] sm:$0xff]  ;;  %s5742_s3 = sld [smem:[#allocation11_spill]] }
  0x17   :  { %4345 = vmatprep.subr.msk.mxu0 %vm108_vm0, %v93_v0  ;;  %v89_v2 = vld [vmem:[%s5734_s0] sm:$0xff]  ;;  %v90_v4 = vld [vmem:[%s5734_s0 + $0x8] sm:$0xff]  ;;  %s5737_s0 = sld [smem:[#allocation6_spill]] }
  0x18   :  { %4346 = vmatpush3.msk.msra.mxu0 %vm108_vm0, %v93_v0  ;;  %4351 = vmatprep.mubr.msk.f32.mxu0 %vm101_vm1, %v89_v2  ;;  %v188_v5 = vld [vmem:[%s5735_s4 + $0x8] sm:$0xff]  ;;  %v187_v7 = vld [vmem:[%s5735_s4] sm:$0xff]  ;;  %s5743_s4 = sld [smem:[#allocation12_spill]] }
  0x19   :  { %4347 = vmatprep.subr.mxu0 %v92_v1  ;;  %v3996_v6 = vld [vmem:[%s5736_s30] ss:$0 sm:$0xff]  ;;  %v190_v8 = vadd.f32 1.0, %v188_v5  ;;  %v189_v11 = vadd.f32 1.0, %v187_v7  ;;  %s5739_s30 = sld [smem:[#allocation8_spill]] }
  0x1a   :  { %4348 = vmatpush3.msra.mxu0 %v92_v1  ;;  %v211_v28 = vld [vmem:[%s5738_s13] sm:$0xff]  ;;  %v212_v31 = vld [vmem:[%s5738_s13 + $0x8] sm:$0xff]  ;;  %s5744_s2 = sld [smem:[#allocation13_spill]]  ;;  %s5711_s13 = smov 104  }
  0x1b   :  { %4349 = vmatprep.subr.mxu0 %v91_v3  ;;  %v394_v47 = vld [vmem:[%s5740_s8 + $0x18] sm:$0xff]  ;;  %v393_v49 = vld [vmem:[%s5740_s8 + $0x10] sm:$0xff]  ;;  %v392_v51 = vld [vmem:[%s5740_s8 + $0x8] sm:$0xff]  ;;  %s5745_s9 = sld [smem:[#allocation14_spill]] }
  0x1c   :  { %4350 = vmatpush3.msra.mxu0 %v91_v3  ;;  %v391_v53 = vld [vmem:[%s5740_s8] sm:$0xff]  ;;  %v218_v0 = vld [vmem:[%s5742_s3 + $0x8] sm:$0xff]  ;;  %v4002_v2 = vld [vmem:[%s5742_s3 + $0x10] sm:$0xff]  ;;  %s5750_s1 = sld [smem:[#allocation16_spill]] }
  0x1d   :  { %4352 = vmatmul.mubr.msk.f32.vlgmr.msra.gmra.mxu0 %vm101_vm1, %v90_v4  ;;  %v194_v12 = vld [vmem:[%s5737_s0 + $0x8] sm:$0xff]  ;;  %v193_v16 = vld [vmem:[%s5737_s0] sm:$0xff]  ;;  %4365 = vmatprep.subr.mxu0 %v394_v47  ;;  %s5741_s0 = sld [smem:[#allocation10_spill]]  ;;  %v267_v4 = vadd.f32 1.0, %v218_v0 }
  0x1e   :  { %4366 = vmatpush3.msra.mxu0 %v394_v47  ;;  %v217_v61 = vld [vmem:[%s5742_s3] sm:$0xff] }
  0x1f   :  { %v275_v46 = vld [vmem:[%s5739_s30 + $0x18] sm:$0xff]  ;;  %v274_v48 = vld [vmem:[%s5739_s30 + $0x10] sm:$0xff]  ;;  %v273_v50 = vld [vmem:[%s5739_s30 + $0x8] sm:$0xff]  ;;  %4367 = vmatprep.subr.mxu0 %v393_v49  ;;  %v266_v62 = vadd.f32 1.0, %v217_v61 }
  0x20   :  { %4354 = vmatprep.subr.mxu1 %v275_v46  ;;  %4368 = vmatpush3.msra.mxu0 %v393_v49  ;;  %v272_v52 = vld [vmem:[%s5739_s30] sm:$0xff] }
  0x21   :  { %4355 = vmatpush3.msra.mxu1 %v275_v46  ;;  %4369 = vmatprep.subr.mxu0 %v392_v51 }
  0x22   :  { %4356 = vmatprep.subr.mxu1 %v274_v48  ;;  %4370 = vmatpush3.msra.mxu0 %v392_v51 }
  0x23   :  { %4357 = vmatpush3.msra.mxu1 %v274_v48  ;;  %v505_v54 = vld [vmem:[%s5741_s0 + $0x18] sm:$0xff]  ;;  %4371 = vmatprep.subr.mxu0 %v391_v53 }
  0x24   :  { %4358 = vmatprep.subr.mxu1 %v273_v50  ;;  %4372 = vmatpush3.msra.mxu0 %v391_v53 }
  0x25   :  { %4359 = vmatpush3.msra.mxu1 %v273_v50  ;;  %v4019_v50 = vld [vmem:[%s5683_s15] ss:$0 sm:$0xff] }
  0x26   :  { %4360 = vmatprep.subr.mxu1 %v272_v52 }
  0x27   :  { %4361 = vmatpush3.msra.mxu1 %v272_v52 }
  0x28   :  { %4376 = vmatprep.subr.mxu1 %v505_v54 }
  0xdd   :  { %v4353_v9 = vpop.f32.mrf.mxu0 }
  0xde   :  { %v4963_v10 = vadd.f32 %v4353_v9, %v3996_v6 }
  0xdf   :  { %v178_v13 = vpop.f32.mrf.mxu0 }
  0xe0   :  { %v192_v14 = vmul.f32 %v190_v8, %v4963_v10  ;;  %v4969_v15 = vadd.f32 %v3996_v6, %v178_v13  ;;  %v4003_v8 = vld [vmem:[%s5742_s3 + $0x18] sm:$0xff]  ;;  %v503_v13 = vld [vmem:[%s5741_s0 + $0x8] sm:$0xff] }
  0xe2   :  { %v196_v17 = vadd.f32 %v194_v12, %v192_v14  ;;  %v191_v18 = vmul.f32 %v189_v11, %v4969_v15  ;;  %v504_v12 = vld [vmem:[%s5741_s0 + $0x10] sm:$0xff]  ;;  %v502_v14 = vld [vmem:[%s5741_s0] sm:$0xff] }
  0xe4   :  { %v4001_v19 = vmul.f32 -1.442695, %v196_v17  ;;  %v195_v20 = vadd.f32 %v193_v16, %v191_v18  ;;  %v4016_v16 = vld [vmem:[%s5743_s4] ss:$0 sm:$0xff] }
  0xe5   :  { %v4012_v18 = vld [vmem:[%s5744_s2] ss:$0 sm:$0xff] }
  0xe6   :  { %4657 = vpow2.f32 %v4001_v19  ;;  %v4000_v21 = vmul.f32 -1.442695, %v195_v20 }
  0xe8   :  { %4659 = vpow2.f32 %v4000_v21 }
  0xf3   :  { %v4658_v22 = vpop.eup %4657 }
  0xf4   :  { %v204_v23 = vadd.f32 1.0, %v4658_v22 }
  0xf5   :  { %v4660_v24 = vpop.eup %4659 }
  0xf6   :  { %4661 = vrcp.f32 %v204_v23  ;;  %v203_v25 = vadd.f32 1.0, %v4660_v24 }
  0xf8   :  { %4663 = vrcp.f32 %v203_v25 }
 0x103   :  { %v4662_v26 = vpop.eup %4661 }
 0x104   :  { %v210_v29 = vmul.f32 %v4662_v26, %v196_v17 }
 0x105   :  { %v4664_v27 = vpop.eup %4663 }
 0x106   :  { %v209_v30 = vmul.f32 %v4664_v27, %v195_v20  ;;  %v4985_v34 = vadd.f32 %v212_v31, %v210_v29 }
 0x108   :  { %v4981_v32 = vadd.f32 %v211_v28, %v209_v30  ;;  %v242_v35 = vsel %vm238_vm2, %v4985_v34, 0.0  ;;  %v4020_v30 = vld [vmem:[%s5745_s9] ss:$0 sm:$0xff] }
 0x10a   :  { %v239_v33 = vsel %vm238_vm2, %v4981_v32, 0.0 }
 0x10b   :  { %240 = vadd.xlane.f32.xlu0 %v239_v33 }
 0x10f   :  { %243 = vadd.xlane.f32.xlu0 %v242_v35 }
 0x194   :  { %v241_v36 = vpop.xlane.xlu0 %240 }
 0x195   :  { %v246_v37 = vmul.f32 0.03125, %v241_v36 }
 0x197   :  { %v248_v38 = vsub.f32 %v4981_v32, %v246_v37 }
 0x198   :  { %v244_v39 = vpop.xlane.xlu0 %243 }
 0x199   :  { %v247_v40 = vmul.f32 0.03125, %v244_v39  ;;  %v250_v41 = vmul.f32 %v248_v38, %v248_v38 }
 0x19b   :  { %v249_v42 = vsub.f32 %v4985_v34, %v247_v40  ;;  %v252_v43 = vsel %vm238_vm2, %v250_v41, 0.0 }
 0x19c   :  { %253 = vadd.xlane.f32.xlu1 %v252_v43 }
 0x19d   :  { %v251_v44 = vmul.f32 %v249_v42, %v249_v42 }
 0x19f   :  { %v255_v45 = vsel %vm238_vm2, %v251_v44, 0.0 }
 0x1a0   :  { %256 = vadd.xlane.f32.xlu1 %v255_v45 }
 0x225   :  { %v254_v55 = vpop.xlane.xlu1 %253 }
 0x226   :  { %v258_v56 = vmul.f32 0.03125, %v254_v55 }
 0x228   :  { %v260_v57 = vadd.f32 1e-06, %v258_v56  ;;  %v4015_v56 = vld [vmem:[%s5684_s14] ss:$0 sm:$0xff] }
 0x229   :  { %v257_v58 = vpop.xlane.xlu1 %256 }
 0x22a   :  { %4665 = vrsqrt.f32 %v260_v57  ;;  %v259_v59 = vmul.f32 0.03125, %v257_v58 }
 0x22c   :  { %v261_v60 = vadd.f32 1e-06, %v259_v59 }
 0x22e   :  { %4667 = vrsqrt.f32 %v261_v60 }
 0x237   :  { %v4666_v63 = vpop.eup %4665 }
 0x238   :  { %v264_v1 = vmul.f32 %v4666_v63, %v248_v38 }
 0x23a   :  { %v268_v3 = vmul.f32 %v266_v62, %v264_v1 }
 0x23b   :  { %v4668_v5 = vpop.eup %4667 }
 0x23c   :  { %v270_v6 = vadd.f32 %v4002_v2, %v268_v3  ;;  %v265_v7 = vmul.f32 %v4668_v5, %v249_v42 }
 0x23e   :  { %4362 = vmatprep.mubr.msk.f32.mxu1 %vm238_vm2, %v270_v6  ;;  %4373 = vmatprep.mubr.msk.f32.mxu0 %vm238_vm2, %v270_v6  ;;  %v269_v9 = vmul.f32 %v267_v4, %v265_v7 }
 0x240   :  { %v271_v11 = vadd.f32 %v4003_v8, %v269_v9  ;;  %v5102_v9 = vld [vmem:[%s5685_s6 + $0x8] sm:$0xff] }
 0x242   :  { %4363 = vmatmul.mubr.msk.f32.vlgmr.msra.gmra.mxu1 %vm238_vm2, %v271_v11  ;;  %4374 = vmatmul.mubr.msk.f32.vlgmr.msra.gmra.mxu0 %vm238_vm2, %v271_v11 }
 0x243   :  { %4377 = vmatpush3.msra.mxu1 %v505_v54  ;;  %4384 = vmatprep.mubr.msk.f32.mxu1 %vm238_vm2, %v270_v6 }
 0x244   :  { %4378 = vmatprep.subr.mxu1 %v504_v12 }
 0x245   :  { %4379 = vmatpush3.msra.mxu1 %v504_v12  ;;  %v5107_v12 = vld [vmem:[%s5685_s6] sm:$0xff] }
 0x246   :  { %4380 = vmatprep.subr.mxu1 %v503_v13 }
 0x247   :  { %4381 = vmatpush3.msra.mxu1 %v503_v13 }
 0x248   :  { %4382 = vmatprep.subr.mxu1 %v502_v14 }
 0x249   :  { %4383 = vmatpush3.msra.mxu1 %v502_v14 }
 0x24a   :  { %4385 = vmatmul.mubr.msk.f32.vlgmr.msra.gmra.mxu1 %vm238_vm2, %v271_v11 }
 0x302   :  { %v4364_v17 = vpop.f32.mrf.mxu1  ;;  %v4375_v19 = vpop.f32.mrf.mxu0 }
 0x303   :  { %v474_v20 = vadd.f32 %v4375_v19, %v4016_v16  ;;  %v361_v23 = vadd.f32 %v4364_v17, %v4012_v18 }
 0x304   :  { %v355_v21 = vpop.f32.mrf.mxu1  ;;  %v468_v22 = vpop.f32.mrf.mxu0 }
 0x305   :  { %v356_v24 = vadd.f32 %v4012_v18, %v355_v21  ;;  %v469_v25 = vadd.f32 %v4016_v16, %v468_v22  ;;  %v479_v26 = vmul.f32 %v474_v20, %v474_v20  ;;  %v366_v33 = vmul.f32 %v361_v23, %v361_v23 }
 0x307   :  { %v483_v27 = vsel %vm238_vm2, %v479_v26, 0.0  ;;  %v478_v28 = vmul.f32 %v469_v25, %v469_v25  ;;  %v365_v29 = vmul.f32 %v356_v24, %v356_v24  ;;  %v370_v40 = vsel %vm238_vm2, %v366_v33, 0.0 }
 0x308   :  { %484 = vadd.xlane.f32.xlu0 %v483_v27 }
 0x309   :  { %v480_v31 = vsel %vm238_vm2, %v478_v28, 0.0  ;;  %v367_v37 = vsel %vm238_vm2, %v365_v29, 0.0 }
 0x30a   :  { %v4386_v35 = vpop.f32.mrf.mxu1  ;;  %481 = vadd.xlane.f32.xlu1 %v480_v31 }
 0x30b   :  { %v5058_v36 = vadd.f32 %v4386_v35, %v4020_v30 }
 0x30c   :  { %v579_v38 = vpop.f32.mrf.mxu1  ;;  %368 = vadd.xlane.f32.xlu0 %v367_v37 }
 0x30d   :  { %v5061_v39 = vadd.f32 %v4020_v30, %v579_v38  ;;  %4394 = vmatprep.subr.mxu1 %v5058_v36 }
 0x30e   :  { %4395 = vmatpush3.msra.mxu1 %v5058_v36  ;;  %371 = vadd.xlane.f32.xlu1 %v370_v40 }
 0x30f   :  { %4396 = vmatprep.subr.mxu1 %v5061_v39 }
 0x310   :  { %4397 = vmatpush3.msra.mxu1 %v5061_v39 }
 0x391   :  { %v485_v41 = vpop.xlane.xlu0 %484 }
 0x392   :  { %v487_v42 = vmax.f32 %v485_v41, 1e-24 }
 0x393   :  { %v482_v43 = vpop.xlane.xlu1 %481 }
 0x394   :  { %4669 = vrsqrt.f32 %v487_v42  ;;  %v486_v44 = vmax.f32 %v482_v43, 1e-24 }
 0x395   :  { %v369_v45 = vpop.xlane.xlu0 %368 }
 0x396   :  { %4671 = vrsqrt.f32 %v486_v44  ;;  %v373_v46 = vmax.f32 %v369_v45, 1e-24 }
 0x397   :  { %v372_v47 = vpop.xlane.xlu1 %371 }
 0x398   :  { %4673 = vrsqrt.f32 %v373_v46  ;;  %v374_v48 = vmax.f32 %v372_v47, 1e-24 }
 0x39a   :  { %4675 = vrsqrt.f32 %v374_v48 }
 0x3a1   :  { %v4670_v49 = vpop.eup %4669 }
 0x3a2   :  { %v491_v51 = vmul.f32 %v4670_v49, %v474_v20 }
 0x3a3   :  { %v4672_v52 = vpop.eup %4671 }
 0x3a4   :  { %v499_v53 = vmul.f32 %v4019_v50, %v491_v51  ;;  %v490_v54 = vmul.f32 %v4672_v52, %v469_v25 }
 0x3a5   :  { %v4674_v55 = vpop.eup %4673 }
 0x3a6   :  { %v5074_v57 = vmul.f32 5.656854, %v499_v53  ;;  %v498_v58 = vmul.f32 %v4019_v50, %v490_v54  ;;  %v377_v59 = vmul.f32 %v4674_v55, %v356_v24 }
 0x3a7   :  { %v4676_v60 = vpop.eup %4675 }
 0x3a8   :  { %4387 = vmatprep.subr.msk.mxu0 %vm596_vm3, %v5074_v57  ;;  %877 = vrot.lane.b32.xlu0 %v5074_v57, %s5715_s12  ;;  %v500_v61 = vmul.f32 5.656854, %v498_v58  ;;  %v378_v62 = vmul.f32 %v4676_v60, %v361_v23  ;;  %v385_v63 = vmul.f32 %v4015_v56, %v377_v59 }
 0x3a9   :  { %4388 = vmatpush3.xpose.msk.msra.mxu0 %vm596_vm3, %v5074_v57 }
 0x3aa   :  { %4389 = vmatprep.subr.msk.mxu0 %vm596_vm3, %v500_v61  ;;  %875 = vrot.lane.b32.xlu1 %v500_v61, %s5715_s12  ;;  %v386_v0 = vmul.f32 %v4015_v56, %v378_v62  ;;  %v387_v1 = vmul.f32 5.656854, %v385_v63  ;;  %v234_v62 = vld [vmem:[%s5686_s16] sm:$0xff] }
 0x3ab   :  { %4401 = vmatprep.subr.mxu1 %v234_v62 }
 0x3ac   :  { %v388_v2 = vmul.f32 5.656854, %v386_v0  ;;  %v5084_v3 = vmul.f32 0.35355338, %v387_v1 }
 0x3ad   :  { %4390 = vmatpush3.xpose.msk.msra.mxu0 %vm596_vm3, %v500_v61 }
 0x3ae   :  { %v390_v4 = vmul.f32 0.35355338, %v388_v2  ;;  %871 = vrot.lane.b32.xlu1 %v5084_v3, %s5715_s12  ;;  %4391 = vmatprep.mubr.msk.f32.mxu0 %vm596_vm3, %v5084_v3 }
 0x3b0   :  { %4392 = vmatmul.mubr.msk.f32.vlgmr.msra.gmra.mxu0 %vm596_vm3, %v390_v4 }
 0x3b2   :  { %873 = vrot.lane.b32.xlu1 %v390_v4, %s5715_s12 }
 0x41a   :  { %v878_v5 = vpop.permute.xlu0 %877 }
 0x41b   :  { %4406 = vmatprep.subr.msk.mxu0 %vm596_vm3, %v878_v5 }
 0x41c   :  { %v876_v6 = vpop.permute.xlu1 %875  ;;  %4407 = vmatpush3.xpose.msk.msra.mxu0 %vm596_vm3, %v878_v5 }
 0x41d   :  { %4408 = vmatprep.subr.msk.mxu0 %vm596_vm3, %v876_v6 }
 0x420   :  { %v872_v7 = vpop.permute.xlu1 %871  ;;  %4409 = vmatpush3.xpose.msk.msra.mxu0 %vm596_vm3, %v876_v6 }
 0x421   :  { %4410 = vmatprep.mubr.msk.f32.mxu0 %vm596_vm3, %v872_v7 }
 0x424   :  { %v874_v8 = vpop.permute.xlu1 %873 }
 0x425   :  { %4411 = vmatmul.mubr.msk.f32.vlgmr.msra.gmra.mxu0 %vm596_vm3, %v874_v8 }
 0x470   :  { %v4393_v11 = vpop.f32.mrf.mxu0 }
 0x471   :  { %v681_v13 = vadd.f32 %v4393_v11, %v5102_v9 }
 0x472   :  { %v675_v14 = vpop.f32.mrf.mxu0 }
 0x473   :  { %v676_v16 = vadd.f32 %v675_v14, %v5107_v12  ;;  %v688_v17 = vsel %vm684_vm4, %v681_v13, -inf }
 0x474   :  { %689 = vmax.xlane.f32.xlu1 %v688_v17 }
 0x475   :  { %v685_v18 = vsel %vm684_vm4, %v676_v16, -inf }
 0x476   :  { %686 = vmax.xlane.f32.xlu0 %v685_v18 }
 0x485   :  { %1160 = vrot.lane.b32.xlu1 %v500_v61, %s5713_s10 }
 0x489   :  { %1156 = vrot.lane.b32.xlu1 %v5084_v3, %s5713_s10 }
 0x48d   :  { %1158 = vrot.lane.b32.xlu1 %v390_v4, %s5713_s10 }
 0x4e5   :  { %v4412_v19 = vpop.f32.mrf.mxu0 }
 0x4e6   :  { %v959_v20 = vadd.f32 %v4412_v19, %v5102_v9 }
 0x4e7   :  { %v953_v37 = vpop.f32.mrf.mxu0 }
 0x4e8   :  { %v965_v21 = vsel %vm684_vm4, %v959_v20, -inf  ;;  %v954_v38 = vadd.f32 %v953_v37, %v5107_v12 }
 0x4e9   :  { %966 = vmax.xlane.f32.xlu1 %v965_v21 }
 0x4ea   :  { %v962_v40 = vsel %vm684_vm4, %v954_v38, -inf }
 0x4fa   :  { %986 = vrot.lane.b32.xlu1 %v5061_v39, %s5715_s12 }
 0x4fd   :  { %v690_v22 = vpop.xlane.xlu1 %689 }
 0x4fe   :  { %v692_v23 = vsub.f32 %v681_v13, %v690_v22  ;;  %1445 = vrot.lane.b32.xlu1 %v5074_v57, %s5711_s13 }
 0x4ff   :  { %v687_v24 = vpop.xlane.xlu0 %686 }
 0x500   :  { %v691_v25 = vsub.f32 %v676_v16, %v687_v24  ;;  %v695_v27 = vmul.f32 1.442695, %v692_v23 }
 0x501   :  { %v1161_v26 = vpop.permute.xlu1 %1160 }
 0x502   :  { %v693_v28 = vmul.f32 1.442695, %v691_v25  ;;  %1443 = vrot.lane.b32.xlu1 %v500_v61, %s5711_s13 }
 0x504   :  { %4677 = vpow2.f32 %v693_v28 }
 0x505   :  { %v1157_v29 = vpop.permute.xlu1 %1156  ;;  %4679 = vpow2.f32 %v695_v27 }
 0x506   :  { %4429 = vmatprep.mubr.msk.f32.mxu0 %vm596_vm3, %v1157_v29  ;;  %1441 = vrot.lane.b32.xlu1 %v390_v4, %s5711_s13 }
 0x509   :  { %v1159_v41 = vpop.permute.xlu1 %1158 }
 0x511   :  { %v4678_v30 = vpop.eup %4677 }
 0x512   :  { %v697_v31 = vsel %vm684_vm4, %v4678_v30, 0.0  ;;  %v4680_v33 = vpop.eup %4679 }
 0x513   :  { %698 = vadd.xlane.f32.xlu0 %v697_v31  ;;  %v700_v35 = vsel %vm684_vm4, %v4680_v33, 0.0 }
 0x517   :  { %701 = vadd.xlane.f32.xlu0 %v700_v35 }
 0x52d   :  { %1162 = vrot.lane.b32.xlu0 %v5074_v57, %s5713_s10 }
 0x54c   :  { %963 = vmax.xlane.f32.xlu0 %v962_v40 }
 0x572   :  { %v967_v42 = vpop.xlane.xlu1 %966 }
 0x573   :  { %v969_v43 = vsub.f32 %v959_v20, %v967_v42  ;;  %v235_v20 = vld [vmem:[%s5686_s16 + $0x8] sm:$0xff] }
 0x575   :  { %v972_v44 = vmul.f32 1.442695, %v969_v43 }
 0x576   :  { %v987_v49 = vpop.permute.xlu1 %986 }
 0x577   :  { %4681 = vpow2.f32 %v972_v44 }
 0x57a   :  { %v1446_v51 = vpop.permute.xlu1 %1445 }
 0x57e   :  { %v1444_v55 = vpop.permute.xlu1 %1443 }
 0x582   :  { %v1442_v14 = vpop.permute.xlu1 %1441 }
 0x584   :  { %v5132_v45 = vpop.eup %4681 }
 0x585   :  { %v977_v46 = vsel %vm684_vm4, %v5132_v45, 0.0 }
 0x586   :  { %978 = vadd.xlane.f32.xlu0 %v977_v46 }
 0x59c   :  { %v699_v47 = vpop.xlane.xlu0 %698 }
 0x59d   :  { %4683 = vrcp.f32 %v699_v47 }
 0x5a0   :  { %v702_v48 = vpop.xlane.xlu0 %701 }
 0x5a1   :  { %4685 = vrcp.f32 %v702_v48 }
 0x5a4   :  { %v1163_v50 = vpop.permute.xlu0 %1162 }
 0x5a5   :  { %4425 = vmatprep.subr.msk.mxu0 %vm596_vm3, %v1163_v50 }
 0x5a6   :  { %4426 = vmatpush3.xpose.msk.msra.mxu0 %vm596_vm3, %v1163_v50 }
 0x5a7   :  { %4427 = vmatprep.subr.msk.mxu0 %vm596_vm3, %v1161_v26 }
 0x5aa   :  { %v4684_v52 = vpop.eup %4683  ;;  %4428 = vmatpush3.xpose.msk.msra.mxu0 %vm596_vm3, %v1161_v26 }
 0x5ab   :  { %4444 = vmatprep.subr.msk.mxu0 %vm596_vm3, %v1446_v51  ;;  %v705_v53 = vmul.f32 %v4684_v52, %v4678_v30 }
 0x5ad   :  { %4398 = vmatprep.mubr.msk.f32.mxu1 %vm684_vm4, %v705_v53  ;;  %4430 = vmatmul.mubr.msk.f32.vlgmr.msra.gmra.mxu0 %vm596_vm3, %v1159_v41 }
 0x5ae   :  { %v4686_v54 = vpop.eup %4685  ;;  %4445 = vmatpush3.xpose.msk.msra.mxu0 %vm596_vm3, %v1446_v51 }
 0x5af   :  { %4446 = vmatprep.subr.msk.mxu0 %vm596_vm3, %v1444_v55  ;;  %v706_v56 = vmul.f32 %v4686_v54, %v4680_v33 }
 0x5b1   :  { %4399 = vmatmul.mubr.msk.f32.vlgmr.msra.gmra.mxu1 %vm684_vm4, %v706_v56 }
 0x5b2   :  { %4447 = vmatpush3.xpose.msk.msra.mxu0 %vm596_vm3, %v1444_v55  ;;  %4402 = vmatpush3.msra.mxu1 %v234_v62  ;;  %v4023_v62 = vld [vmem:[%s5687_s17] ss:$0 sm:$0xff] }
 0x5d5   :  { %v964_v57 = vpop.xlane.xlu0 %963 }
 0x5d6   :  { %v968_v58 = vsub.f32 %v954_v38, %v964_v57 }
 0x5d8   :  { %v970_v59 = vmul.f32 1.442695, %v968_v58 }
 0x5da   :  { %4687 = vpow2.f32 %v970_v59 }
 0x5e7   :  { %v4688_v60 = vpop.eup %4687 }
 0x5e8   :  { %v974_v61 = vsel %vm684_vm4, %v4688_v60, 0.0 }
 0x5e9   :  { %975 = vadd.xlane.f32.xlu0 %v974_v61  ;;  %v236_v61 = vld [vmem:[%s5686_s16 + $0x10] sm:$0xff] }
 0x5ff   :  { %988 = vrot.lane.b32.xlu0 %v5058_v36, %s5715_s12  ;;  %s5746_s12 = smov 120  }
 0x603   :  { %1439 = vrot.lane.b32.xlu0 %v5084_v3, %s5711_s13 }
 0x60f   :  { %v979_v0 = vpop.xlane.xlu0 %978 }
 0x610   :  { %4689 = vrcp.f32 %v979_v0 }
 0x61d   :  { %v4690_v16 = vpop.eup %4689 }
 0x61e   :  { %v983_v19 = vmul.f32 %v4690_v16, %v5132_v45 }
 0x66d   :  { %v4431_v63 = vpop.f32.mrf.mxu0 }
 0x66e   :  { %v1244_v1 = vadd.f32 %v4431_v63, %v5102_v9 }
 0x66f   :  { %v1238_v2 = vpop.f32.mrf.mxu0 }
 0x670   :  { %v1239_v4 = vadd.f32 %v1238_v2, %v5107_v12  ;;  %v1250_v5 = vsel %vm684_vm4, %v1244_v1, -inf }
 0x671   :  { %v4400_v6 = vpop.f32.mrf.mxu1  ;;  %1251 = vmax.xlane.f32.xlu1 %v1250_v5 }
 0x672   :  { %v976_v7 = vpop.xlane.xlu0 %975  ;;  %v1247_v8 = vsel %vm684_vm4, %v1239_v4, -inf }
 0x673   :  { %4691 = vrcp.f32 %v976_v7  ;;  %v779_v11 = vpop.f32.mrf.mxu1  ;;  %1248 = vmax.xlane.f32.xlu0 %v1247_v8 }
 0x674   :  { %4403 = vmatprep.mubr.msk.f32.mxu1 %vm596_vm3, %v779_v11 }
 0x675   :  { %4404 = vmatmul.mubr.msk.f32.vlgmr.msra.gmra.mxu1 %vm596_vm3, %v4400_v6 }
 0x676   :  { %v989_v3 = vpop.permute.xlu0 %988 }
 0x677   :  { %4413 = vmatprep.subr.mxu1 %v989_v3 }
 0x678   :  { %4414 = vmatpush3.msra.mxu1 %v989_v3 }
 0x679   :  { %4415 = vmatprep.subr.mxu1 %v987_v49 }
 0x67a   :  { %4416 = vmatpush3.msra.mxu1 %v987_v49  ;;  %v1440_v13 = vpop.permute.xlu0 %1439 }
 0x67b   :  { %4448 = vmatprep.mubr.msk.f32.mxu0 %vm596_vm3, %v1440_v13  ;;  %4420 = vmatprep.subr.mxu1 %v235_v20 }
 0x67c   :  { %4449 = vmatmul.mubr.msk.f32.vlgmr.msra.gmra.mxu0 %vm596_vm3, %v1442_v14  ;;  %v237_v14 = vld [vmem:[%s5686_s16 + $0x18] sm:$0xff] }
 0x680   :  { %v4692_v17 = vpop.eup %4691 }
 0x681   :  { %v982_v18 = vmul.f32 %v4692_v17, %v4688_v60 }
 0x682   :  { %1269 = vrot.lane.b32.xlu1 %v5061_v39, %s5713_s10 }
 0x683   :  { %4417 = vmatprep.mubr.msk.f32.mxu1 %vm684_vm4, %v982_v18 }
 0x684   :  { %4418 = vmatmul.mubr.msk.f32.vlgmr.msra.gmra.mxu1 %vm684_vm4, %v983_v19 }
 0x685   :  { %4421 = vmatpush3.msra.mxu1 %v235_v20 }
 0x6fa   :  { %v1252_v21 = vpop.xlane.xlu1 %1251 }
 0x6fb   :  { %v1254_v22 = vsub.f32 %v1244_v1, %v1252_v21 }
 0x6fc   :  { %v1249_v23 = vpop.xlane.xlu0 %1248 }
 0x6fd   :  { %v1257_v24 = vmul.f32 1.442695, %v1254_v22  ;;  %v1253_v25 = vsub.f32 %v1239_v4, %v1249_v23 }
 0x6fe   :  { %v1270_v47 = vpop.permute.xlu1 %1269 }
 0x6ff   :  { %4693 = vpow2.f32 %v1257_v24  ;;  %v1255_v26 = vmul.f32 1.442695, %v1253_v25 }
 0x701   :  { %4695 = vpow2.f32 %v1255_v26 }
 0x70c   :  { %v4694_v27 = vpop.eup %4693 }
 0x70d   :  { %v1262_v28 = vsel %vm684_vm4, %v4694_v27, 0.0 }
 0x70e   :  { %v4696_v29 = vpop.eup %4695  ;;  %1263 = vadd.xlane.f32.xlu0 %v1262_v28 }
 0x70f   :  { %v1259_v30 = vsel %vm684_vm4, %v4696_v29, 0.0 }
 0x712   :  { %1260 = vadd.xlane.f32.xlu0 %v1259_v30 }
 0x728   :  { %1271 = vrot.lane.b32.xlu0 %v5058_v36, %s5713_s10 }
 0x735   :  { %v4405_v33 = vpop.f32.mrf.mxu1 }
 0x736   :  { %v870_v63 = vadd.f32 %v4405_v33, %v4023_v62 }
 0x737   :  { %v5177_v40 = vpop.f32.mrf.mxu1 }
 0x738   :  { %v869_v16 = vadd.f32 %v4023_v62, %v5177_v40 }
 0x73c   :  { %v4450_v31 = vpop.f32.mrf.mxu0 }
 0x73d   :  { %v1527_v41 = vadd.f32 %v4450_v31, %v5102_v9 }
 0x73e   :  { %v1521_v35 = vpop.f32.mrf.mxu0 }
 0x73f   :  { %v1522_v37 = vadd.f32 %v1521_v35, %v5107_v12  ;;  %v1533_v44 = vsel %vm684_vm4, %v1527_v41, -inf }
 0x741   :  { %v1530_v38 = vsel %vm684_vm4, %v1522_v37, -inf }
 0x742   :  { %1531 = vmax.xlane.f32.xlu1 %v1530_v38 }
 0x744   :  { %v4419_v42 = vpop.f32.mrf.mxu1 }
 0x746   :  { %v1064_v43 = vpop.f32.mrf.mxu1 }
 0x747   :  { %4422 = vmatprep.mubr.msk.f32.mxu1 %vm596_vm3, %v1064_v43  ;;  %1534 = vmax.xlane.f32.xlu0 %v1533_v44 }
 0x748   :  { %4423 = vmatmul.mubr.msk.f32.vlgmr.msra.gmra.mxu1 %vm596_vm3, %v4419_v42 }
 0x797   :  { %v1264_v45 = vpop.xlane.xlu0 %1263 }
 0x798   :  { %4697 = vrcp.f32 %v1264_v45 }
 0x79b   :  { %v1261_v46 = vpop.xlane.xlu0 %1260 }
 0x79c   :  { %4699 = vrcp.f32 %v1261_v46  ;;  %v4005_v46 = vld [vmem:[%s5742_s3 + $0x28] sm:$0xff] }
 0x79f   :  { %v1272_v12 = vpop.permute.xlu0 %1271 }
 0x7a0   :  { %4432 = vmatprep.subr.mxu1 %v1272_v12 }
 0x7a1   :  { %4433 = vmatpush3.msra.mxu1 %v1272_v12 }
 0x7a2   :  { %4434 = vmatprep.subr.mxu1 %v1270_v47 }
 0x7a3   :  { %4435 = vmatpush3.msra.mxu1 %v1270_v47 }
 0x7a4   :  { %4439 = vmatprep.subr.mxu1 %v236_v61 }
 0x7a5   :  { %v4698_v9 = vpop.eup %4697 }
 0x7a6   :  { %v1268_v50 = vmul.f32 %v4698_v9, %v4694_v27  ;;  %v4004_v9 = vld [vmem:[%s5742_s3 + $0x20] sm:$0xff] }
 0x7a9   :  { %v4700_v48 = vpop.eup %4699 }
 0x7aa   :  { %v1267_v49 = vmul.f32 %v4700_v48, %v4696_v29 }
 0x7ac   :  { %4436 = vmatprep.mubr.msk.f32.mxu1 %vm684_vm4, %v1267_v49 }
 0x7ad   :  { %4437 = vmatmul.mubr.msk.f32.vlgmr.msra.gmra.mxu1 %vm684_vm4, %v1268_v50 }
 0x7ae   :  { %4440 = vmatpush3.msra.mxu1 %v236_v61 }
 0x7cb   :  { %v1532_v51 = vpop.xlane.xlu1 %1531 }
 0x7cc   :  { %v1536_v52 = vsub.f32 %v1522_v37, %v1532_v51 }
 0x7ce   :  { %v1538_v53 = vmul.f32 1.442695, %v1536_v52 }
 0x7d0   :  { %4701 = vpow2.f32 %v1538_v53  ;;  %v1535_v54 = vpop.xlane.xlu0 %1534 }
 0x7d1   :  { %v1537_v55 = vsub.f32 %v1527_v41, %v1535_v54  ;;  %v4056_v41 = vld [vmem:[%s5688_s18] ss:$0 sm:$0xff] }
 0x7d3   :  { %v1540_v56 = vmul.f32 1.442695, %v1537_v55 }
 0x7d5   :  { %4703 = vpow2.f32 %v1540_v56 }
 0x7dd   :  { %v4702_v57 = vpop.eup %4701 }
 0x7de   :  { %v1542_v58 = vsel %vm684_vm4, %v4702_v57, 0.0 }
 0x7df   :  { %1543 = vadd.xlane.f32.xlu0 %v1542_v58 }
 0x7e2   :  { %v4704_v59 = vpop.eup %4703 }
 0x7e3   :  { %v1545_v60 = vsel %vm684_vm4, %v4704_v59, 0.0 }
 0x7e4   :  { %1546 = vadd.xlane.f32.xlu1 %v1545_v60 }
 0x7f5   :  { %1554 = vrot.lane.b32.xlu0 %v5058_v36, %s5711_s13  ;;  %1552 = vrot.lane.b32.xlu1 %v5061_v39, %s5711_s13 }
 0x808   :  { %v4424_v0 = vpop.f32.mrf.mxu1 }
 0x809   :  { %v1155_v1 = vadd.f32 %v4424_v0, %v870_v63  ;;  %v1786_v63 = vld [vmem:[%s5689_s19 + $0x18] sm:$0xff]  ;;  %v1785_v0 = vld [vmem:[%s5689_s19 + $0x10] sm:$0xff] }
 0x80a   :  { %v1145_v4 = vpop.f32.mrf.mxu1  ;;  %4463 = vmatprep.subr.mxu0 %v1786_v63 }
 0x80b   :  { %v1154_v18 = vadd.f32 %v1145_v4, %v869_v16  ;;  %4464 = vmatpush3.msra.mxu0 %v1786_v63 }
 0x80c   :  { %4465 = vmatprep.subr.mxu0 %v1785_v0 }
 0x80d   :  { %4466 = vmatpush3.msra.mxu0 %v1785_v0 }
 0x868   :  { %v1544_v2 = vpop.xlane.xlu0 %1543 }
 0x869   :  { %4705 = vrcp.f32 %v1544_v2  ;;  %v1783_v2 = vld [vmem:[%s5689_s19] sm:$0xff] }
 0x86c   :  { %v1555_v5 = vpop.permute.xlu0 %1554 }
 0x86d   :  { %v4438_v6 = vpop.f32.mrf.mxu1  ;;  %v1547_v7 = vpop.xlane.xlu1 %1546  ;;  %4451 = vmatprep.subr.mxu1 %v1555_v5 }
 0x86e   :  { %4707 = vrcp.f32 %v1547_v7 }
 0x86f   :  { %v1347_v8 = vpop.f32.mrf.mxu1 }
 0x870   :  { %4441 = vmatprep.mubr.msk.f32.mxu1 %vm596_vm3, %v1347_v8 }
 0x871   :  { %4442 = vmatmul.mubr.msk.f32.vlgmr.msra.gmra.mxu1 %vm596_vm3, %v4438_v6  ;;  %v1553_v36 = vpop.permute.xlu1 %1552 }
 0x872   :  { %4452 = vmatpush3.msra.mxu1 %v1555_v5 }
 0x873   :  { %4453 = vmatprep.subr.mxu1 %v1553_v36 }
 0x874   :  { %4454 = vmatpush3.msra.mxu1 %v1553_v36 }
 0x875   :  { %4458 = vmatprep.subr.mxu1 %v237_v14 }
 0x876   :  { %v4706_v39 = vpop.eup %4705 }
 0x877   :  { %v1550_v11 = vmul.f32 %v4706_v39, %v4702_v57  ;;  %v4007_v39 = vld [vmem:[%s5742_s3 + $0x38] sm:$0xff] }
 0x879   :  { %4455 = vmatprep.mubr.msk.f32.mxu1 %vm684_vm4, %v1550_v11  ;;  %v4006_v11 = vld [vmem:[%s5742_s3 + $0x30] sm:$0xff] }
 0x87a   :  { %v1777_v16 = vadd.f32 1.0, %v4006_v11  ;;  %v4103_v11 = vld [vmem:[%s5741_s0 + $0x30] sm:$0xff] }
 0x87b   :  { %v4708_v3 = vpop.eup %4707 }
 0x87c   :  { %v1551_v13 = vmul.f32 %v4708_v3, %v4704_v59 }
 0x87e   :  { %4456 = vmatmul.mubr.msk.f32.vlgmr.msra.gmra.mxu1 %vm684_vm4, %v1551_v13  ;;  %v1778_v13 = vadd.f32 1.0, %v4007_v39  ;;  %v4083_v39 = vld [vmem:[%s5739_s30 + $0x30] sm:$0xff] }
 0x87f   :  { %4459 = vmatpush3.msra.mxu1 %v237_v14 }
 0x931   :  { %v4443_v17 = vpop.f32.mrf.mxu1 }
 0x932   :  { %v1438_v19 = vadd.f32 %v4443_v17, %v1155_v1  ;;  %v1784_v1 = vld [vmem:[%s5689_s19 + $0x8] sm:$0xff] }
 0x933   :  { %v1428_v20 = vpop.f32.mrf.mxu1  ;;  %4467 = vmatprep.subr.mxu0 %v1784_v1 }
 0x934   :  { %v1437_v21 = vadd.f32 %v1428_v20, %v1154_v18  ;;  %4468 = vmatpush3.msra.mxu0 %v1784_v1 }
 0x935   :  { %4469 = vmatprep.subr.mxu0 %v1783_v2 }
 0x936   :  { %4470 = vmatpush3.msra.mxu0 %v1783_v2 }
 0x93e   :  { %v4457_v22 = vpop.f32.mrf.mxu1 }
 0x940   :  { %v1630_v23 = vpop.f32.mrf.mxu1 }
 0x941   :  { %4460 = vmatprep.mubr.msk.f32.mxu1 %vm596_vm3, %v1630_v23 }
 0x942   :  { %4461 = vmatmul.mubr.msk.f32.vlgmr.msra.gmra.mxu1 %vm596_vm3, %v4457_v22  ;;  %v4009_v22 = vld [vmem:[%s5742_s3 + $0x48] sm:$0xff] }
 0xa02   :  { %v4462_v24 = vpop.f32.mrf.mxu1 }
 0xa03   :  { %v1721_v25 = vadd.f32 %v4462_v24, %v1438_v19  ;;  %v4008_v19 = vld [vmem:[%s5742_s3 + $0x40] sm:$0xff] }
 0xa04   :  { %v1711_v26 = vpop.f32.mrf.mxu1 }
 0xa05   :  { %v1720_v27 = vadd.f32 %v1711_v26, %v1437_v21  ;;  %v1724_v28 = vmul.f32 %v1721_v25, %v1721_v25  ;;  %v1895_v26 = vld [vmem:[%s5690_s21 + $0x30] sm:$0xff] }
 0xa07   :  { %v1728_v29 = vsel %vm238_vm2, %v1724_v28, 0.0  ;;  %v1723_v30 = vmul.f32 %v1720_v27, %v1720_v27  ;;  %v1893_v28 = vld [vmem:[%s5690_s21 + $0x20] sm:$0xff] }
 0xa08   :  { %1729 = vadd.xlane.f32.xlu0 %v1728_v29  ;;  %v1892_v29 = vld [vmem:[%s5690_s21 + $0x18] sm:$0xff] }
 0xa09   :  { %v1725_v31 = vsel %vm238_vm2, %v1723_v30, 0.0  ;;  %v1891_v30 = vld [vmem:[%s5690_s21 + $0x10] sm:$0xff] }
 0xa0a   :  { %1726 = vadd.xlane.f32.xlu1 %v1725_v31  ;;  %v1890_v31 = vld [vmem:[%s5690_s21 + $0x8] sm:$0xff] }
 0xa91   :  { %v1730_v33 = vpop.xlane.xlu0 %1729 }
 0xa92   :  { %v1732_v35 = vmax.f32 %v1730_v33, 1e-24  ;;  %v1889_v33 = vld [vmem:[%s5690_s21] sm:$0xff] }
 0xa93   :  { %v1727_v37 = vpop.xlane.xlu1 %1726 }
 0xa94   :  { %4709 = vrsqrt.f32 %v1732_v35  ;;  %v1731_v38 = vmax.f32 %v1727_v37, 1e-24  ;;  %v4057_v35 = vld [vmem:[%s5691_s20] ss:$0 sm:$0xff] }
 0xa96   :  { %4711 = vrsqrt.f32 %v1731_v38 }
 0xaa1   :  { %v4710_v40 = vpop.eup %4709 }
 0xaa2   :  { %v1736_v42 = vmul.f32 %v4710_v40, %v1721_v25  ;;  %v1896_v25 = vld [vmem:[%s5690_s21 + $0x38] sm:$0xff] }
 0xaa3   :  { %v4712_v43 = vpop.eup %4711  ;;  %4474 = vmatprep.subr.mxu1 %v1896_v25 }
 0xaa4   :  { %v1744_v44 = vmul.f32 %v4056_v41, %v1736_v42  ;;  %v1735_v45 = vmul.f32 %v4712_v43, %v1720_v27  ;;  %4475 = vmatpush3.msra.mxu1 %v1896_v25  ;;  %v1894_v27 = vld [vmem:[%s5690_s21 + $0x28] sm:$0xff]  ;;  %v4065_v25 = vld [vmem:[%s5742_s3 + $0x60] sm:$0xff] }
 0xaa5   :  { %4476 = vmatprep.subr.mxu1 %v1895_v26 }
 0xaa6   :  { %v1746_v12 = vmul.f32 5.656854, %v1744_v44  ;;  %v1743_v47 = vmul.f32 %v4056_v41, %v1735_v45  ;;  %4477 = vmatpush3.msra.mxu1 %v1895_v26 }
 0xaa7   :  { %4478 = vmatprep.subr.mxu1 %v1894_v27 }
 0xaa8   :  { %v1748_v48 = vmul.f32 %v4005_v46, %v1746_v12  ;;  %v1745_v49 = vmul.f32 5.656854, %v1743_v47  ;;  %4479 = vmatpush3.msra.mxu1 %v1894_v27 }
 0xaa9   :  { %4480 = vmatprep.subr.mxu1 %v1893_v28 }
 0xaaa   :  { %v5219_v50 = vadd.f32 %v1748_v48, %v4985_v34  ;;  %v1747_v51 = vmul.f32 %v4004_v9, %v1745_v49  ;;  %4481 = vmatpush3.msra.mxu1 %v1893_v28 }
 0xaab   :  { %4482 = vmatprep.subr.mxu1 %v1892_v29 }
 0xaac   :  { %v1754_v52 = vsel %vm238_vm2, %v5219_v50, 0.0  ;;  %v5224_v53 = vadd.f32 %v1747_v51, %v4981_v32  ;;  %4483 = vmatpush3.msra.mxu1 %v1892_v29  ;;  %v4062_v51 = vld [vmem:[%s5692_s22] ss:$0 sm:$0xff]  ;;  %v2039_v29 = vadd.f32 1.0, %v4065_v25 }
 0xaad   :  { %1755 = vadd.xlane.f32.xlu1 %v1754_v52  ;;  %4484 = vmatprep.subr.mxu1 %v1891_v30  ;;  %v4011_v52 = vld [vmem:[%s5742_s3 + $0x58] sm:$0xff] }
 0xaae   :  { %v1751_v54 = vsel %vm238_vm2, %v5224_v53, 0.0  ;;  %4485 = vmatpush3.msra.mxu1 %v1891_v30 }
 0xaaf   :  { %1752 = vadd.xlane.f32.xlu0 %v1751_v54  ;;  %4486 = vmatprep.subr.mxu1 %v1890_v31 }
 0xab0   :  { %4487 = vmatpush3.msra.mxu1 %v1890_v31 }
 0xab1   :  { %4488 = vmatprep.subr.mxu1 %v1889_v33 }
 0xab2   :  { %4489 = vmatpush3.msra.mxu1 %v1889_v33  ;;  %v4067_v33 = vld [vmem:[%s5742_s3 + $0x70] sm:$0xff] }
 0xb36   :  { %v1756_v55 = vpop.xlane.xlu1 %1755 }
 0xb37   :  { %v1758_v56 = vmul.f32 0.03125, %v1756_v55 }
 0xb38   :  { %v1753_v57 = vpop.xlane.xlu0 %1752 }
 0xb39   :  { %v1760_v58 = vsub.f32 %v5219_v50, %v1758_v56  ;;  %v1757_v59 = vmul.f32 0.03125, %v1753_v57  ;;  %v4010_v56 = vld [vmem:[%s5742_s3 + $0x50] sm:$0xff] }
 0xb3b   :  { %v1759_v34 = vsub.f32 %v5224_v53, %v1757_v59  ;;  %v1762_v60 = vmul.f32 %v1760_v58, %v1760_v58 }
 0xb3d   :  { %v1766_v61 = vsel %vm238_vm2, %v1762_v60, 0.0  ;;  %v1761_v62 = vmul.f32 %v1759_v34, %v1759_v34 }
 0xb3e   :  { %1767 = vadd.xlane.f32.xlu1 %v1766_v61 }
 0xb3f   :  { %v1763_v32 = vsel %vm238_vm2, %v1761_v62, 0.0 }
 0xb40   :  { %1764 = vadd.xlane.f32.xlu0 %v1763_v32 }
 0xbc7   :  { %v1768_v4 = vpop.xlane.xlu1 %1767 }
 0xbc8   :  { %v1770_v5 = vmul.f32 0.03125, %v1768_v4 }
 0xbc9   :  { %v1765_v6 = vpop.xlane.xlu0 %1764 }
 0xbca   :  { %v1772_v7 = vadd.f32 1e-06, %v1770_v5  ;;  %v1769_v8 = vmul.f32 0.03125, %v1765_v6 }
 0xbcc   :  { %4713 = vrsqrt.f32 %v1772_v7  ;;  %v1771_v36 = vadd.f32 1e-06, %v1769_v8  ;;  %v4084_v8 = vld [vmem:[%s5739_s30 + $0x38] sm:$0xff] }
 0xbcd   :  { %4493 = vmatprep.subr.mxu0 %v4084_v8 }
 0xbce   :  { %4715 = vrsqrt.f32 %v1771_v36  ;;  %v4104_v36 = vld [vmem:[%s5741_s0 + $0x38] sm:$0xff] }
 0xbcf   :  { %4515 = vmatprep.subr.mxu1 %v4104_v36 }
 0xbd9   :  { %v4714_v3 = vpop.eup %4713 }
 0xbda   :  { %v1776_v14 = vmul.f32 %v4714_v3, %v1760_v58  ;;  %v4082_v3 = vld [vmem:[%s5739_s30 + $0x28] sm:$0xff] }
 0xbdb   :  { %v4716_v17 = vpop.eup %4715 }
 0xbdc   :  { %v1775_v18 = vmul.f32 %v4716_v17, %v1759_v34  ;;  %v1780_v20 = vmul.f32 %v1778_v13, %v1776_v14  ;;  %v4102_v13 = vld [vmem:[%s5741_s0 + $0x28] sm:$0xff]  ;;  %v4081_v14 = vld [vmem:[%s5739_s30 + $0x20] sm:$0xff]  ;;  %v4094_v17 = vld [vmem:[%s5740_s8 + $0x38] sm:$0xff] }
 0xbde   :  { %v1779_v21 = vmul.f32 %v1777_v16, %v1775_v18  ;;  %v1782_v24 = vadd.f32 %v4009_v22, %v1780_v20  ;;  %v4101_v16 = vld [vmem:[%s5741_s0 + $0x20] sm:$0xff] }
 0xbe0   :  { %v1781_v23 = vadd.f32 %v4008_v19, %v1779_v21 }
 0xbe2   :  { %4471 = vmatprep.mubr.msk.f32.mxu0 %vm238_vm2, %v1781_v23 }
 0xbe3   :  { %4472 = vmatmul.mubr.msk.f32.vlgmr.msra.gmra.mxu0 %vm238_vm2, %v1782_v24  ;;  %v4066_v24 = vld [vmem:[%s5742_s3 + $0x68] sm:$0xff] }
 0xbe4   :  { %4494 = vmatpush3.msra.mxu0 %v4084_v8  ;;  %v2040_v27 = vadd.f32 1.0, %v4066_v24 }
 0xbe5   :  { %4495 = vmatprep.subr.mxu0 %v4083_v39 }
 0xbe6   :  { %4496 = vmatpush3.msra.mxu0 %v4083_v39 }
 0xbe7   :  { %4497 = vmatprep.subr.mxu0 %v4082_v3 }
 0xbe8   :  { %4498 = vmatpush3.msra.mxu0 %v4082_v3  ;;  %v4100_v3 = vld [vmem:[%s5683_s15 + $0x1] ss:$0 sm:$0xff] }
 0xbe9   :  { %4499 = vmatprep.subr.mxu0 %v4081_v14 }
 0xbea   :  { %4500 = vmatpush3.msra.mxu0 %v4081_v14 }
 0xbeb   :  { %4504 = vmatprep.subr.mxu0 %v4094_v17 }
 0xca3   :  { %v4473_v37 = vpop.f32.mrf.mxu0 }
 0xca4   :  { %v1872_v38 = vadd.f32 %v4473_v37, %v4057_v35 }
 0xca5   :  { %v1866_v40 = vpop.f32.mrf.mxu0 }
 0xca6   :  { %v4061_v41 = vmul.f32 -1.442695, %v1872_v38  ;;  %v1867_v42 = vadd.f32 %v4057_v35, %v1866_v40 }
 0xca8   :  { %4717 = vpow2.f32 %v4061_v41  ;;  %v4060_v43 = vmul.f32 -1.442695, %v1867_v42 }
 0xcaa   :  { %4719 = vpow2.f32 %v4060_v43  ;;  %v4092_v43 = vld [vmem:[%s5740_s8 + $0x28] sm:$0xff] }
 0xcb5   :  { %v4718_v44 = vpop.eup %4717 }
 0xcb6   :  { %v1882_v45 = vadd.f32 1.0, %v4718_v44  ;;  %v4091_v44 = vld [vmem:[%s5740_s8 + $0x20] sm:$0xff] }
 0xcb7   :  { %v4720_v46 = vpop.eup %4719 }
 0xcb8   :  { %v1881_v12 = vadd.f32 1.0, %v4720_v46  ;;  %4721 = vrcp.f32 %v1882_v45  ;;  %v4106_v45 = vld [vmem:[%s5745_s9 + $0x1] ss:$0 sm:$0xff] }
 0xcba   :  { %4723 = vrcp.f32 %v1881_v12 }
 0xcc5   :  { %v4722_v47 = vpop.eup %4721 }
 0xcc6   :  { %v1888_v49 = vmul.f32 %v4722_v47, %v1872_v38  ;;  %v4068_v38 = vld [vmem:[%s5742_s3 + $0x78] sm:$0xff] }
 0xcc7   :  { %v4724_v9 = vpop.eup %4723 }
 0xcc8   :  { %v1887_v48 = vmul.f32 %v4724_v9, %v1867_v42  ;;  %v4093_v42 = vld [vmem:[%s5740_s8 + $0x30] sm:$0xff] }
 0xcca   :  { %4490 = vmatprep.mubr.msk.f32.mxu1 %vm1904_vm5, %v1887_v48 }
 0xccb   :  { %4491 = vmatmul.mubr.msk.f32.vlgmr.msra.gmra.mxu1 %vm1904_vm5, %v1888_v49 }
 0xccc   :  { %4516 = vmatpush3.msra.mxu1 %v4104_v36 }
 0xccd   :  { %4517 = vmatprep.subr.mxu1 %v4103_v11 }
 0xcce   :  { %4518 = vmatpush3.msra.mxu1 %v4103_v11 }
 0xccf   :  { %4519 = vmatprep.subr.mxu1 %v4102_v13 }
 0xcd0   :  { %4520 = vmatpush3.msra.mxu1 %v4102_v13 }
 0xcd1   :  { %4521 = vmatprep.subr.mxu1 %v4101_v16 }
 0xcd2   :  { %4522 = vmatpush3.msra.mxu1 %v4101_v16 }
 0xd8b   :  { %v4492_v54 = vpop.f32.mrf.mxu1 }
 0xd8c   :  { %v1983_v55 = vadd.f32 %v4492_v54, %v4062_v51 }
 0xd8d   :  { %v1977_v57 = vpop.f32.mrf.mxu1 }
 0xd8e   :  { %v1987_v58 = vmul.f32 %v4011_v52, %v1983_v55  ;;  %v1978_v59 = vadd.f32 %v4062_v51, %v1977_v57  ;;  %v4096_v51 = vld [vmem:[%s5743_s4 + $0x1] ss:$0 sm:$0xff] }
 0xd8f   :  { %v4086_v52 = vld [vmem:[%s5744_s2 + $0x1] ss:$0 sm:$0xff] }
 0xd90   :  { %v5297_v34 = vadd.f32 %v1987_v58, %v5219_v50  ;;  %v1986_v60 = vmul.f32 %v4010_v56, %v1978_v59 }
 0xd92   :  { %v5300_v61 = vadd.f32 %v1986_v60, %v5224_v53  ;;  %v2016_v62 = vsel %vm238_vm2, %v5297_v34, 0.0 }
 0xd93   :  { %2017 = vadd.xlane.f32.xlu1 %v2016_v62 }
 0xd94   :  { %v2013_v32 = vsel %vm238_vm2, %v5300_v61, 0.0 }
 0xd95   :  { %2014 = vadd.xlane.f32.xlu0 %v2013_v32 }
 0xe1c   :  { %v2018_v63 = vpop.xlane.xlu1 %2017 }
 0xe1d   :  { %v2020_v0 = vmul.f32 0.03125, %v2018_v63 }
 0xe1e   :  { %v2015_v1 = vpop.xlane.xlu0 %2014 }
 0xe1f   :  { %v2022_v2 = vsub.f32 %v5297_v34, %v2020_v0  ;;  %v2019_v4 = vmul.f32 0.03125, %v2015_v1 }
 0xe21   :  { %v2021_v50 = vsub.f32 %v5300_v61, %v2019_v4  ;;  %v2024_v5 = vmul.f32 %v2022_v2, %v2022_v2 }
 0xe23   :  { %v2028_v53 = vsel %vm238_vm2, %v2024_v5, 0.0  ;;  %v2023_v6 = vmul.f32 %v2021_v50, %v2021_v50 }
 0xe24   :  { %2029 = vadd.xlane.f32.xlu1 %v2028_v53 }
 0xe25   :  { %v2025_v7 = vsel %vm238_vm2, %v2023_v6, 0.0 }
 0xe26   :  { %2026 = vadd.xlane.f32.xlu0 %v2025_v7 }
 0xead   :  { %v2030_v18 = vpop.xlane.xlu1 %2029 }
 0xeae   :  { %v2032_v19 = vmul.f32 0.03125, %v2030_v18 }
 0xeaf   :  { %v2027_v20 = vpop.xlane.xlu0 %2026 }
 0xeb0   :  { %v2034_v21 = vadd.f32 1e-06, %v2032_v19  ;;  %v2031_v22 = vmul.f32 0.03125, %v2027_v20  ;;  %v4090_v19 = vld [vmem:[%s5684_s14 + $0x1] ss:$0 sm:$0xff] }
 0xeb2   :  { %4725 = vrsqrt.f32 %v2034_v21  ;;  %v2033_v23 = vadd.f32 1e-06, %v2031_v22 }
 0xeb4   :  { %4727 = vrsqrt.f32 %v2033_v23 }
 0xebf   :  { %v4726_v26 = vpop.eup %4725 }
 0xec0   :  { %v2038_v28 = vmul.f32 %v4726_v26, %v2022_v2 }
 0xec1   :  { %v4728_v30 = vpop.eup %4727 }
 0xec2   :  { %v2037_v31 = vmul.f32 %v4728_v30, %v2021_v50  ;;  %v2042_v35 = vmul.f32 %v2040_v27, %v2038_v28 }
 0xec4   :  { %v2041_v37 = vmul.f32 %v2039_v29, %v2037_v31  ;;  %v2044_v41 = vadd.f32 %v4068_v38, %v2042_v35 }
 0xec6   :  { %v2043_v40 = vadd.f32 %v4067_v33, %v2041_v37 }
 0xec8   :  { %4501 = vmatprep.mubr.msk.f32.mxu0 %vm238_vm2, %v2043_v40  ;;  %4523 = vmatprep.mubr.msk.f32.mxu1 %vm238_vm2, %v2043_v40 }
 0xec9   :  { %4502 = vmatmul.mubr.msk.f32.vlgmr.msra.gmra.mxu0 %vm238_vm2, %v2044_v41  ;;  %4524 = vmatmul.mubr.msk.f32.vlgmr.msra.gmra.mxu1 %vm238_vm2, %v2044_v41 }
 0xeca   :  { %4505 = vmatpush3.msra.mxu0 %v4094_v17  ;;  %4512 = vmatprep.mubr.msk.f32.mxu0 %vm238_vm2, %v2043_v40 }
 0xecb   :  { %4506 = vmatprep.subr.mxu0 %v4093_v42 }
 0xecc   :  { %4507 = vmatpush3.msra.mxu0 %v4093_v42 }
 0xecd   :  { %4508 = vmatprep.subr.mxu0 %v4092_v43 }
 0xece   :  { %4509 = vmatpush3.msra.mxu0 %v4092_v43 }
 0xecf   :  { %4510 = vmatprep.subr.mxu0 %v4091_v44 }
 0xed0   :  { %4511 = vmatpush3.msra.mxu0 %v4091_v44  ;;  %v5425_v44 = vld [vmem:[%s5685_s6] sm:$0xff] }
 0xed1   :  { %4513 = vmatmul.mubr.msk.f32.vlgmr.msra.gmra.mxu0 %vm238_vm2, %v2044_v41  ;;  %v5419_v41 = vld [vmem:[%s5685_s6 + $0x8] sm:$0xff]  ;;  %s5748_s6 = smov 104  }
 0xf89   :  { %v4525_v46 = vpop.f32.mrf.mxu1  ;;  %v4503_v47 = vpop.f32.mrf.mxu0 }
 0xf8a   :  { %v5367_v12 = vadd.f32 %v4525_v46, %v4106_v45  ;;  %v2136_v58 = vadd.f32 %v4503_v47, %v4086_v52 }
 0xf8b   :  { %v2360_v9 = vpop.f32.mrf.mxu1  ;;  %v2130_v49 = vpop.f32.mrf.mxu0 }
 0xf8c   :  { %v5369_v48 = vadd.f32 %v4106_v45, %v2360_v9  ;;  %4533 = vmatprep.subr.mxu1 %v5367_v12  ;;  %v2131_v55 = vadd.f32 %v4086_v52, %v2130_v49  ;;  %v2142_v1 = vmul.f32 %v2136_v58, %v2136_v58 }
 0xf8d   :  { %4534 = vmatpush3.msra.mxu1 %v5367_v12 }
 0xf8e   :  { %4535 = vmatprep.subr.mxu1 %v5369_v48  ;;  %v2141_v63 = vmul.f32 %v2131_v55, %v2131_v55  ;;  %v2146_v4 = vsel %vm238_vm2, %v2142_v1, 0.0 }
 0xf8f   :  { %4536 = vmatpush3.msra.mxu1 %v5369_v48 }
 0xf90   :  { %v2143_v2 = vsel %vm238_vm2, %v2141_v63, 0.0 }
 0xf91   :  { %v4514_v54 = vpop.f32.mrf.mxu0 }
 0xf92   :  { %v2252_v56 = vadd.f32 %v4514_v54, %v4096_v51 }
 0xf93   :  { %v2246_v57 = vpop.f32.mrf.mxu0 }
 0xf94   :  { %v2247_v59 = vadd.f32 %v4096_v51, %v2246_v57  ;;  %v2258_v60 = vmul.f32 %v2252_v56, %v2252_v56 }
 0xf96   :  { %v2262_v62 = vsel %vm238_vm2, %v2258_v60, 0.0  ;;  %v2257_v32 = vmul.f32 %v2247_v59, %v2247_v59 }
 0xf97   :  { %2263 = vadd.xlane.f32.xlu0 %v2262_v62 }
 0xf98   :  { %v2259_v0 = vsel %vm238_vm2, %v2257_v32, 0.0 }
 0xf99   :  { %2260 = vadd.xlane.f32.xlu1 %v2259_v0 }
 0xf9b   :  { %2144 = vadd.xlane.f32.xlu0 %v2143_v2 }
 0xf9d   :  { %2147 = vadd.xlane.f32.xlu1 %v2146_v4 }
0x1020   :  { %v2264_v50 = vpop.xlane.xlu0 %2263 }
0x1021   :  { %v2266_v5 = vmax.f32 %v2264_v50, 1e-24 }
0x1022   :  { %v2261_v53 = vpop.xlane.xlu1 %2260 }
0x1023   :  { %4729 = vrsqrt.f32 %v2266_v5  ;;  %v2265_v6 = vmax.f32 %v2261_v53, 1e-24 }
0x1024   :  { %v2145_v7 = vpop.xlane.xlu0 %2144 }
0x1025   :  { %4731 = vrsqrt.f32 %v2265_v6  ;;  %v2149_v8 = vmax.f32 %v2145_v7, 1e-24 }
0x1026   :  { %v2148_v36 = vpop.xlane.xlu1 %2147 }
0x1027   :  { %4733 = vrsqrt.f32 %v2149_v8  ;;  %v2150_v39 = vmax.f32 %v2148_v36, 1e-24 }
0x1029   :  { %4735 = vrsqrt.f32 %v2150_v39 }
0x1030   :  { %v4730_v11 = vpop.eup %4729 }
0x1031   :  { %v2270_v13 = vmul.f32 %v4730_v11, %v2252_v56 }
0x1032   :  { %v4732_v14 = vpop.eup %4731 }
0x1033   :  { %v2278_v16 = vmul.f32 %v4100_v3, %v2270_v13  ;;  %v2269_v17 = vmul.f32 %v4732_v14, %v2247_v59 }
0x1034   :  { %v4734_v18 = vpop.eup %4733 }
0x1035   :  { %v5391_v20 = vmul.f32 5.656854, %v2278_v16  ;;  %v2277_v21 = vmul.f32 %v4100_v3, %v2269_v17  ;;  %v2153_v22 = vmul.f32 %v4734_v18, %v2131_v55 }
0x1036   :  { %v4736_v23 = vpop.eup %4735 }
0x1037   :  { %4526 = vmatprep.subr.msk.mxu0 %vm596_vm3, %v5391_v20  ;;  %2657 = vrot.lane.b32.xlu0 %v5391_v20, %s5746_s12  ;;  %v2279_v24 = vmul.f32 5.656854, %v2277_v21  ;;  %v2154_v25 = vmul.f32 %v4736_v23, %v2136_v58  ;;  %v2161_v26 = vmul.f32 %v4090_v19, %v2153_v22 }
0x1038   :  { %4527 = vmatpush3.xpose.msk.msra.mxu0 %vm596_vm3, %v5391_v20 }
0x1039   :  { %4528 = vmatprep.subr.msk.mxu0 %vm596_vm3, %v2279_v24  ;;  %v2162_v27 = vmul.f32 %v4090_v19, %v2154_v25  ;;  %v2163_v28 = vmul.f32 5.656854, %v2161_v26  ;;  %v4077_v25 = vld [vmem:[%s5686_s16 + $0x20] sm:$0xff] }
0x103a   :  { %4540 = vmatprep.subr.mxu1 %v4077_v25 }
0x103b   :  { %v2164_v29 = vmul.f32 5.656854, %v2162_v27  ;;  %v5400_v30 = vmul.f32 0.35355338, %v2163_v28 }
0x103c   :  { %4529 = vmatpush3.xpose.msk.msra.mxu0 %vm596_vm3, %v2279_v24 }
0x103d   :  { %v2166_v31 = vmul.f32 0.35355338, %v2164_v29  ;;  %2651 = vrot.lane.b32.xlu1 %v5400_v30, %s5746_s12  ;;  %4530 = vmatprep.mubr.msk.f32.mxu0 %vm596_vm3, %v5400_v30 }
0x103f   :  { %4531 = vmatmul.mubr.msk.f32.vlgmr.msra.gmra.mxu0 %vm596_vm3, %v2166_v31 }
0x1041   :  { %2655 = vrot.lane.b32.xlu1 %v2279_v24, %s5746_s12 }
0x1045   :  { %2653 = vrot.lane.b32.xlu1 %v2166_v31, %s5746_s12 }
0x10a9   :  { %v2658_v33 = vpop.permute.xlu0 %2657 }
0x10aa   :  { %4545 = vmatprep.subr.msk.mxu0 %vm596_vm3, %v2658_v33 }
0x10ab   :  { %4546 = vmatpush3.xpose.msk.msra.mxu0 %vm596_vm3, %v2658_v33 }
0x10af   :  { %v2652_v35 = vpop.permute.xlu1 %2651 }
0x10b0   :  { %4549 = vmatprep.mubr.msk.f32.mxu0 %vm596_vm3, %v2652_v35 }
0x10b3   :  { %v2656_v37 = vpop.permute.xlu1 %2655 }
0x10b4   :  { %4547 = vmatprep.subr.msk.mxu0 %vm596_vm3, %v2656_v37 }
0x10b5   :  { %4548 = vmatpush3.xpose.msk.msra.mxu0 %vm596_vm3, %v2656_v37 }
0x10b7   :  { %v2654_v38 = vpop.permute.xlu1 %2653 }
0x10b8   :  { %4550 = vmatmul.mubr.msk.f32.vlgmr.msra.gmra.mxu0 %vm596_vm3, %v2654_v38 }
0x10ff   :  { %v4532_v40 = vpop.f32.mrf.mxu0 }
0x1100   :  { %v2462_v42 = vadd.f32 %v5419_v41, %v4532_v40 }
0x1101   :  { %v2456_v43 = vpop.f32.mrf.mxu0 }
0x1102   :  { %v2457_v45 = vadd.f32 %v5425_v44, %v2456_v43  ;;  %v2468_v46 = vsel %vm684_vm4, %v2462_v42, -inf }
0x1103   :  { %2469 = vmax.xlane.f32.xlu1 %v2468_v46 }
0x1104   :  { %v2465_v47 = vsel %vm684_vm4, %v2457_v45, -inf }
0x1105   :  { %2466 = vmax.xlane.f32.xlu0 %v2465_v47 }
0x1114   :  { %2940 = vrot.lane.b32.xlu1 %v2279_v24, %s5747_s28 }
0x1118   :  { %2936 = vrot.lane.b32.xlu1 %v5400_v30, %s5747_s28 }
0x111c   :  { %2938 = vrot.lane.b32.xlu1 %v2166_v31, %s5747_s28 }
0x1178   :  { %v4551_v9 = vpop.f32.mrf.mxu0 }
0x1179   :  { %v2739_v49 = vadd.f32 %v5419_v41, %v4551_v9 }
0x117a   :  { %v2733_v1 = vpop.f32.mrf.mxu0 }
0x117b   :  { %v2745_v51 = vsel %vm684_vm4, %v2739_v49, -inf  ;;  %v2734_v2 = vadd.f32 %v5425_v44, %v2733_v1 }
0x117c   :  { %2746 = vmax.xlane.f32.xlu1 %v2745_v51 }
0x117d   :  { %v2742_v4 = vsel %vm684_vm4, %v2734_v2, -inf }
0x118c   :  { %v2470_v52 = vpop.xlane.xlu1 %2469 }
0x118d   :  { %v2472_v54 = vsub.f32 %v2462_v42, %v2470_v52  ;;  %2766 = vrot.lane.b32.xlu1 %v5369_v48, %s5746_s12 }
0x118e   :  { %v2467_v55 = vpop.xlane.xlu0 %2466 }
0x118f   :  { %v2471_v56 = vsub.f32 %v2457_v45, %v2467_v55  ;;  %v2475_v58 = vmul.f32 1.442695, %v2472_v54 }
0x1190   :  { %v2941_v57 = vpop.permute.xlu1 %2940 }
0x1191   :  { %v2473_v59 = vmul.f32 1.442695, %v2471_v56  ;;  %3225 = vrot.lane.b32.xlu1 %v5391_v20, %s5748_s6 }
0x1193   :  { %4737 = vpow2.f32 %v2473_v59 }
0x1194   :  { %v2937_v60 = vpop.permute.xlu1 %2936  ;;  %4739 = vpow2.f32 %v2475_v58 }
0x1195   :  { %4568 = vmatprep.mubr.msk.f32.mxu0 %vm596_vm3, %v2937_v60  ;;  %3223 = vrot.lane.b32.xlu1 %v2279_v24, %s5748_s6 }
0x1198   :  { %v2939_v50 = vpop.permute.xlu1 %2938 }
0x1199   :  { %3221 = vrot.lane.b32.xlu1 %v2166_v31, %s5748_s6 }
0x11a0   :  { %v4738_v62 = vpop.eup %4737 }
0x11a1   :  { %v2477_v32 = vsel %vm684_vm4, %v4738_v62, 0.0  ;;  %v4740_v63 = vpop.eup %4739 }
0x11a2   :  { %2478 = vadd.xlane.f32.xlu0 %v2477_v32  ;;  %v2480_v0 = vsel %vm684_vm4, %v4740_v63, 0.0 }
0x11a6   :  { %2481 = vadd.xlane.f32.xlu0 %v2480_v0 }
0x11bc   :  { %2942 = vrot.lane.b32.xlu0 %v5391_v20, %s5747_s28 }
0x11db   :  { %2743 = vmax.xlane.f32.xlu0 %v2742_v4 }
0x1205   :  { %v2747_v5 = vpop.xlane.xlu1 %2746 }
0x1206   :  { %v2749_v53 = vsub.f32 %v2739_v49, %v2747_v5  ;;  %v4078_v49 = vld [vmem:[%s5686_s16 + $0x28] sm:$0xff] }
0x1208   :  { %v2752_v6 = vmul.f32 1.442695, %v2749_v53 }
0x1209   :  { %v2767_v11 = vpop.permute.xlu1 %2766 }
0x120a   :  { %4741 = vpow2.f32 %v2752_v6 }
0x120d   :  { %v3226_v13 = vpop.permute.xlu1 %3225 }
0x1211   :  { %v3224_v18 = vpop.permute.xlu1 %3223 }
0x1215   :  { %v3222_v43 = vpop.permute.xlu1 %3221 }
0x1217   :  { %v5449_v7 = vpop.eup %4741 }
0x1218   :  { %v2757_v8 = vsel %vm684_vm4, %v5449_v7, 0.0 }
0x1219   :  { %2758 = vadd.xlane.f32.xlu0 %v2757_v8 }
0x122b   :  { %v2479_v36 = vpop.xlane.xlu0 %2478 }
0x122c   :  { %4743 = vrcp.f32 %v2479_v36 }
0x122f   :  { %v2482_v39 = vpop.xlane.xlu0 %2481 }
0x1230   :  { %4745 = vrcp.f32 %v2482_v39 }
0x1233   :  { %v2943_v3 = vpop.permute.xlu0 %2942 }
0x1234   :  { %4564 = vmatprep.subr.msk.mxu0 %vm596_vm3, %v2943_v3 }
0x1235   :  { %4565 = vmatpush3.xpose.msk.msra.mxu0 %vm596_vm3, %v2943_v3 }
0x1236   :  { %4566 = vmatprep.subr.msk.mxu0 %vm596_vm3, %v2941_v57 }
0x1239   :  { %v4744_v14 = vpop.eup %4743  ;;  %4567 = vmatpush3.xpose.msk.msra.mxu0 %vm596_vm3, %v2941_v57 }
0x123a   :  { %4583 = vmatprep.subr.msk.mxu0 %vm596_vm3, %v3226_v13  ;;  %v2485_v16 = vmul.f32 %v4744_v14, %v4738_v62 }
0x123c   :  { %4537 = vmatprep.mubr.msk.f32.mxu1 %vm684_vm4, %v2485_v16  ;;  %4569 = vmatmul.mubr.msk.f32.vlgmr.msra.gmra.mxu0 %vm596_vm3, %v2939_v50 }
0x123d   :  { %v4746_v17 = vpop.eup %4745  ;;  %4584 = vmatpush3.xpose.msk.msra.mxu0 %vm596_vm3, %v3226_v13 }
0x123e   :  { %4585 = vmatprep.subr.msk.mxu0 %vm596_vm3, %v3224_v18  ;;  %v2486_v19 = vmul.f32 %v4746_v17, %v4740_v63 }
0x1240   :  { %4538 = vmatmul.mubr.msk.f32.vlgmr.msra.gmra.mxu1 %vm684_vm4, %v2486_v19 }
0x1241   :  { %4586 = vmatpush3.xpose.msk.msra.mxu0 %vm596_vm3, %v3224_v18  ;;  %4541 = vmatpush3.msra.mxu1 %v4077_v25  ;;  %v4110_v25 = vld [vmem:[%s5687_s17 + $0x1] ss:$0 sm:$0xff] }
0x1264   :  { %v2744_v20 = vpop.xlane.xlu0 %2743 }
0x1265   :  { %v2748_v21 = vsub.f32 %v2734_v2, %v2744_v20 }
0x1267   :  { %v2750_v22 = vmul.f32 1.442695, %v2748_v21 }
0x1269   :  { %4747 = vpow2.f32 %v2750_v22 }
0x1276   :  { %v4748_v23 = vpop.eup %4747 }
0x1277   :  { %v2754_v24 = vsel %vm684_vm4, %v4748_v23, 0.0 }
0x1278   :  { %2755 = vadd.xlane.f32.xlu0 %v2754_v24  ;;  %v4079_v24 = vld [vmem:[%s5686_s16 + $0x30] sm:$0xff] }
0x128e   :  { %2768 = vrot.lane.b32.xlu0 %v5367_v12, %s5746_s12 }
0x1292   :  { %3219 = vrot.lane.b32.xlu0 %v5400_v30, %s5748_s6 }
0x12a2   :  { %v2759_v27 = vpop.xlane.xlu0 %2758 }
0x12a3   :  { %4749 = vrcp.f32 %v2759_v27 }
0x12b0   :  { %v4750_v45 = vpop.eup %4749 }
0x12b1   :  { %v2763_v9 = vmul.f32 %v4750_v45, %v5449_v7 }
0x12fc   :  { %v4570_v26 = vpop.f32.mrf.mxu0 }
0x12fd   :  { %v3024_v28 = vadd.f32 %v5419_v41, %v4570_v26 }
0x12fe   :  { %v3018_v29 = vpop.f32.mrf.mxu0 }
0x12ff   :  { %v3019_v31 = vadd.f32 %v5425_v44, %v3018_v29  ;;  %v3030_v33 = vsel %vm684_vm4, %v3024_v28, -inf }
0x1300   :  { %v4539_v35 = vpop.f32.mrf.mxu1  ;;  %3031 = vmax.xlane.f32.xlu1 %v3030_v33 }
0x1301   :  { %v2756_v37 = vpop.xlane.xlu0 %2755  ;;  %v3027_v38 = vsel %vm684_vm4, %v3019_v31, -inf }
0x1302   :  { %4751 = vrcp.f32 %v2756_v37  ;;  %v2559_v40 = vpop.f32.mrf.mxu1  ;;  %3028 = vmax.xlane.f32.xlu0 %v3027_v38 }
0x1303   :  { %4542 = vmatprep.mubr.msk.f32.mxu1 %vm596_vm3, %v2559_v40 }
0x1304   :  { %4543 = vmatmul.mubr.msk.f32.vlgmr.msra.gmra.mxu1 %vm596_vm3, %v4539_v35 }
0x1305   :  { %v2769_v30 = vpop.permute.xlu0 %2768 }
0x1306   :  { %4552 = vmatprep.subr.mxu1 %v2769_v30 }
0x1307   :  { %4553 = vmatpush3.msra.mxu1 %v2769_v30 }
0x1308   :  { %4554 = vmatprep.subr.mxu1 %v2767_v11 }
0x1309   :  { %4555 = vmatpush3.msra.mxu1 %v2767_v11  ;;  %v3220_v42 = vpop.permute.xlu0 %3219 }
0x130a   :  { %4587 = vmatprep.mubr.msk.f32.mxu0 %vm596_vm3, %v3220_v42  ;;  %4559 = vmatprep.subr.mxu1 %v4078_v49 }
0x130b   :  { %4588 = vmatmul.mubr.msk.f32.vlgmr.msra.gmra.mxu0 %vm596_vm3, %v3222_v43  ;;  %v4080_v43 = vld [vmem:[%s5686_s16 + $0x38] sm:$0xff] }
0x130f   :  { %v4752_v46 = vpop.eup %4751 }
0x1310   :  { %v2762_v47 = vmul.f32 %v4752_v46, %v4748_v23 }
0x1311   :  { %3049 = vrot.lane.b32.xlu1 %v5369_v48, %s5747_s28 }
0x1312   :  { %4556 = vmatprep.mubr.msk.f32.mxu1 %vm684_vm4, %v2762_v47 }
0x1313   :  { %4557 = vmatmul.mubr.msk.f32.vlgmr.msra.gmra.mxu1 %vm684_vm4, %v2763_v9 }
0x1314   :  { %4560 = vmatpush3.msra.mxu1 %v4078_v49 }
0x1389   :  { %v3032_v51 = vpop.xlane.xlu1 %3031 }
0x138a   :  { %v3034_v52 = vsub.f32 %v3024_v28, %v3032_v51 }
0x138b   :  { %v3029_v54 = vpop.xlane.xlu0 %3028 }
0x138c   :  { %v3037_v55 = vmul.f32 1.442695, %v3034_v52  ;;  %v3033_v56 = vsub.f32 %v3019_v31, %v3029_v54 }
0x138d   :  { %v3050_v36 = vpop.permute.xlu1 %3049 }
0x138e   :  { %4753 = vpow2.f32 %v3037_v55  ;;  %v3035_v57 = vmul.f32 1.442695, %v3033_v56 }
0x1390   :  { %4755 = vpow2.f32 %v3035_v57 }
0x139b   :  { %v4754_v58 = vpop.eup %4753 }
0x139c   :  { %v3042_v59 = vsel %vm684_vm4, %v4754_v58, 0.0 }
0x139d   :  { %v4756_v60 = vpop.eup %4755  ;;  %3043 = vadd.xlane.f32.xlu0 %v3042_v59 }
0x139e   :  { %v3039_v62 = vsel %vm684_vm4, %v4756_v60, 0.0 }
0x13a1   :  { %3040 = vadd.xlane.f32.xlu0 %v3039_v62 }
0x13b7   :  { %3051 = vrot.lane.b32.xlu0 %v5367_v12, %s5747_s28 }
0x13c4   :  { %v4544_v63 = vpop.f32.mrf.mxu1 }
0x13c5   :  { %v2650_v26 = vadd.f32 %v4544_v63, %v4110_v25 }
0x13c6   :  { %v5494_v4 = vpop.f32.mrf.mxu1 }
0x13c7   :  { %v2649_v45 = vadd.f32 %v4110_v25, %v5494_v4 }
0x13cb   :  { %v4589_v32 = vpop.f32.mrf.mxu0 }
0x13cc   :  { %v3307_v50 = vadd.f32 %v5419_v41, %v4589_v32 }
0x13cd   :  { %v3301_v0 = vpop.f32.mrf.mxu0 }
0x13ce   :  { %v3302_v1 = vadd.f32 %v5425_v44, %v3301_v0  ;;  %v3313_v6 = vsel %vm684_vm4, %v3307_v50, -inf }
0x13d0   :  { %v3310_v2 = vsel %vm684_vm4, %v3302_v1, -inf }
0x13d1   :  { %3311 = vmax.xlane.f32.xlu1 %v3310_v2 }
0x13d3   :  { %v4558_v5 = vpop.f32.mrf.mxu1 }
0x13d5   :  { %v2844_v53 = vpop.f32.mrf.mxu1 }
0x13d6   :  { %4561 = vmatprep.mubr.msk.f32.mxu1 %vm596_vm3, %v2844_v53  ;;  %3314 = vmax.xlane.f32.xlu0 %v3313_v6 }
0x13d7   :  { %4562 = vmatmul.mubr.msk.f32.vlgmr.msra.gmra.mxu1 %vm596_vm3, %v4558_v5 }
0x1426   :  { %v3044_v7 = vpop.xlane.xlu0 %3043 }
0x1427   :  { %4757 = vrcp.f32 %v3044_v7 }
0x142a   :  { %v3041_v8 = vpop.xlane.xlu0 %3040 }
0x142b   :  { %4759 = vrcp.f32 %v3041_v8  ;;  %v4070_v8 = vld [vmem:[%s5742_s3 + $0x88] sm:$0xff] }
0x142e   :  { %v3052_v44 = vpop.permute.xlu0 %3051 }
0x142f   :  { %4571 = vmatprep.subr.mxu1 %v3052_v44 }
0x1430   :  { %4572 = vmatpush3.msra.mxu1 %v3052_v44 }
0x1431   :  { %4573 = vmatprep.subr.mxu1 %v3050_v36 }
0x1432   :  { %4574 = vmatpush3.msra.mxu1 %v3050_v36 }
0x1433   :  { %4578 = vmatprep.subr.mxu1 %v4079_v24 }
0x1434   :  { %v4758_v41 = vpop.eup %4757 }
0x1435   :  { %v3048_v3 = vmul.f32 %v4758_v41, %v4754_v58  ;;  %v4069_v41 = vld [vmem:[%s5742_s3 + $0x80] sm:$0xff] }
0x1438   :  { %v4760_v39 = vpop.eup %4759 }
0x1439   :  { %v3047_v11 = vmul.f32 %v4760_v39, %v4756_v60 }
0x143b   :  { %4575 = vmatprep.mubr.msk.f32.mxu1 %vm684_vm4, %v3047_v11 }
0x143c   :  { %4576 = vmatmul.mubr.msk.f32.vlgmr.msra.gmra.mxu1 %vm684_vm4, %v3048_v3 }
0x143d   :  { %4579 = vmatpush3.msra.mxu1 %v4079_v24 }
0x145a   :  { %v3312_v13 = vpop.xlane.xlu1 %3311 }
0x145b   :  { %v3316_v14 = vsub.f32 %v3302_v1, %v3312_v13 }
0x145d   :  { %v3318_v16 = vmul.f32 1.442695, %v3316_v14 }
0x145f   :  { %4761 = vpow2.f32 %v3318_v16  ;;  %v3315_v17 = vpop.xlane.xlu0 %3314 }
0x1460   :  { %v3317_v18 = vsub.f32 %v3307_v50, %v3315_v17  ;;  %v4144_v50 = vld [vmem:[%s5688_s18 + $0x1] ss:$0 sm:$0xff] }
0x1462   :  { %v3320_v19 = vmul.f32 1.442695, %v3317_v18 }
0x1464   :  { %4763 = vpow2.f32 %v3320_v19 }
0x146c   :  { %v4762_v20 = vpop.eup %4761 }
0x146d   :  { %v3322_v21 = vsel %vm684_vm4, %v4762_v20, 0.0 }
0x146e   :  { %3323 = vadd.xlane.f32.xlu0 %v3322_v21 }
0x1471   :  { %v4764_v22 = vpop.eup %4763 }
0x1472   :  { %v3325_v23 = vsel %vm684_vm4, %v4764_v22, 0.0 }
0x1473   :  { %3326 = vadd.xlane.f32.xlu1 %v3325_v23 }
0x1484   :  { %3334 = vrot.lane.b32.xlu0 %v5367_v12, %s5748_s6  ;;  %3332 = vrot.lane.b32.xlu1 %v5369_v48, %s5748_s6 }
0x1497   :  { %v4563_v27 = vpop.f32.mrf.mxu1 }
0x1498   :  { %v2935_v28 = vadd.f32 %v4563_v27, %v2650_v26  ;;  %v4148_v26 = vld [vmem:[%s5689_s19 + $0x38] sm:$0xff]  ;;  %v4147_v27 = vld [vmem:[%s5689_s19 + $0x30] sm:$0xff] }
0x1499   :  { %v2925_v31 = vpop.f32.mrf.mxu1  ;;  %4602 = vmatprep.subr.mxu0 %v4148_v26 }
0x149a   :  { %v2934_v47 = vadd.f32 %v2925_v31, %v2649_v45  ;;  %4603 = vmatpush3.msra.mxu0 %v4148_v26  ;;  %v3817_v31 = vld [vmem:[%s5693_s26 + $0x18] sm:$0xff] }
0x149b   :  { %4604 = vmatprep.subr.mxu0 %v4147_v27 }
0x149c   :  { %4605 = vmatpush3.msra.mxu0 %v4147_v27 }
0x14f7   :  { %v3324_v29 = vpop.xlane.xlu0 %3323 }
0x14f8   :  { %4765 = vrcp.f32 %v3324_v29  ;;  %v4145_v29 = vld [vmem:[%s5689_s19 + $0x20] sm:$0xff] }
0x14fb   :  { %v3335_v33 = vpop.permute.xlu0 %3334 }
0x14fc   :  { %v4577_v35 = vpop.f32.mrf.mxu1  ;;  %v3327_v37 = vpop.xlane.xlu1 %3326  ;;  %4590 = vmatprep.subr.mxu1 %v3335_v33 }
0x14fd   :  { %4767 = vrcp.f32 %v3327_v37 }
0x14fe   :  { %v3127_v38 = vpop.f32.mrf.mxu1 }
0x14ff   :  { %4580 = vmatprep.mubr.msk.f32.mxu1 %vm596_vm3, %v3127_v38 }
0x1500   :  { %4581 = vmatmul.mubr.msk.f32.vlgmr.msra.gmra.mxu1 %vm596_vm3, %v4577_v35  ;;  %v3333_v12 = vpop.permute.xlu1 %3332 }
0x1501   :  { %4591 = vmatpush3.msra.mxu1 %v3335_v33 }
0x1502   :  { %4592 = vmatprep.subr.mxu1 %v3333_v12 }
0x1503   :  { %4593 = vmatpush3.msra.mxu1 %v3333_v12 }
0x1504   :  { %4597 = vmatprep.subr.mxu1 %v4080_v43 }
0x1505   :  { %v4766_v48 = vpop.eup %4765 }
0x1506   :  { %v3330_v40 = vmul.f32 %v4766_v48, %v4762_v20 }
0x1508   :  { %4594 = vmatprep.mubr.msk.f32.mxu1 %vm684_vm4, %v3330_v40  ;;  %v4072_v40 = vld [vmem:[%s5742_s3 + $0x98] sm:$0xff] }
0x150a   :  { %v4768_v30 = vpop.eup %4767 }
0x150b   :  { %v3331_v42 = vmul.f32 %v4768_v30, %v4764_v22  ;;  %v4071_v30 = vld [vmem:[%s5742_s3 + $0x90] sm:$0xff] }
0x150d   :  { %4595 = vmatmul.mubr.msk.f32.vlgmr.msra.gmra.mxu1 %vm684_vm4, %v3331_v42 }
0x150e   :  { %4598 = vmatpush3.msra.mxu1 %v4080_v43  ;;  %v3559_v43 = vadd.f32 1.0, %v4072_v40  ;;  %v3812_v40 = vld [vmem:[%s5694_s25 + $0x10] sm:$0xff] }
0x15c0   :  { %v4582_v46 = vpop.f32.mrf.mxu1 }
0x15c1   :  { %v3218_v9 = vadd.f32 %v4582_v46, %v2935_v28  ;;  %v4146_v28 = vld [vmem:[%s5689_s19 + $0x28] sm:$0xff]  ;;  %v3558_v46 = vadd.f32 1.0, %v4071_v30  ;;  %s5749_s19 = sld [smem:[#allocation15_spill]] }
0x15c2   :  { %v3208_v49 = vpop.f32.mrf.mxu1  ;;  %4606 = vmatprep.subr.mxu0 %v4146_v28  ;;  %v3811_v30 = vld [vmem:[%s5694_s25 + $0x8] sm:$0xff] }
0x15c3   :  { %v3217_v51 = vadd.f32 %v3208_v49, %v2934_v47  ;;  %4607 = vmatpush3.msra.mxu0 %v4146_v28  ;;  %v4073_v49 = vld [vmem:[%s5742_s3 + $0xa0] sm:$0xff] }
0x15c4   :  { %4608 = vmatprep.subr.mxu0 %v4145_v29 }
0x15c5   :  { %4609 = vmatpush3.msra.mxu0 %v4145_v29 }
0x15c6   :  { %4632 = vmatprep.subr.mxu0 %v3817_v31 }
0x15cd   :  { %v4596_v52 = vpop.f32.mrf.mxu1 }
0x15cf   :  { %v3410_v54 = vpop.f32.mrf.mxu1 }
0x15d0   :  { %4599 = vmatprep.mubr.msk.f32.mxu1 %vm596_vm3, %v3410_v54  ;;  %v4074_v54 = vld [vmem:[%s5742_s3 + $0xa8] sm:$0xff] }
0x15d1   :  { %4600 = vmatmul.mubr.msk.f32.vlgmr.msra.gmra.mxu1 %vm596_vm3, %v4596_v52 }
0x1691   :  { %v4601_v55 = vpop.f32.mrf.mxu1 }
0x1692   :  { %v3501_v56 = vadd.f32 %v4601_v55, %v3218_v9 }
0x1693   :  { %v3491_v57 = vpop.f32.mrf.mxu1 }
0x1694   :  { %v3500_v58 = vadd.f32 %v3491_v57, %v3217_v51  ;;  %v3505_v59 = vmul.f32 %v3501_v56, %v3501_v56  ;;  %v3816_v57 = vld [vmem:[%s5693_s26 + $0x10] sm:$0xff] }
0x1696   :  { %v3509_v60 = vsel %vm238_vm2, %v3505_v59, 0.0  ;;  %v3504_v62 = vmul.f32 %v3500_v58, %v3500_v58  ;;  %v3814_v59 = vld [vmem:[%s5693_s26] sm:$0xff] }
0x1697   :  { %3510 = vadd.xlane.f32.xlu0 %v3509_v60  ;;  %v4161_v60 = vld [vmem:[%s5690_s21 + $0x70] sm:$0xff] }
0x1698   :  { %v3506_v32 = vsel %vm238_vm2, %v3504_v62, 0.0  ;;  %v4160_v62 = vld [vmem:[%s5690_s21 + $0x68] sm:$0xff] }
0x1699   :  { %3507 = vadd.xlane.f32.xlu1 %v3506_v32  ;;  %v4158_v32 = vld [vmem:[%s5690_s21 + $0x58] sm:$0xff] }
0x1720   :  { %v3511_v63 = vpop.xlane.xlu0 %3510 }
0x1721   :  { %v3513_v0 = vmax.f32 %v3511_v63, 1e-24  ;;  %v4157_v63 = vld [vmem:[%s5690_s21 + $0x50] sm:$0xff] }
0x1722   :  { %v3508_v1 = vpop.xlane.xlu1 %3507 }
0x1723   :  { %4769 = vrsqrt.f32 %v3513_v0  ;;  %v3512_v2 = vmax.f32 %v3508_v1, 1e-24  ;;  %v4156_v0 = vld [vmem:[%s5690_s21 + $0x48] sm:$0xff]  ;;  %v4155_v1 = vld [vmem:[%s5690_s21 + $0x40] sm:$0xff] }
0x1725   :  { %4771 = vrsqrt.f32 %v3512_v2  ;;  %v4150_v2 = vld [vmem:[%s5691_s20 + $0x1] ss:$0 sm:$0xff] }
0x1730   :  { %v4770_v4 = vpop.eup %4769 }
0x1731   :  { %v3517_v5 = vmul.f32 %v4770_v4, %v3501_v56 }
0x1732   :  { %v4772_v53 = vpop.eup %4771 }
0x1733   :  { %v3525_v6 = vmul.f32 %v4144_v50, %v3517_v5  ;;  %v3516_v7 = vmul.f32 %v4772_v53, %v3500_v58  ;;  %v3815_v58 = vld [vmem:[%s5693_s26 + $0x8] sm:$0xff] }
0x1735   :  { %v3527_v44 = vmul.f32 5.656854, %v3525_v6  ;;  %v3524_v36 = vmul.f32 %v4144_v50, %v3516_v7 }
0x1737   :  { %v3529_v39 = vmul.f32 %v4070_v8, %v3527_v44  ;;  %v3526_v11 = vmul.f32 5.656854, %v3524_v36 }
0x1739   :  { %v5536_v3 = vadd.f32 %v3529_v39, %v5297_v34  ;;  %v3528_v13 = vmul.f32 %v4069_v41, %v3526_v11 }
0x173b   :  { %v3535_v14 = vsel %vm238_vm2, %v5536_v3, 0.0  ;;  %v5541_v16 = vadd.f32 %v3528_v13, %v5300_v61 }
0x173c   :  { %3536 = vadd.xlane.f32.xlu1 %v3535_v14 }
0x173d   :  { %v3532_v17 = vsel %vm238_vm2, %v5541_v16, 0.0 }
0x173e   :  { %3533 = vadd.xlane.f32.xlu0 %v3532_v17  ;;  %v4164_v17 = vld [vmem:[%s5692_s22 + $0x1] ss:$0 sm:$0xff] }
0x17c5   :  { %v3537_v18 = vpop.xlane.xlu1 %3536 }
0x17c6   :  { %v3539_v19 = vmul.f32 0.03125, %v3537_v18  ;;  %v4076_v18 = vld [vmem:[%s5742_s3 + $0xb8] sm:$0xff] }
0x17c7   :  { %v3534_v20 = vpop.xlane.xlu0 %3533 }
0x17c8   :  { %v3541_v21 = vsub.f32 %v5536_v3, %v3539_v19  ;;  %v3538_v22 = vmul.f32 0.03125, %v3534_v20 }
0x17ca   :  { %v3540_v34 = vsub.f32 %v5541_v16, %v3538_v22  ;;  %v3543_v23 = vmul.f32 %v3541_v21, %v3541_v21 }
0x17cc   :  { %v3547_v24 = vsel %vm238_vm2, %v3543_v23, 0.0  ;;  %v3542_v25 = vmul.f32 %v3540_v34, %v3540_v34 }
0x17cd   :  { %3548 = vadd.xlane.f32.xlu1 %v3547_v24 }
0x17ce   :  { %v3544_v61 = vsel %vm238_vm2, %v3542_v25, 0.0 }
0x17cf   :  { %3545 = vadd.xlane.f32.xlu0 %v3544_v61 }
0x1856   :  { %v3549_v33 = vpop.xlane.xlu1 %3548 }
0x1857   :  { %v3551_v35 = vmul.f32 0.03125, %v3549_v33 }
0x1858   :  { %v3546_v37 = vpop.xlane.xlu0 %3545 }
0x1859   :  { %v3553_v38 = vadd.f32 1e-06, %v3551_v35  ;;  %v3550_v12 = vmul.f32 0.03125, %v3546_v37 }
0x185b   :  { %4773 = vrsqrt.f32 %v3553_v38  ;;  %v3552_v48 = vadd.f32 1e-06, %v3550_v12 }
0x185d   :  { %4775 = vrsqrt.f32 %v3552_v48 }
0x1868   :  { %v4774_v42 = vpop.eup %4773 }
0x1869   :  { %v3557_v45 = vmul.f32 %v4774_v42, %v3541_v21  ;;  %v4075_v21 = vld [vmem:[%s5742_s3 + $0xb0] sm:$0xff]  ;;  %v3810_v42 = vld [vmem:[%s5694_s25] sm:$0xff] }
0x186a   :  { %v4776_v47 = vpop.eup %4775 }
0x186b   :  { %v3556_v9 = vmul.f32 %v4776_v47, %v3540_v34  ;;  %v3561_v51 = vmul.f32 %v3559_v43, %v3557_v45 }
0x186d   :  { %v3560_v52 = vmul.f32 %v3558_v46, %v3556_v9  ;;  %v3563_v56 = vadd.f32 %v4074_v54, %v3561_v51  ;;  %v3801_v51 = vld [vmem:[%s5695_s23 + $0x8] sm:$0xff] }
0x186f   :  { %v3562_v55 = vadd.f32 %v4073_v49, %v3560_v52  ;;  %v3800_v52 = vld [vmem:[%s5695_s23] sm:$0xff] }
0x1871   :  { %4610 = vmatprep.mubr.msk.f32.mxu0 %vm238_vm2, %v3562_v55  ;;  %v3803_v55 = vadd.f32 1.0, %v3801_v51 }
0x1872   :  { %4611 = vmatmul.mubr.msk.f32.vlgmr.msra.gmra.mxu0 %vm238_vm2, %v3563_v56 }
0x1873   :  { %4633 = vmatpush3.msra.mxu0 %v3817_v31  ;;  %4640 = vmatprep.mubr.msk.f32.mxu0 %vm238_vm2, %v4969_v15  ;;  %v4162_v15 = vld [vmem:[%s5690_s21 + $0x78] sm:$0xff] }
0x1874   :  { %4634 = vmatprep.subr.mxu0 %v3816_v57  ;;  %4613 = vmatprep.subr.mxu1 %v4162_v15 }
0x1875   :  { %4635 = vmatpush3.msra.mxu0 %v3816_v57  ;;  %4614 = vmatpush3.msra.mxu1 %v4162_v15  ;;  %v3802_v57 = vadd.f32 1.0, %v3800_v52 }
0x1876   :  { %4636 = vmatprep.subr.mxu0 %v3815_v58  ;;  %4615 = vmatprep.subr.mxu1 %v4161_v60 }
0x1877   :  { %4637 = vmatpush3.msra.mxu0 %v3815_v58  ;;  %4616 = vmatpush3.msra.mxu1 %v4161_v60  ;;  %v3806_v60 = vld [vmem:[%s5696_s24] sm:$0xff] }
0x1878   :  { %4638 = vmatprep.subr.mxu0 %v3814_v59  ;;  %4617 = vmatprep.subr.mxu1 %v4160_v62 }
0x1879   :  { %4639 = vmatpush3.msra.mxu0 %v3814_v59  ;;  %4618 = vmatpush3.msra.mxu1 %v4160_v62 }
0x187a   :  { %4641 = vmatmul.mubr.msk.f32.vlgmr.msra.gmra.mxu0 %vm238_vm2, %v4963_v10  ;;  %v4159_v10 = vld [vmem:[%s5690_s21 + $0x60] sm:$0xff] }
0x187b   :  { %4619 = vmatprep.subr.mxu1 %v4159_v10 }
0x187c   :  { %4620 = vmatpush3.msra.mxu1 %v4159_v10  ;;  %v3807_v10 = vld [vmem:[%s5696_s24 + $0x8] sm:$0xff] }
0x187d   :  { %4621 = vmatprep.subr.mxu1 %v4158_v32 }
0x187e   :  { %4622 = vmatpush3.msra.mxu1 %v4158_v32 }
0x187f   :  { %4623 = vmatprep.subr.mxu1 %v4157_v63 }
0x1880   :  { %4624 = vmatpush3.msra.mxu1 %v4157_v63 }
0x1881   :  { %4625 = vmatprep.subr.mxu1 %v4156_v0 }
0x1882   :  { %4626 = vmatpush3.msra.mxu1 %v4156_v0 }
0x1883   :  { %4627 = vmatprep.subr.mxu1 %v4155_v1 }
0x1884   :  { %4628 = vmatpush3.msra.mxu1 %v4155_v1 }
0x1932   :  { %v4612_v4 = vpop.f32.mrf.mxu0 }
0x1933   :  { %v3655_v50 = vadd.f32 %v4612_v4, %v4150_v2  ;;  %v4171_v4 = vld [vmem:[%s5749_s19] ss:$0 sm:$0xff] }
0x1934   :  { %v3649_v5 = vpop.f32.mrf.mxu0 }
0x1935   :  { %v4154_v53 = vmul.f32 -1.442695, %v3655_v50  ;;  %v3650_v6 = vadd.f32 %v4150_v2, %v3649_v5 }
0x1937   :  { %4777 = vpow2.f32 %v4154_v53  ;;  %v4153_v7 = vmul.f32 -1.442695, %v3650_v6 }
0x1939   :  { %4779 = vpow2.f32 %v4153_v7 }
0x193a   :  { %v4642_v0 = vpop.f32.mrf.mxu0 }
0x193c   :  { %v3890_v1 = vpop.f32.mrf.mxu0 }
0x1944   :  { %v4778_v8 = vpop.eup %4777 }
0x1945   :  { %v3665_v44 = vadd.f32 1.0, %v4778_v8 }
0x1946   :  { %v4780_v36 = vpop.eup %4779 }
0x1947   :  { %v3664_v41 = vadd.f32 1.0, %v4780_v36  ;;  %4781 = vrcp.f32 %v3665_v44 }
0x1949   :  { %4783 = vrcp.f32 %v3664_v41 }
0x1954   :  { %v4782_v39 = vpop.eup %4781 }
0x1955   :  { %v3671_v14 = vmul.f32 %v4782_v39, %v3655_v50 }
0x1956   :  { %v4784_v11 = vpop.eup %4783 }
0x1957   :  { %v3670_v13 = vmul.f32 %v4784_v11, %v3650_v6 }
0x1959   :  { %4629 = vmatprep.mubr.msk.f32.mxu1 %vm1904_vm5, %v3670_v13 }
0x195a   :  { %4630 = vmatmul.mubr.msk.f32.vlgmr.msra.gmra.mxu1 %vm1904_vm5, %v3671_v14 }
0x1a1a   :  { %v4631_v19 = vpop.f32.mrf.mxu1 }
0x1a1b   :  { %v3767_v20 = vadd.f32 %v4631_v19, %v4164_v17 }
0x1a1c   :  { %v3761_v22 = vpop.f32.mrf.mxu1 }
0x1a1d   :  { %v3771_v34 = vmul.f32 %v4076_v18, %v3767_v20  ;;  %v3762_v23 = vadd.f32 %v4164_v17, %v3761_v22 }
0x1a1f   :  { %v3770_v24 = vmul.f32 %v4075_v21, %v3762_v23  ;;  %v3773_v25 = vadd.f32 %v3771_v34, %v5536_v3 }
0x1a21   :  { %v3777_v61 = vsel %vm238_vm2, %v3773_v25, 0.0  ;;  %v3772_v26 = vadd.f32 %v3770_v24, %v5541_v16  ;;  %v3813_v16 = vld [vmem:[%s5694_s25 + $0x18] sm:$0xff] }
0x1a22   :  { %3778 = vadd.xlane.f32.xlu1 %v3777_v61  ;;  %4643 = vmatprep.subr.mxu0 %v3813_v16 }
0x1a23   :  { %v3774_v27 = vsel %vm238_vm2, %v3772_v26, 0.0  ;;  %4644 = vmatpush3.msra.mxu0 %v3813_v16 }
0x1a24   :  { %3775 = vadd.xlane.f32.xlu0 %v3774_v27  ;;  %4645 = vmatprep.subr.mxu0 %v3812_v40 }
0x1a25   :  { %4646 = vmatpush3.msra.mxu0 %v3812_v40 }
0x1a26   :  { %4647 = vmatprep.subr.mxu0 %v3811_v30 }
0x1a27   :  { %4648 = vmatpush3.msra.mxu0 %v3811_v30 }
0x1a28   :  { %4649 = vmatprep.subr.mxu0 %v3810_v42 }
0x1a29   :  { %4650 = vmatpush3.msra.mxu0 %v3810_v42 }
0x1aab   :  { %v3779_v28 = vpop.xlane.xlu1 %3778 }
0x1aac   :  { %v3781_v29 = vmul.f32 0.03125, %v3779_v28 }
0x1aad   :  { %v3776_v31 = vpop.xlane.xlu0 %3775 }
0x1aae   :  { %v3783_v33 = vsub.f32 %v3773_v25, %v3781_v29  ;;  %v3780_v35 = vmul.f32 0.03125, %v3776_v31 }
0x1ab0   :  { %v3782_v37 = vsub.f32 %v3772_v26, %v3780_v35  ;;  %v3785_v38 = vmul.f32 %v3783_v33, %v3783_v33 }
0x1ab2   :  { %v3789_v12 = vsel %vm238_vm2, %v3785_v38, 0.0  ;;  %v3784_v48 = vmul.f32 %v3782_v37, %v3782_v37 }
0x1ab3   :  { %3790 = vadd.xlane.f32.xlu1 %v3789_v12 }
0x1ab4   :  { %v3786_v3 = vsel %vm238_vm2, %v3784_v48, 0.0 }
0x1ab5   :  { %3787 = vadd.xlane.f32.xlu0 %v3786_v3 }
0x1b3c   :  { %v3791_v43 = vpop.xlane.xlu1 %3790 }
0x1b3d   :  { %v3793_v45 = vmul.f32 0.03125, %v3791_v43 }
0x1b3e   :  { %v3788_v46 = vpop.xlane.xlu0 %3787 }
0x1b3f   :  { %v3795_v47 = vadd.f32 1e-06, %v3793_v45  ;;  %v3792_v9 = vmul.f32 0.03125, %v3788_v46 }
0x1b41   :  { %4785 = vrsqrt.f32 %v3795_v47  ;;  %v3794_v49 = vadd.f32 1e-06, %v3792_v9 }
0x1b43   :  { %4787 = vrsqrt.f32 %v3794_v49 }
0x1b4e   :  { %v4786_v54 = vpop.eup %4785 }
0x1b4f   :  { %v3799_v56 = vmul.f32 %v4786_v54, %v3783_v33 }
0x1b50   :  { %v4788_v58 = vpop.eup %4787 }
0x1b51   :  { %v3798_v59 = vmul.f32 %v4788_v58, %v3782_v37  ;;  %v3805_v15 = vmul.f32 %v3803_v55, %v3799_v56 }
0x1b53   :  { %v3804_v62 = vmul.f32 %v3802_v57, %v3798_v59  ;;  %v3809_v63 = vadd.f32 %v3807_v10, %v3805_v15 }
0x1b55   :  { %v3808_v32 = vadd.f32 %v3806_v60, %v3804_v62 }
0x1b57   :  { %4651 = vmatprep.mubr.msk.f32.mxu0 %vm238_vm2, %v3808_v32 }
0x1b58   :  { %4652 = vmatmul.mubr.msk.f32.vlgmr.msra.gmra.mxu0 %vm238_vm2, %v3809_v63 }
0x1c18   :  { %v4653_v2 = vpop.f32.mrf.mxu0 }
0x1c19   :  { %v3977_v50 = vadd.f32 %v4653_v2, %v4642_v0 }
0x1c1a   :  { %v3971_v5 = vpop.f32.mrf.mxu0 }
0x1c1b   :  { %v3988_v53 = vadd.f32 %v4171_v4, %v3977_v50  ;;  %v3972_v6 = vadd.f32 %v3971_v5, %v3890_v1 }
0x1c1d   :  { %3991 = vst.msk [vmem:[%s5750_s1 + $0x8] sm:$0xff] %vm3989_vm6, %v3988_v53  ;;  %v3987_v7 = vadd.f32 %v4171_v4, %v3972_v6 }
0x1c1f   :  { %3990 = vst.msk [vmem:[%s5750_s1] sm:$0xff] %vm3989_vm6, %v3987_v7 }

</bundles_post_ra>
